<compile_context>
chip_gen: v7x
topology: tpu7x:2x2x1
jax: 0.10.0
libtpu: 0.0.40
codegen_flags: <defaults>
</compile_context>

<pallas_src>
import functools

import jax
import jax.numpy as jnp
from jax.experimental import pallas as pl
from jax.experimental.pallas import tpu as pltpu

LANES = 128  # lane-dense channel padding


# ----------------------------- in-kernel helpers -----------------------------

def _zero_halo(g_ref, wp, B):
    """Zero only the 1-pixel halo ring of a wp x wp padded grid (batched layout:
    row = position*B + b).  Interior rows are fully overwritten right afterwards."""
    width = g_ref.shape[1]
    # top row + left edge of row 1 (contiguous in the flattened grid)
    g_ref[0:(wp + 1) * B, :] = jnp.zeros(((wp + 1) * B, width), jnp.float32)
    for y in range(1, wp - 1):
        s = (y + 1) * wp - 1                      # right edge of row y ...
        if y == wp - 2:
            n = wp * wp - s                       # ... + the whole bottom row
        else:
            n = 2                                 # ... + left edge of row y+1
        g_ref[s * B:(s + n) * B, :] = jnp.zeros((n * B, width), jnp.float32)


def _conv_layer(g_ref, acc_ref, w_ref, b_ref, brow, cin, wp, npos, m_chunk, B):
    """Conv2d(k=2, s=1, p=1) on the batched padded grid: 4 accumulated matmuls per
    M-chunk over row-shifted windows.  acc rows [P*B, (P+1)*B) hold the conv output at
    padded-grid position (P // wp, P % wp) for all B images; border positions are
    never consumed downstream."""
    bias = b_ref[brow:brow + 1, :]                          # (1, 128), broadcasts
    for m0 in range(0, npos, m_chunk):
        m = min(m_chunk, npos - m0) * B
        acc = None
        for t, (dy, dx) in enumerate(((0, 0), (0, 1), (1, 0), (1, 1))):
            off = (m0 + dy * wp + dx) * B
            a = g_ref[off:off + m, 0:cin]                   # shifted window (m, cin)
            w = w_ref[t * cin:(t + 1) * cin, :]             # (cin, 128) tap weights
            d = jnp.dot(a, w, preferred_element_type=jnp.float32)
            acc = d if acc is None else acc + d
        acc_ref[m0 * B:m0 * B + m, :] = acc + bias


def _max_pool_scatter(acc_ref, g_out_ref, wp, wpo, ph, pw, B):
    """2x2 / stride-2 max pool of the conv accumulator, scattered into the interior of
    the next layer's padded grid.  Per pooled row: 2 contiguous slab loads + one big
    VPU max, then pw single-vreg maxes and unmasked (B,128) stores."""
    for py in range(ph):
        c0 = (2 * py) * wp * B
        c1 = (2 * py + 1) * wp * B
        w = 2 * pw * B
        m = jnp.maximum(acc_ref[c0:c0 + w, :], acc_ref[c1:c1 + w, :])
        for px in range(pw):
            r = jnp.maximum(m[(2 * px) * B:(2 * px + 1) * B, :],
                            m[(2 * px + 1) * B:(2 * px + 2) * B, :])
            dst = ((py + 1) * wpo + 1 + px) * B
            g_out_ref[dst:dst + B, :] = r


# --------------------------------- the kernel --------------------------------

def _build_kernel(B):
    def kernel(x_ref, w0_ref, w1_ref, w2_ref, w3_ref, b_ref, fc1w_ref, fc2w_ref,
               o_ref, g0, a0, g1, a1, g2, a2, g3, a3):
        # assemble the layer-0 zero-padded 10x10 grid from the raw 8x8 input block
        _zero_halo(g0, 10, B)
        for r in range(8):
            src = r * 8 * B
            dst = ((r + 1) * 10 + 1) * B
            g0[dst:dst + 8 * B, :] = x_ref[src:src + 8 * B, :]

        # layer 0: Conv(40->16) + MaxPool : 10x10 grid -> 6x6 grid
        _conv_layer(g0, a0, w0_ref, b_ref, 0, cin=40, wp=10, npos=80, m_chunk=20, B=B)
        _zero_halo(g1, 6, B)
        _max_pool_scatter(a0, g1, wp=10, wpo=6, ph=4, pw=4, B=B)

        # layer 1: Conv(16->32) + MaxPool : 6x6 -> 4x4
        _conv_layer(g1, a1, w1_ref, b_ref, 1, cin=16, wp=6, npos=22, m_chunk=11, B=B)
        _zero_halo(g2, 4, B)
        _max_pool_scatter(a1, g2, wp=6, wpo=4, ph=2, pw=2, B=B)

        # layer 2: Conv(32->64) + MaxPool : 4x4 -> 3x3
        _conv_layer(g2, a2, w2_ref, b_ref, 2, cin=32, wp=4, npos=6, m_chunk=6, B=B)
        _zero_halo(g3, 3, B)
        _max_pool_scatter(a2, g3, wp=4, wpo=3, ph=1, pw=1, B=B)

        # layer 3: Conv(64->128) + AvgPool -> (B, 128) feature rows
        _conv_layer(g3, a3, w3_ref, b_ref, 3, cin=64, wp=3, npos=5, m_chunk=5, B=B)
        feat = (a3[0:B, :] + a3[B:2 * B, :] +
                a3[3 * B:4 * B, :] + a3[4 * B:5 * B, :]) * 0.25

        # fc head: Linear(128,50) -> ELU -> BatchNorm1d(eval, folded into fc2) -> Linear(50,12)
        h = jnp.dot(feat, fc1w_ref[...], preferred_element_type=jnp.float32) + b_ref[4:5, :]
        h = jnp.where(h > 0, h, jnp.exp(jnp.minimum(h, 0.0)) - 1.0)   # ELU(alpha=1)
        out = jnp.dot(h, fc2w_ref[...], preferred_element_type=jnp.float32) + b_ref[5:6, :]
        o_ref[...] = out     # lane-dense (B, 128) row block; caller slices [:, :12]
    return kernel


# ----------------------------------- wrapper ----------------------------------

@functools.partial(jax.jit, static_argnames=("block_batch",))
def cnn_forward(kp, x_nchw, block_batch=8):
    N, C, H, W = x_nchw.shape
    assert (C, H, W) == (40, 8, 8), "CNN fc head requires a 40x8x8 input"
    B = block_batch
    assert B % 8 == 0, "block_batch must be a multiple of the 8-row sublane tile"
    G = -(-N // B)
    Np = G * B
    x = x_nchw.astype(jnp.float32)
    if Np != N:
        x = jnp.pad(x, ((0, Np - N), (0, 0), (0, 0), (0, 0)))
    # single small layout permute: (Np,40,8,8) -> (G, 64*B, 40); rows are ordered
    # position-major / batch-minor, channels in lanes.  No halo pads here — the
    # zero-padded grid is assembled inside the kernel, entirely in VMEM.
    xk = x.reshape(G, B, C, H * W).transpose(0, 3, 1, 2).reshape(G, H * W * B, C)

    out = pl.pallas_call(
        _build_kernel(B),
        out_shape=jax.ShapeDtypeStruct((Np, LANES), jnp.float32),
        grid_spec=pltpu.PrefetchScalarGridSpec(
            num_scalar_prefetch=0,
            grid=(G,),
            in_specs=[
                pl.BlockSpec((None, H * W * B, C), lambda g: (g, 0, 0)),
                pl.BlockSpec(kp["w0"].shape, lambda g: (0, 0)),
                pl.BlockSpec(kp["w1"].shape, lambda g: (0, 0)),
                pl.BlockSpec(kp["w2"].shape, lambda g: (0, 0)),
                pl.BlockSpec(kp["w3"].shape, lambda g: (0, 0)),
                pl.BlockSpec(kp["bias"].shape, lambda g: (0, 0)),
                pl.BlockSpec(kp["fc1w"].shape, lambda g: (0, 0)),
                pl.BlockSpec(kp["fc2w"].shape, lambda g: (0, 0)),
            ],
            out_specs=pl.BlockSpec((B, LANES), lambda g: (g, 0)),
            scratch_shapes=[
                pltpu.VMEM((100 * B, 40), jnp.float32),     # g0: layer-0 padded grid
                pltpu.VMEM((80 * B, LANES), jnp.float32),   # a0: conv0 acc (10x10 grid)
                pltpu.VMEM((36 * B, LANES), jnp.float32),   # g1: layer-1 padded grid
                pltpu.VMEM((22 * B, LANES), jnp.float32),   # a1: conv1 acc (6x6 grid)
                pltpu.VMEM((16 * B, LANES), jnp.float32),   # g2: layer-2 padded grid
                pltpu.VMEM((6 * B, LANES), jnp.float32),    # a2: conv2 acc (4x4 grid)
                pltpu.VMEM((9 * B, LANES), jnp.float32),    # g3: layer-3 padded grid
                pltpu.VMEM((5 * B, LANES), jnp.float32),    # a3: conv3 acc (3x3 grid)
            ],
        ),
        compiler_params=pltpu.CompilerParams(
            dimension_semantics=("parallel",),   # batch steps shard across v7x's 2 TCs
        ),
    )(xk, kp["w0"], kp["w1"], kp["w2"], kp["w3"], kp["bias"], kp["fc1w"], kp["fc2w"])
    return out[:N, :12]


# -------------------------------- parameters ----------------------------------

def _kaiming(key, shape, fan_in):
    return (jnp.sqrt(2.0 / fan_in) * jax.random.normal(key, shape)).astype(jnp.float32)


def init_params(key):
    """Fresh parameters in the PyTorch layout (Conv2d: (Cout,Cin,kh,kw), Linear: (out,in)),
    matching the reference module's kaiming_normal / zero-bias init."""
    ks = jax.random.split(key, 6)
    p = {}
    for i, (cin, cout) in enumerate(((40, 16), (16, 32), (32, 64), (64, 128))):
        p[f"conv{i}_w"] = _kaiming(ks[i], (cout, cin, 2, 2), fan_in=4 * cin)
        p[f"conv{i}_b"] = jnp.zeros((cout,), jnp.float32)
    p["fc1_w"] = _kaiming(ks[4], (50, 128), fan_in=128)
    p["fc1_b"] = jnp.zeros((50,), jnp.float32)
    p["fc2_w"] = _kaiming(ks[5], (12, 50), fan_in=50)
    p["fc2_b"] = jnp.zeros((12,), jnp.float32)
    # BatchNorm1d(50), eval mode: affine params + running stats
    p["bn_gamma"] = jnp.ones((50,), jnp.float32)
    p["bn_beta"] = jnp.zeros((50,), jnp.float32)
    p["bn_mean"] = jnp.zeros((50,), jnp.float32)
    p["bn_var"] = jnp.ones((50,), jnp.float32)
    return p


def _pad_to(a, shape):
    return jnp.pad(a, tuple((0, t - s) for t, s in zip(shape, a.shape)))


def prepare_params(p):
    """One-time prep of lane-dense kernel operands from PyTorch-layout params.
      * Conv2d (Cout,Cin,2,2) -> (4*Cin, 128) matrix, rows ordered (ky,kx,ci) to match
        the kernel's tap accumulation; Cout zero-padded to 128 lanes.
      * Eval-mode BatchNorm1d folded exactly into the second Linear.
      * All biases packed into one (8, 128) table (rows 0-3 conv, 4 fc1, 5 folded fc2).
    """
    kp = {}
    for i in range(4):
        w = p[f"conv{i}_w"]                                    # (cout, cin, 2, 2)
        cout, cin = w.shape[0], w.shape[1]
        wm = jnp.transpose(w, (2, 3, 1, 0)).reshape(4 * cin, cout)
        kp[f"w{i}"] = _pad_to(wm, (4 * cin, LANES))
    kp["fc1w"] = _pad_to(p["fc1_w"].T, (LANES, LANES))         # x @ W1
    s = p["bn_gamma"] * jax.lax.rsqrt(p["bn_var"] + 1e-5)      # BN scale (50,)
    t = p["bn_beta"] - p["bn_mean"] * s                        # BN shift (50,)
    w2 = p["fc2_w"].T                                          # (50, 12)
    kp["fc2w"] = _pad_to(w2 * s[:, None], (LANES, LANES))
    b2 = t @ w2 + p["fc2_b"]                                   # folded fc2 bias (12,)
    bias = jnp.zeros((8, LANES), jnp.float32)
    for i in range(4):
        cb = p[f"conv{i}_b"]
        bias = bias.at[i, :cb.shape[0]].set(cb)
    bias = bias.at[4, :50].set(p["fc1_b"])
    bias = bias.at[5, :12].set(b2)
    kp["bias"] = bias
    return kp


# ------------------------- pure-JAX reference (check) --------------------------

def reference_forward(p, x_nchw):
    x = x_nchw.astype(jnp.float32)

    def conv(x, w, b):
        y = jax.lax.conv_general_dilated(
            x, w, window_strides=(1, 1), padding=((1, 1), (1, 1)),
            dimension_numbers=("NCHW", "OIHW", "NCHW"))
        return y + b[None, :, None, None]

    def maxpool(x):
        return jax.lax.reduce_window(x, -jnp.inf, jax.lax.max,
                                     (1, 1, 2, 2), (1, 1, 2, 2), "VALID")

    def avgpool(x):
        return jax.lax.reduce_window(x, 0.0, jax.lax.add,
                                     (1, 1, 2, 2), (1, 1, 2, 2), "VALID") * 0.25

    x = maxpool(conv(x, p["conv0_w"], p["conv0_b"]))
    x = maxpool(conv(x, p["conv1_w"], p["conv1_b"]))
    x = maxpool(conv(x, p["conv2_w"], p["conv2_b"]))
    x = avgpool(conv(x, p["conv3_w"], p["conv3_b"]))
    f = x.reshape(x.shape[0], -1)
    h = f @ p["fc1_w"].T + p["fc1_b"]
    h = jnp.where(h > 0, h, jnp.exp(jnp.minimum(h, 0.0)) - 1.0)
    h = ((h - p["bn_mean"]) * jax.lax.rsqrt(p["bn_var"] + 1e-5)
         * p["bn_gamma"] + p["bn_beta"])
    return h @ p["fc2_w"].T + p["fc2_b"]


if __name__ == "__main__":
    key = jax.random.PRNGKey(0)
    pkey, xkey = jax.random.split(key)
    torch_params = init_params(pkey)
    kparams = prepare_params(torch_params)       # one-time prep, outside the jit
    x = jax.random.normal(xkey, (2, 40, 8, 8), dtype=jnp.float32)

    out = cnn_forward(kparams, x)
    jax.block_until_ready(out)
    assert out.shape == (2, 12), out.shape
    assert bool(jnp.all(jnp.isfinite(out)))
    ref = reference_forward(torch_params, x)
    assert bool(jnp.allclose(out, ref, rtol=2e-2, atol=2e-2)), (
        "max abs err = %f" % float(jnp.max(jnp.abs(out - ref))))

    # also exercise the multi-grid-step (megacore-parallel) path: 16 images = 2 steps
    x16 = jax.random.normal(jax.random.PRNGKey(1), (16, 40, 8, 8), dtype=jnp.float32)
    out16 = cnn_forward(kparams, x16)
    jax.block_until_ready(out16)
    ref16 = reference_forward(torch_params, x16)
    assert bool(jnp.allclose(out16, ref16, rtol=2e-2, atol=2e-2)), (
        "max abs err = %f" % float(jnp.max(jnp.abs(out16 - ref16))))

    print("KERNEL_OK")
</pallas_src>

<mosaic_0001>
module attributes {stable_mosaic.version = 11 : i64} {
  func.func @kernel(%arg0: i32, %arg1: memref<1x512x40xf32, #tpu.memory_space<vmem>>, %arg2: memref<160x128xf32, #tpu.memory_space<vmem>>, %arg3: memref<64x128xf32, #tpu.memory_space<vmem>>, %arg4: memref<128x128xf32, #tpu.memory_space<vmem>>, %arg5: memref<256x128xf32, #tpu.memory_space<vmem>>, %arg6: memref<8x128xf32, #tpu.memory_space<vmem>>, %arg7: memref<128x128xf32, #tpu.memory_space<vmem>>, %arg8: memref<128x128xf32, #tpu.memory_space<vmem>>, %arg9: memref<8x128xf32, #tpu.memory_space<vmem>>, %arg10: memref<800x40xf32, #tpu.memory_space<vmem>>, %arg11: memref<640x128xf32, #tpu.memory_space<vmem>>, %arg12: memref<288x128xf32, #tpu.memory_space<vmem>>, %arg13: memref<176x128xf32, #tpu.memory_space<vmem>>, %arg14: memref<128x128xf32, #tpu.memory_space<vmem>>, %arg15: memref<48x128xf32, #tpu.memory_space<vmem>>, %arg16: memref<72x128xf32, #tpu.memory_space<vmem>>, %arg17: memref<40x128xf32, #tpu.memory_space<vmem>>) attributes {dimension_semantics = [#tpu.dimension_semantics<parallel>], iteration_bounds = array<i64: 1>, scalar_prefetch = 0 : i64, scratch_operands = 8 : i64, tpu.core_type = #tpu.core_type<tc>, window_params = [{transform_indices = @transform_0, window_bounds = array<i64: 1, 512, 40>}, {pipeline_mode = #tpu.pipeline_mode<synchronous>, transform_indices = @transform_1, window_bounds = array<i64: 160, 128>}, {pipeline_mode = #tpu.pipeline_mode<synchronous>, transform_indices = @transform_2, window_bounds = array<i64: 64, 128>}, {pipeline_mode = #tpu.pipeline_mode<synchronous>, transform_indices = @transform_3, window_bounds = array<i64: 128, 128>}, {pipeline_mode = #tpu.pipeline_mode<synchronous>, transform_indices = @transform_4, window_bounds = array<i64: 256, 128>}, {pipeline_mode = #tpu.pipeline_mode<synchronous>, transform_indices = @transform_5, window_bounds = array<i64: 8, 128>}, {pipeline_mode = #tpu.pipeline_mode<synchronous>, transform_indices = @transform_6, window_bounds = array<i64: 128, 128>}, {pipeline_mode = #tpu.pipeline_mode<synchronous>, transform_indices = @transform_7, window_bounds = array<i64: 128, 128>}, {transform_indices = @transform_8, window_bounds = array<i64: 8, 128>}]} {
    %cst = arith.constant 0.000000e+00 : f32
    %0 = vector.broadcast %cst : f32 to vector<88x40xf32>
    %c0 = arith.constant 0 : index
    %c0_0 = arith.constant 0 : index
    %1 = vector.load %arg10[%c0, %c0_0] : memref<800x40xf32, #tpu.memory_space<vmem>>, vector<88x40xf32>
    tpu.vector_store %arg10[%c0, %c0_0], %0 {strides = array<i32>} : memref<800x40xf32, #tpu.memory_space<vmem>>, vector<88x40xf32>,
    %cst_1 = arith.constant 0.000000e+00 : f32
    %2 = vector.broadcast %cst_1 : f32 to vector<16x40xf32>
    %c152 = arith.constant 152 : index
    %c0_2 = arith.constant 0 : index
    %3 = vector.load %arg10[%c152, %c0_2] : memref<800x40xf32, #tpu.memory_space<vmem>>, vector<16x40xf32>
    tpu.vector_store %arg10[%c152, %c0_2], %2 {strides = array<i32>} : memref<800x40xf32, #tpu.memory_space<vmem>>, vector<16x40xf32>,
    %cst_3 = arith.constant 0.000000e+00 : f32
    %4 = vector.broadcast %cst_3 : f32 to vector<16x40xf32>
    %c232 = arith.constant 232 : index
    %c0_4 = arith.constant 0 : index
    %5 = vector.load %arg10[%c232, %c0_4] : memref<800x40xf32, #tpu.memory_space<vmem>>, vector<16x40xf32>
    tpu.vector_store %arg10[%c232, %c0_4], %4 {strides = array<i32>} : memref<800x40xf32, #tpu.memory_space<vmem>>, vector<16x40xf32>,
    %cst_5 = arith.constant 0.000000e+00 : f32
    %6 = vector.broadcast %cst_5 : f32 to vector<16x40xf32>
    %c312 = arith.constant 312 : index
    %c0_6 = arith.constant 0 : index
    %7 = vector.load %arg10[%c312, %c0_6] : memref<800x40xf32, #tpu.memory_space<vmem>>, vector<16x40xf32>
    tpu.vector_store %arg10[%c312, %c0_6], %6 {strides = array<i32>} : memref<800x40xf32, #tpu.memory_space<vmem>>, vector<16x40xf32>,
    %cst_7 = arith.constant 0.000000e+00 : f32
    %8 = vector.broadcast %cst_7 : f32 to vector<16x40xf32>
    %c392 = arith.constant 392 : index
    %c0_8 = arith.constant 0 : index
    %9 = vector.load %arg10[%c392, %c0_8] : memref<800x40xf32, #tpu.memory_space<vmem>>, vector<16x40xf32>
    tpu.vector_store %arg10[%c392, %c0_8], %8 {strides = array<i32>} : memref<800x40xf32, #tpu.memory_space<vmem>>, vector<16x40xf32>,
    %cst_9 = arith.constant 0.000000e+00 : f32
    %10 = vector.broadcast %cst_9 : f32 to vector<16x40xf32>
    %c472 = arith.constant 472 : index
    %c0_10 = arith.constant 0 : index
    %11 = vector.load %arg10[%c472, %c0_10] : memref<800x40xf32, #tpu.memory_space<vmem>>, vector<16x40xf32>
    tpu.vector_store %arg10[%c472, %c0_10], %10 {strides = array<i32>} : memref<800x40xf32, #tpu.memory_space<vmem>>, vector<16x40xf32>,
    %cst_11 = arith.constant 0.000000e+00 : f32
    %12 = vector.broadcast %cst_11 : f32 to vector<16x40xf32>
    %c552 = arith.constant 552 : index
    %c0_12 = arith.constant 0 : index
    %13 = vector.load %arg10[%c552, %c0_12] : memref<800x40xf32, #tpu.memory_space<vmem>>, vector<16x40xf32>
    tpu.vector_store %arg10[%c552, %c0_12], %12 {strides = array<i32>} : memref<800x40xf32, #tpu.memory_space<vmem>>, vector<16x40xf32>,
    %cst_13 = arith.constant 0.000000e+00 : f32
    %14 = vector.broadcast %cst_13 : f32 to vector<16x40xf32>
    %c632 = arith.constant 632 : index
    %c0_14 = arith.constant 0 : index
    %15 = vector.load %arg10[%c632, %c0_14] : memref<800x40xf32, #tpu.memory_space<vmem>>, vector<16x40xf32>
    tpu.vector_store %arg10[%c632, %c0_14], %14 {strides = array<i32>} : memref<800x40xf32, #tpu.memory_space<vmem>>, vector<16x40xf32>,
    %cst_15 = arith.constant 0.000000e+00 : f32
    %16 = vector.broadcast %cst_15 : f32 to vector<88x40xf32>
    %c712 = arith.constant 712 : index
    %c0_16 = arith.constant 0 : index
    %17 = vector.load %arg10[%c712, %c0_16] : memref<800x40xf32, #tpu.memory_space<vmem>>, vector<88x40xf32>
    tpu.vector_store %arg10[%c712, %c0_16], %16 {strides = array<i32>} : memref<800x40xf32, #tpu.memory_space<vmem>>, vector<88x40xf32>,
    %c0_17 = arith.constant 0 : index
    %c0_18 = arith.constant 0 : index
    %c0_19 = arith.constant 0 : index
    %18 = vector.load %arg1[%c0_17, %c0_18, %c0_19] : memref<1x512x40xf32, #tpu.memory_space<vmem>>, vector<1x64x40xf32>
    %19 = vector.shape_cast %18 : vector<1x64x40xf32> to vector<64x40xf32>
    %c88 = arith.constant 88 : index
    %c0_20 = arith.constant 0 : index
    %20 = vector.load %arg10[%c88, %c0_20] : memref<800x40xf32, #tpu.memory_space<vmem>>, vector<64x40xf32>
    tpu.vector_store %arg10[%c88, %c0_20], %19 {strides = array<i32>} : memref<800x40xf32, #tpu.memory_space<vmem>>, vector<64x40xf32>,
    %c0_21 = arith.constant 0 : index
    %c64 = arith.constant 64 : index
    %c0_22 = arith.constant 0 : index
    %21 = vector.load %arg1[%c0_21, %c64, %c0_22] : memref<1x512x40xf32, #tpu.memory_space<vmem>>, vector<1x64x40xf32>
    %22 = vector.shape_cast %21 : vector<1x64x40xf32> to vector<64x40xf32>
    %c168 = arith.constant 168 : index
    %c0_23 = arith.constant 0 : index
    %23 = vector.load %arg10[%c168, %c0_23] : memref<800x40xf32, #tpu.memory_space<vmem>>, vector<64x40xf32>
    tpu.vector_store %arg10[%c168, %c0_23], %22 {strides = array<i32>} : memref<800x40xf32, #tpu.memory_space<vmem>>, vector<64x40xf32>,
    %c0_24 = arith.constant 0 : index
    %c128 = arith.constant 128 : index
    %c0_25 = arith.constant 0 : index
    %24 = vector.load %arg1[%c0_24, %c128, %c0_25] : memref<1x512x40xf32, #tpu.memory_space<vmem>>, vector<1x64x40xf32>
    %25 = vector.shape_cast %24 : vector<1x64x40xf32> to vector<64x40xf32>
    %c248 = arith.constant 248 : index
    %c0_26 = arith.constant 0 : index
    %26 = vector.load %arg10[%c248, %c0_26] : memref<800x40xf32, #tpu.memory_space<vmem>>, vector<64x40xf32>
    tpu.vector_store %arg10[%c248, %c0_26], %25 {strides = array<i32>} : memref<800x40xf32, #tpu.memory_space<vmem>>, vector<64x40xf32>,
    %c0_27 = arith.constant 0 : index
    %c192 = arith.constant 192 : index
    %c0_28 = arith.constant 0 : index
    %27 = vector.load %arg1[%c0_27, %c192, %c0_28] : memref<1x512x40xf32, #tpu.memory_space<vmem>>, vector<1x64x40xf32>
    %28 = vector.shape_cast %27 : vector<1x64x40xf32> to vector<64x40xf32>
    %c328 = arith.constant 328 : index
    %c0_29 = arith.constant 0 : index
    %29 = vector.load %arg10[%c328, %c0_29] : memref<800x40xf32, #tpu.memory_space<vmem>>, vector<64x40xf32>
    tpu.vector_store %arg10[%c328, %c0_29], %28 {strides = array<i32>} : memref<800x40xf32, #tpu.memory_space<vmem>>, vector<64x40xf32>,
    %c0_30 = arith.constant 0 : index
    %c256 = arith.constant 256 : index
    %c0_31 = arith.constant 0 : index
    %30 = vector.load %arg1[%c0_30, %c256, %c0_31] : memref<1x512x40xf32, #tpu.memory_space<vmem>>, vector<1x64x40xf32>
    %31 = vector.shape_cast %30 : vector<1x64x40xf32> to vector<64x40xf32>
    %c408 = arith.constant 408 : index
    %c0_32 = arith.constant 0 : index
    %32 = vector.load %arg10[%c408, %c0_32] : memref<800x40xf32, #tpu.memory_space<vmem>>, vector<64x40xf32>
    tpu.vector_store %arg10[%c408, %c0_32], %31 {strides = array<i32>} : memref<800x40xf32, #tpu.memory_space<vmem>>, vector<64x40xf32>,
    %c0_33 = arith.constant 0 : index
    %c320 = arith.constant 320 : index
    %c0_34 = arith.constant 0 : index
    %33 = vector.load %arg1[%c0_33, %c320, %c0_34] : memref<1x512x40xf32, #tpu.memory_space<vmem>>, vector<1x64x40xf32>
    %34 = vector.shape_cast %33 : vector<1x64x40xf32> to vector<64x40xf32>
    %c488 = arith.constant 488 : index
    %c0_35 = arith.constant 0 : index
    %35 = vector.load %arg10[%c488, %c0_35] : memref<800x40xf32, #tpu.memory_space<vmem>>, vector<64x40xf32>
    tpu.vector_store %arg10[%c488, %c0_35], %34 {strides = array<i32>} : memref<800x40xf32, #tpu.memory_space<vmem>>, vector<64x40xf32>,
    %c0_36 = arith.constant 0 : index
    %c384 = arith.constant 384 : index
    %c0_37 = arith.constant 0 : index
    %36 = vector.load %arg1[%c0_36, %c384, %c0_37] : memref<1x512x40xf32, #tpu.memory_space<vmem>>, vector<1x64x40xf32>
    %37 = vector.shape_cast %36 : vector<1x64x40xf32> to vector<64x40xf32>
    %c568 = arith.constant 568 : index
    %c0_38 = arith.constant 0 : index
    %38 = vector.load %arg10[%c568, %c0_38] : memref<800x40xf32, #tpu.memory_space<vmem>>, vector<64x40xf32>
    tpu.vector_store %arg10[%c568, %c0_38], %37 {strides = array<i32>} : memref<800x40xf32, #tpu.memory_space<vmem>>, vector<64x40xf32>,
    %c0_39 = arith.constant 0 : index
    %c448 = arith.constant 448 : index
    %c0_40 = arith.constant 0 : index
    %39 = vector.load %arg1[%c0_39, %c448, %c0_40] : memref<1x512x40xf32, #tpu.memory_space<vmem>>, vector<1x64x40xf32>
    %40 = vector.shape_cast %39 : vector<1x64x40xf32> to vector<64x40xf32>
    %c648 = arith.constant 648 : index
    %c0_41 = arith.constant 0 : index
    %41 = vector.load %arg10[%c648, %c0_41] : memref<800x40xf32, #tpu.memory_space<vmem>>, vector<64x40xf32>
    tpu.vector_store %arg10[%c648, %c0_41], %40 {strides = array<i32>} : memref<800x40xf32, #tpu.memory_space<vmem>>, vector<64x40xf32>,
    %c0_42 = arith.constant 0 : index
    %c0_43 = arith.constant 0 : index
    %42 = vector.load %arg6[%c0_42, %c0_43] : memref<8x128xf32, #tpu.memory_space<vmem>>, vector<1x128xf32>
    %c0_44 = arith.constant 0 : index
    %c0_45 = arith.constant 0 : index
    %43 = vector.load %arg10[%c0_44, %c0_45] : memref<800x40xf32, #tpu.memory_space<vmem>>, vector<160x40xf32>
    %c0_46 = arith.constant 0 : index
    %c0_47 = arith.constant 0 : index
    %44 = vector.load %arg2[%c0_46, %c0_47] : memref<160x128xf32, #tpu.memory_space<vmem>>, vector<40x128xf32>
    %cst_48 = arith.constant dense<0.000000e+00> : vector<160x128xf32>
    %45 = tpu.matmul %43, %44, %cst_48 {dimension_numbers = #tpu.dot_dimension_numbers<[1], [0], [0], [1], [0, 0, 1, 1], [], []>} : vector<160x40xf32>, vector<40x128xf32>, vector<160x128xf32> -> vector<160x128xf32>
    %c8 = arith.constant 8 : index
    %c0_49 = arith.constant 0 : index
    %46 = vector.load %arg10[%c8, %c0_49] : memref<800x40xf32, #tpu.memory_space<vmem>>, vector<160x40xf32>
    %c40 = arith.constant 40 : index
    %c0_50 = arith.constant 0 : index
    %47 = vector.load %arg2[%c40, %c0_50] : memref<160x128xf32, #tpu.memory_space<vmem>>, vector<40x128xf32>
    %cst_51 = arith.constant dense<0.000000e+00> : vector<160x128xf32>
    %48 = tpu.matmul %46, %47, %cst_51 {dimension_numbers = #tpu.dot_dimension_numbers<[1], [0], [0], [1], [0, 0, 1, 1], [], []>} : vector<160x40xf32>, vector<40x128xf32>, vector<160x128xf32> -> vector<160x128xf32>
    %49 = arith.addf %45, %48 : vector<160x128xf32>
    %c80 = arith.constant 80 : index
    %c0_52 = arith.constant 0 : index
    %50 = vector.load %arg10[%c80, %c0_52] : memref<800x40xf32, #tpu.memory_space<vmem>>, vector<160x40xf32>
    %c80_53 = arith.constant 80 : index
    %c0_54 = arith.constant 0 : index
    %51 = vector.load %arg2[%c80_53, %c0_54] : memref<160x128xf32, #tpu.memory_space<vmem>>, vector<40x128xf32>
    %cst_55 = arith.constant dense<0.000000e+00> : vector<160x128xf32>
    %52 = tpu.matmul %50, %51, %cst_55 {dimension_numbers = #tpu.dot_dimension_numbers<[1], [0], [0], [1], [0, 0, 1, 1], [], []>} : vector<160x40xf32>, vector<40x128xf32>, vector<160x128xf32> -> vector<160x128xf32>
    %53 = arith.addf %49, %52 : vector<160x128xf32>
    %c88_56 = arith.constant 88 : index
    %c0_57 = arith.constant 0 : index
    %54 = vector.load %arg10[%c88_56, %c0_57] : memref<800x40xf32, #tpu.memory_space<vmem>>, vector<160x40xf32>
    %c120 = arith.constant 120 : index
    %c0_58 = arith.constant 0 : index
    %55 = vector.load %arg2[%c120, %c0_58] : memref<160x128xf32, #tpu.memory_space<vmem>>, vector<40x128xf32>
    %cst_59 = arith.constant dense<0.000000e+00> : vector<160x128xf32>
    %56 = tpu.matmul %54, %55, %cst_59 {dimension_numbers = #tpu.dot_dimension_numbers<[1], [0], [0], [1], [0, 0, 1, 1], [], []>} : vector<160x40xf32>, vector<40x128xf32>, vector<160x128xf32> -> vector<160x128xf32>
    %57 = arith.addf %53, %56 : vector<160x128xf32>
    %58 = vector.broadcast %42 : vector<1x128xf32> to vector<160x128xf32>
    %59 = arith.addf %57, %58 : vector<160x128xf32>
    %c0_60 = arith.constant 0 : index
    %c0_61 = arith.constant 0 : index
    %60 = vector.load %arg11[%c0_60, %c0_61] : memref<640x128xf32, #tpu.memory_space<vmem>>, vector<160x128xf32>
    tpu.vector_store %arg11[%c0_60, %c0_61], %59 {strides = array<i32>} : memref<640x128xf32, #tpu.memory_space<vmem>>, vector<160x128xf32>,
    %c160 = arith.constant 160 : index
    %c0_62 = arith.constant 0 : index
    %61 = vector.load %arg10[%c160, %c0_62] : memref<800x40xf32, #tpu.memory_space<vmem>>, vector<160x40xf32>
    %c0_63 = arith.constant 0 : index
    %c0_64 = arith.constant 0 : index
    %62 = vector.load %arg2[%c0_63, %c0_64] : memref<160x128xf32, #tpu.memory_space<vmem>>, vector<40x128xf32>
    %cst_65 = arith.constant dense<0.000000e+00> : vector<160x128xf32>
    %63 = tpu.matmul %61, %62, %cst_65 {dimension_numbers = #tpu.dot_dimension_numbers<[1], [0], [0], [1], [0, 0, 1, 1], [], []>} : vector<160x40xf32>, vector<40x128xf32>, vector<160x128xf32> -> vector<160x128xf32>
    %c168_66 = arith.constant 168 : index
    %c0_67 = arith.constant 0 : index
    %64 = vector.load %arg10[%c168_66, %c0_67] : memref<800x40xf32, #tpu.memory_space<vmem>>, vector<160x40xf32>
    %c40_68 = arith.constant 40 : index
    %c0_69 = arith.constant 0 : index
    %65 = vector.load %arg2[%c40_68, %c0_69] : memref<160x128xf32, #tpu.memory_space<vmem>>, vector<40x128xf32>
    %cst_70 = arith.constant dense<0.000000e+00> : vector<160x128xf32>
    %66 = tpu.matmul %64, %65, %cst_70 {dimension_numbers = #tpu.dot_dimension_numbers<[1], [0], [0], [1], [0, 0, 1, 1], [], []>} : vector<160x40xf32>, vector<40x128xf32>, vector<160x128xf32> -> vector<160x128xf32>
    %67 = arith.addf %63, %66 : vector<160x128xf32>
    %c240 = arith.constant 240 : index
    %c0_71 = arith.constant 0 : index
    %68 = vector.load %arg10[%c240, %c0_71] : memref<800x40xf32, #tpu.memory_space<vmem>>, vector<160x40xf32>
    %c80_72 = arith.constant 80 : index
    %c0_73 = arith.constant 0 : index
    %69 = vector.load %arg2[%c80_72, %c0_73] : memref<160x128xf32, #tpu.memory_space<vmem>>, vector<40x128xf32>
    %cst_74 = arith.constant dense<0.000000e+00> : vector<160x128xf32>
    %70 = tpu.matmul %68, %69, %cst_74 {dimension_numbers = #tpu.dot_dimension_numbers<[1], [0], [0], [1], [0, 0, 1, 1], [], []>} : vector<160x40xf32>, vector<40x128xf32>, vector<160x128xf32> -> vector<160x128xf32>
    %71 = arith.addf %67, %70 : vector<160x128xf32>
    %c248_75 = arith.constant 248 : index
    %c0_76 = arith.constant 0 : index
    %72 = vector.load %arg10[%c248_75, %c0_76] : memref<800x40xf32, #tpu.memory_space<vmem>>, vector<160x40xf32>
    %c120_77 = arith.constant 120 : index
    %c0_78 = arith.constant 0 : index
    %73 = vector.load %arg2[%c120_77, %c0_78] : memref<160x128xf32, #tpu.memory_space<vmem>>, vector<40x128xf32>
    %cst_79 = arith.constant dense<0.000000e+00> : vector<160x128xf32>
    %74 = tpu.matmul %72, %73, %cst_79 {dimension_numbers = #tpu.dot_dimension_numbers<[1], [0], [0], [1], [0, 0, 1, 1], [], []>} : vector<160x40xf32>, vector<40x128xf32>, vector<160x128xf32> -> vector<160x128xf32>
    %75 = arith.addf %71, %74 : vector<160x128xf32>
    %76 = vector.broadcast %42 : vector<1x128xf32> to vector<160x128xf32>
    %77 = arith.addf %75, %76 : vector<160x128xf32>
    %c160_80 = arith.constant 160 : index
    %c0_81 = arith.constant 0 : index
    %78 = vector.load %arg11[%c160_80, %c0_81] : memref<640x128xf32, #tpu.memory_space<vmem>>, vector<160x128xf32>
    tpu.vector_store %arg11[%c160_80, %c0_81], %77 {strides = array<i32>} : memref<640x128xf32, #tpu.memory_space<vmem>>, vector<160x128xf32>,
    %c320_82 = arith.constant 320 : index
    %c0_83 = arith.constant 0 : index
    %79 = vector.load %arg10[%c320_82, %c0_83] : memref<800x40xf32, #tpu.memory_space<vmem>>, vector<160x40xf32>
    %c0_84 = arith.constant 0 : index
    %c0_85 = arith.constant 0 : index
    %80 = vector.load %arg2[%c0_84, %c0_85] : memref<160x128xf32, #tpu.memory_space<vmem>>, vector<40x128xf32>
    %cst_86 = arith.constant dense<0.000000e+00> : vector<160x128xf32>
    %81 = tpu.matmul %79, %80, %cst_86 {dimension_numbers = #tpu.dot_dimension_numbers<[1], [0], [0], [1], [0, 0, 1, 1], [], []>} : vector<160x40xf32>, vector<40x128xf32>, vector<160x128xf32> -> vector<160x128xf32>
    %c328_87 = arith.constant 328 : index
    %c0_88 = arith.constant 0 : index
    %82 = vector.load %arg10[%c328_87, %c0_88] : memref<800x40xf32, #tpu.memory_space<vmem>>, vector<160x40xf32>
    %c40_89 = arith.constant 40 : index
    %c0_90 = arith.constant 0 : index
    %83 = vector.load %arg2[%c40_89, %c0_90] : memref<160x128xf32, #tpu.memory_space<vmem>>, vector<40x128xf32>
    %cst_91 = arith.constant dense<0.000000e+00> : vector<160x128xf32>
    %84 = tpu.matmul %82, %83, %cst_91 {dimension_numbers = #tpu.dot_dimension_numbers<[1], [0], [0], [1], [0, 0, 1, 1], [], []>} : vector<160x40xf32>, vector<40x128xf32>, vector<160x128xf32> -> vector<160x128xf32>
    %85 = arith.addf %81, %84 : vector<160x128xf32>
    %c400 = arith.constant 400 : index
    %c0_92 = arith.constant 0 : index
    %86 = vector.load %arg10[%c400, %c0_92] : memref<800x40xf32, #tpu.memory_space<vmem>>, vector<160x40xf32>
    %c80_93 = arith.constant 80 : index
    %c0_94 = arith.constant 0 : index
    %87 = vector.load %arg2[%c80_93, %c0_94] : memref<160x128xf32, #tpu.memory_space<vmem>>, vector<40x128xf32>
    %cst_95 = arith.constant dense<0.000000e+00> : vector<160x128xf32>
    %88 = tpu.matmul %86, %87, %cst_95 {dimension_numbers = #tpu.dot_dimension_numbers<[1], [0], [0], [1], [0, 0, 1, 1], [], []>} : vector<160x40xf32>, vector<40x128xf32>, vector<160x128xf32> -> vector<160x128xf32>
    %89 = arith.addf %85, %88 : vector<160x128xf32>
    %c408_96 = arith.constant 408 : index
    %c0_97 = arith.constant 0 : index
    %90 = vector.load %arg10[%c408_96, %c0_97] : memref<800x40xf32, #tpu.memory_space<vmem>>, vector<160x40xf32>
    %c120_98 = arith.constant 120 : index
    %c0_99 = arith.constant 0 : index
    %91 = vector.load %arg2[%c120_98, %c0_99] : memref<160x128xf32, #tpu.memory_space<vmem>>, vector<40x128xf32>
    %cst_100 = arith.constant dense<0.000000e+00> : vector<160x128xf32>
    %92 = tpu.matmul %90, %91, %cst_100 {dimension_numbers = #tpu.dot_dimension_numbers<[1], [0], [0], [1], [0, 0, 1, 1], [], []>} : vector<160x40xf32>, vector<40x128xf32>, vector<160x128xf32> -> vector<160x128xf32>
    %93 = arith.addf %89, %92 : vector<160x128xf32>
    %94 = vector.broadcast %42 : vector<1x128xf32> to vector<160x128xf32>
    %95 = arith.addf %93, %94 : vector<160x128xf32>
    %c320_101 = arith.constant 320 : index
    %c0_102 = arith.constant 0 : index
    %96 = vector.load %arg11[%c320_101, %c0_102] : memref<640x128xf32, #tpu.memory_space<vmem>>, vector<160x128xf32>
    tpu.vector_store %arg11[%c320_101, %c0_102], %95 {strides = array<i32>} : memref<640x128xf32, #tpu.memory_space<vmem>>, vector<160x128xf32>,
    %c480 = arith.constant 480 : index
    %c0_103 = arith.constant 0 : index
    %97 = vector.load %arg10[%c480, %c0_103] : memref<800x40xf32, #tpu.memory_space<vmem>>, vector<160x40xf32>
    %c0_104 = arith.constant 0 : index
    %c0_105 = arith.constant 0 : index
    %98 = vector.load %arg2[%c0_104, %c0_105] : memref<160x128xf32, #tpu.memory_space<vmem>>, vector<40x128xf32>
    %cst_106 = arith.constant dense<0.000000e+00> : vector<160x128xf32>
    %99 = tpu.matmul %97, %98, %cst_106 {dimension_numbers = #tpu.dot_dimension_numbers<[1], [0], [0], [1], [0, 0, 1, 1], [], []>} : vector<160x40xf32>, vector<40x128xf32>, vector<160x128xf32> -> vector<160x128xf32>
    %c488_107 = arith.constant 488 : index
    %c0_108 = arith.constant 0 : index
    %100 = vector.load %arg10[%c488_107, %c0_108] : memref<800x40xf32, #tpu.memory_space<vmem>>, vector<160x40xf32>
    %c40_109 = arith.constant 40 : index
    %c0_110 = arith.constant 0 : index
    %101 = vector.load %arg2[%c40_109, %c0_110] : memref<160x128xf32, #tpu.memory_space<vmem>>, vector<40x128xf32>
    %cst_111 = arith.constant dense<0.000000e+00> : vector<160x128xf32>
    %102 = tpu.matmul %100, %101, %cst_111 {dimension_numbers = #tpu.dot_dimension_numbers<[1], [0], [0], [1], [0, 0, 1, 1], [], []>} : vector<160x40xf32>, vector<40x128xf32>, vector<160x128xf32> -> vector<160x128xf32>
    %103 = arith.addf %99, %102 : vector<160x128xf32>
    %c560 = arith.constant 560 : index
    %c0_112 = arith.constant 0 : index
    %104 = vector.load %arg10[%c560, %c0_112] : memref<800x40xf32, #tpu.memory_space<vmem>>, vector<160x40xf32>
    %c80_113 = arith.constant 80 : index
    %c0_114 = arith.constant 0 : index
    %105 = vector.load %arg2[%c80_113, %c0_114] : memref<160x128xf32, #tpu.memory_space<vmem>>, vector<40x128xf32>
    %cst_115 = arith.constant dense<0.000000e+00> : vector<160x128xf32>
    %106 = tpu.matmul %104, %105, %cst_115 {dimension_numbers = #tpu.dot_dimension_numbers<[1], [0], [0], [1], [0, 0, 1, 1], [], []>} : vector<160x40xf32>, vector<40x128xf32>, vector<160x128xf32> -> vector<160x128xf32>
    %107 = arith.addf %103, %106 : vector<160x128xf32>
    %c568_116 = arith.constant 568 : index
    %c0_117 = arith.constant 0 : index
    %108 = vector.load %arg10[%c568_116, %c0_117] : memref<800x40xf32, #tpu.memory_space<vmem>>, vector<160x40xf32>
    %c120_118 = arith.constant 120 : index
    %c0_119 = arith.constant 0 : index
    %109 = vector.load %arg2[%c120_118, %c0_119] : memref<160x128xf32, #tpu.memory_space<vmem>>, vector<40x128xf32>
    %cst_120 = arith.constant dense<0.000000e+00> : vector<160x128xf32>
    %110 = tpu.matmul %108, %109, %cst_120 {dimension_numbers = #tpu.dot_dimension_numbers<[1], [0], [0], [1], [0, 0, 1, 1], [], []>} : vector<160x40xf32>, vector<40x128xf32>, vector<160x128xf32> -> vector<160x128xf32>
    %111 = arith.addf %107, %110 : vector<160x128xf32>
    %112 = vector.broadcast %42 : vector<1x128xf32> to vector<160x128xf32>
    %113 = arith.addf %111, %112 : vector<160x128xf32>
    %c480_121 = arith.constant 480 : index
    %c0_122 = arith.constant 0 : index
    %114 = vector.load %arg11[%c480_121, %c0_122] : memref<640x128xf32, #tpu.memory_space<vmem>>, vector<160x128xf32>
    tpu.vector_store %arg11[%c480_121, %c0_122], %113 {strides = array<i32>} : memref<640x128xf32, #tpu.memory_space<vmem>>, vector<160x128xf32>,
    %cst_123 = arith.constant 0.000000e+00 : f32
    %115 = vector.broadcast %cst_123 : f32 to vector<56x128xf32>
    %c0_124 = arith.constant 0 : index
    %c0_125 = arith.constant 0 : index
    %116 = vector.load %arg12[%c0_124, %c0_125] : memref<288x128xf32, #tpu.memory_space<vmem>>, vector<56x128xf32>
    tpu.vector_store %arg12[%c0_124, %c0_125], %115 {strides = array<i32>} : memref<288x128xf32, #tpu.memory_space<vmem>>, vector<56x128xf32>,
    %cst_126 = arith.constant 0.000000e+00 : f32
    %117 = vector.broadcast %cst_126 : f32 to vector<16x128xf32>
    %c88_127 = arith.constant 88 : index
    %c0_128 = arith.constant 0 : index
    %118 = vector.load %arg12[%c88_127, %c0_128] : memref<288x128xf32, #tpu.memory_space<vmem>>, vector<16x128xf32>
    tpu.vector_store %arg12[%c88_127, %c0_128], %117 {strides = array<i32>} : memref<288x128xf32, #tpu.memory_space<vmem>>, vector<16x128xf32>,
    %cst_129 = arith.constant 0.000000e+00 : f32
    %119 = vector.broadcast %cst_129 : f32 to vector<16x128xf32>
    %c136 = arith.constant 136 : index
    %c0_130 = arith.constant 0 : index
    %120 = vector.load %arg12[%c136, %c0_130] : memref<288x128xf32, #tpu.memory_space<vmem>>, vector<16x128xf32>
    tpu.vector_store %arg12[%c136, %c0_130], %119 {strides = array<i32>} : memref<288x128xf32, #tpu.memory_space<vmem>>, vector<16x128xf32>,
    %cst_131 = arith.constant 0.000000e+00 : f32
    %121 = vector.broadcast %cst_131 : f32 to vector<16x128xf32>
    %c184 = arith.constant 184 : index
    %c0_132 = arith.constant 0 : index
    %122 = vector.load %arg12[%c184, %c0_132] : memref<288x128xf32, #tpu.memory_space<vmem>>, vector<16x128xf32>
    tpu.vector_store %arg12[%c184, %c0_132], %121 {strides = array<i32>} : memref<288x128xf32, #tpu.memory_space<vmem>>, vector<16x128xf32>,
    %cst_133 = arith.constant 0.000000e+00 : f32
    %123 = vector.broadcast %cst_133 : f32 to vector<56x128xf32>
    %c232_134 = arith.constant 232 : index
    %c0_135 = arith.constant 0 : index
    %124 = vector.load %arg12[%c232_134, %c0_135] : memref<288x128xf32, #tpu.memory_space<vmem>>, vector<56x128xf32>
    tpu.vector_store %arg12[%c232_134, %c0_135], %123 {strides = array<i32>} : memref<288x128xf32, #tpu.memory_space<vmem>>, vector<56x128xf32>,
    %c0_136 = arith.constant 0 : index
    %c0_137 = arith.constant 0 : index
    %125 = vector.load %arg11[%c0_136, %c0_137] : memref<640x128xf32, #tpu.memory_space<vmem>>, vector<64x128xf32>
    %c80_138 = arith.constant 80 : index
    %c0_139 = arith.constant 0 : index
    %126 = vector.load %arg11[%c80_138, %c0_139] : memref<640x128xf32, #tpu.memory_space<vmem>>, vector<64x128xf32>
    %127 = arith.maximumf %125, %126 : vector<64x128xf32>
    %128 = vector.extract_strided_slice %127 {offsets = [0, 0], sizes = [8, 128], strides = [1, 1]} : vector<64x128xf32> to vector<8x128xf32>
    %129 = vector.extract_strided_slice %127 {offsets = [8, 0], sizes = [8, 128], strides = [1, 1]} : vector<64x128xf32> to vector<8x128xf32>
    %130 = arith.maximumf %128, %129 : vector<8x128xf32>
    %c56 = arith.constant 56 : index
    %c0_140 = arith.constant 0 : index
    %131 = vector.load %arg12[%c56, %c0_140] : memref<288x128xf32, #tpu.memory_space<vmem>>, vector<8x128xf32>
    tpu.vector_store %arg12[%c56, %c0_140], %130 {strides = array<i32>} : memref<288x128xf32, #tpu.memory_space<vmem>>, vector<8x128xf32>,
    %132 = vector.extract_strided_slice %127 {offsets = [16, 0], sizes = [8, 128], strides = [1, 1]} : vector<64x128xf32> to vector<8x128xf32>
    %133 = vector.extract_strided_slice %127 {offsets = [24, 0], sizes = [8, 128], strides = [1, 1]} : vector<64x128xf32> to vector<8x128xf32>
    %134 = arith.maximumf %132, %133 : vector<8x128xf32>
    %c64_141 = arith.constant 64 : index
    %c0_142 = arith.constant 0 : index
    %135 = vector.load %arg12[%c64_141, %c0_142] : memref<288x128xf32, #tpu.memory_space<vmem>>, vector<8x128xf32>
    tpu.vector_store %arg12[%c64_141, %c0_142], %134 {strides = array<i32>} : memref<288x128xf32, #tpu.memory_space<vmem>>, vector<8x128xf32>,
    %136 = vector.extract_strided_slice %127 {offsets = [32, 0], sizes = [8, 128], strides = [1, 1]} : vector<64x128xf32> to vector<8x128xf32>
    %137 = vector.extract_strided_slice %127 {offsets = [40, 0], sizes = [8, 128], strides = [1, 1]} : vector<64x128xf32> to vector<8x128xf32>
    %138 = arith.maximumf %136, %137 : vector<8x128xf32>
    %c72 = arith.constant 72 : index
    %c0_143 = arith.constant 0 : index
    %139 = vector.load %arg12[%c72, %c0_143] : memref<288x128xf32, #tpu.memory_space<vmem>>, vector<8x128xf32>
    tpu.vector_store %arg12[%c72, %c0_143], %138 {strides = array<i32>} : memref<288x128xf32, #tpu.memory_space<vmem>>, vector<8x128xf32>,
    %140 = vector.extract_strided_slice %127 {offsets = [48, 0], sizes = [8, 128], strides = [1, 1]} : vector<64x128xf32> to vector<8x128xf32>
    %141 = vector.extract_strided_slice %127 {offsets = [56, 0], sizes = [8, 128], strides = [1, 1]} : vector<64x128xf32> to vector<8x128xf32>
    %142 = arith.maximumf %140, %141 : vector<8x128xf32>
    %c80_144 = arith.constant 80 : index
    %c0_145 = arith.constant 0 : index
    %143 = vector.load %arg12[%c80_144, %c0_145] : memref<288x128xf32, #tpu.memory_space<vmem>>, vector<8x128xf32>
    tpu.vector_store %arg12[%c80_144, %c0_145], %142 {strides = array<i32>} : memref<288x128xf32, #tpu.memory_space<vmem>>, vector<8x128xf32>,
    %c160_146 = arith.constant 160 : index
    %c0_147 = arith.constant 0 : index
    %144 = vector.load %arg11[%c160_146, %c0_147] : memref<640x128xf32, #tpu.memory_space<vmem>>, vector<64x128xf32>
    %c240_148 = arith.constant 240 : index
    %c0_149 = arith.constant 0 : index
    %145 = vector.load %arg11[%c240_148, %c0_149] : memref<640x128xf32, #tpu.memory_space<vmem>>, vector<64x128xf32>
    %146 = arith.maximumf %144, %145 : vector<64x128xf32>
    %147 = vector.extract_strided_slice %146 {offsets = [0, 0], sizes = [8, 128], strides = [1, 1]} : vector<64x128xf32> to vector<8x128xf32>
    %148 = vector.extract_strided_slice %146 {offsets = [8, 0], sizes = [8, 128], strides = [1, 1]} : vector<64x128xf32> to vector<8x128xf32>
    %149 = arith.maximumf %147, %148 : vector<8x128xf32>
    %c104 = arith.constant 104 : index
    %c0_150 = arith.constant 0 : index
    %150 = vector.load %arg12[%c104, %c0_150] : memref<288x128xf32, #tpu.memory_space<vmem>>, vector<8x128xf32>
    tpu.vector_store %arg12[%c104, %c0_150], %149 {strides = array<i32>} : memref<288x128xf32, #tpu.memory_space<vmem>>, vector<8x128xf32>,
    %151 = vector.extract_strided_slice %146 {offsets = [16, 0], sizes = [8, 128], strides = [1, 1]} : vector<64x128xf32> to vector<8x128xf32>
    %152 = vector.extract_strided_slice %146 {offsets = [24, 0], sizes = [8, 128], strides = [1, 1]} : vector<64x128xf32> to vector<8x128xf32>
    %153 = arith.maximumf %151, %152 : vector<8x128xf32>
    %c112 = arith.constant 112 : index
    %c0_151 = arith.constant 0 : index
    %154 = vector.load %arg12[%c112, %c0_151] : memref<288x128xf32, #tpu.memory_space<vmem>>, vector<8x128xf32>
    tpu.vector_store %arg12[%c112, %c0_151], %153 {strides = array<i32>} : memref<288x128xf32, #tpu.memory_space<vmem>>, vector<8x128xf32>,
    %155 = vector.extract_strided_slice %146 {offsets = [32, 0], sizes = [8, 128], strides = [1, 1]} : vector<64x128xf32> to vector<8x128xf32>
    %156 = vector.extract_strided_slice %146 {offsets = [40, 0], sizes = [8, 128], strides = [1, 1]} : vector<64x128xf32> to vector<8x128xf32>
    %157 = arith.maximumf %155, %156 : vector<8x128xf32>
    %c120_152 = arith.constant 120 : index
    %c0_153 = arith.constant 0 : index
    %158 = vector.load %arg12[%c120_152, %c0_153] : memref<288x128xf32, #tpu.memory_space<vmem>>, vector<8x128xf32>
    tpu.vector_store %arg12[%c120_152, %c0_153], %157 {strides = array<i32>} : memref<288x128xf32, #tpu.memory_space<vmem>>, vector<8x128xf32>,
    %159 = vector.extract_strided_slice %146 {offsets = [48, 0], sizes = [8, 128], strides = [1, 1]} : vector<64x128xf32> to vector<8x128xf32>
    %160 = vector.extract_strided_slice %146 {offsets = [56, 0], sizes = [8, 128], strides = [1, 1]} : vector<64x128xf32> to vector<8x128xf32>
    %161 = arith.maximumf %159, %160 : vector<8x128xf32>
    %c128_154 = arith.constant 128 : index
    %c0_155 = arith.constant 0 : index
    %162 = vector.load %arg12[%c128_154, %c0_155] : memref<288x128xf32, #tpu.memory_space<vmem>>, vector<8x128xf32>
    tpu.vector_store %arg12[%c128_154, %c0_155], %161 {strides = array<i32>} : memref<288x128xf32, #tpu.memory_space<vmem>>, vector<8x128xf32>,
    %c320_156 = arith.constant 320 : index
    %c0_157 = arith.constant 0 : index
    %163 = vector.load %arg11[%c320_156, %c0_157] : memref<640x128xf32, #tpu.memory_space<vmem>>, vector<64x128xf32>
    %c400_158 = arith.constant 400 : index
    %c0_159 = arith.constant 0 : index
    %164 = vector.load %arg11[%c400_158, %c0_159] : memref<640x128xf32, #tpu.memory_space<vmem>>, vector<64x128xf32>
    %165 = arith.maximumf %163, %164 : vector<64x128xf32>
    %166 = vector.extract_strided_slice %165 {offsets = [0, 0], sizes = [8, 128], strides = [1, 1]} : vector<64x128xf32> to vector<8x128xf32>
    %167 = vector.extract_strided_slice %165 {offsets = [8, 0], sizes = [8, 128], strides = [1, 1]} : vector<64x128xf32> to vector<8x128xf32>
    %168 = arith.maximumf %166, %167 : vector<8x128xf32>
    %c152_160 = arith.constant 152 : index
    %c0_161 = arith.constant 0 : index
    %169 = vector.load %arg12[%c152_160, %c0_161] : memref<288x128xf32, #tpu.memory_space<vmem>>, vector<8x128xf32>
    tpu.vector_store %arg12[%c152_160, %c0_161], %168 {strides = array<i32>} : memref<288x128xf32, #tpu.memory_space<vmem>>, vector<8x128xf32>,
    %170 = vector.extract_strided_slice %165 {offsets = [16, 0], sizes = [8, 128], strides = [1, 1]} : vector<64x128xf32> to vector<8x128xf32>
    %171 = vector.extract_strided_slice %165 {offsets = [24, 0], sizes = [8, 128], strides = [1, 1]} : vector<64x128xf32> to vector<8x128xf32>
    %172 = arith.maximumf %170, %171 : vector<8x128xf32>
    %c160_162 = arith.constant 160 : index
    %c0_163 = arith.constant 0 : index
    %173 = vector.load %arg12[%c160_162, %c0_163] : memref<288x128xf32, #tpu.memory_space<vmem>>, vector<8x128xf32>
    tpu.vector_store %arg12[%c160_162, %c0_163], %172 {strides = array<i32>} : memref<288x128xf32, #tpu.memory_space<vmem>>, vector<8x128xf32>,
    %174 = vector.extract_strided_slice %165 {offsets = [32, 0], sizes = [8, 128], strides = [1, 1]} : vector<64x128xf32> to vector<8x128xf32>
    %175 = vector.extract_strided_slice %165 {offsets = [40, 0], sizes = [8, 128], strides = [1, 1]} : vector<64x128xf32> to vector<8x128xf32>
    %176 = arith.maximumf %174, %175 : vector<8x128xf32>
    %c168_164 = arith.constant 168 : index
    %c0_165 = arith.constant 0 : index
    %177 = vector.load %arg12[%c168_164, %c0_165] : memref<288x128xf32, #tpu.memory_space<vmem>>, vector<8x128xf32>
    tpu.vector_store %arg12[%c168_164, %c0_165], %176 {strides = array<i32>} : memref<288x128xf32, #tpu.memory_space<vmem>>, vector<8x128xf32>,
    %178 = vector.extract_strided_slice %165 {offsets = [48, 0], sizes = [8, 128], strides = [1, 1]} : vector<64x128xf32> to vector<8x128xf32>
    %179 = vector.extract_strided_slice %165 {offsets = [56, 0], sizes = [8, 128], strides = [1, 1]} : vector<64x128xf32> to vector<8x128xf32>
    %180 = arith.maximumf %178, %179 : vector<8x128xf32>
    %c176 = arith.constant 176 : index
    %c0_166 = arith.constant 0 : index
    %181 = vector.load %arg12[%c176, %c0_166] : memref<288x128xf32, #tpu.memory_space<vmem>>, vector<8x128xf32>
    tpu.vector_store %arg12[%c176, %c0_166], %180 {strides = array<i32>} : memref<288x128xf32, #tpu.memory_space<vmem>>, vector<8x128xf32>,
    %c480_167 = arith.constant 480 : index
    %c0_168 = arith.constant 0 : index
    %182 = vector.load %arg11[%c480_167, %c0_168] : memref<640x128xf32, #tpu.memory_space<vmem>>, vector<64x128xf32>
    %c560_169 = arith.constant 560 : index
    %c0_170 = arith.constant 0 : index
    %183 = vector.load %arg11[%c560_169, %c0_170] : memref<640x128xf32, #tpu.memory_space<vmem>>, vector<64x128xf32>
    %184 = arith.maximumf %182, %183 : vector<64x128xf32>
    %185 = vector.extract_strided_slice %184 {offsets = [0, 0], sizes = [8, 128], strides = [1, 1]} : vector<64x128xf32> to vector<8x128xf32>
    %186 = vector.extract_strided_slice %184 {offsets = [8, 0], sizes = [8, 128], strides = [1, 1]} : vector<64x128xf32> to vector<8x128xf32>
    %187 = arith.maximumf %185, %186 : vector<8x128xf32>
    %c200 = arith.constant 200 : index
    %c0_171 = arith.constant 0 : index
    %188 = vector.load %arg12[%c200, %c0_171] : memref<288x128xf32, #tpu.memory_space<vmem>>, vector<8x128xf32>
    tpu.vector_store %arg12[%c200, %c0_171], %187 {strides = array<i32>} : memref<288x128xf32, #tpu.memory_space<vmem>>, vector<8x128xf32>,
    %189 = vector.extract_strided_slice %184 {offsets = [16, 0], sizes = [8, 128], strides = [1, 1]} : vector<64x128xf32> to vector<8x128xf32>
    %190 = vector.extract_strided_slice %184 {offsets = [24, 0], sizes = [8, 128], strides = [1, 1]} : vector<64x128xf32> to vector<8x128xf32>
    %191 = arith.maximumf %189, %190 : vector<8x128xf32>
    %c208 = arith.constant 208 : index
    %c0_172 = arith.constant 0 : index
    %192 = vector.load %arg12[%c208, %c0_172] : memref<288x128xf32, #tpu.memory_space<vmem>>, vector<8x128xf32>
    tpu.vector_store %arg12[%c208, %c0_172], %191 {strides = array<i32>} : memref<288x128xf32, #tpu.memory_space<vmem>>, vector<8x128xf32>,
    %193 = vector.extract_strided_slice %184 {offsets = [32, 0], sizes = [8, 128], strides = [1, 1]} : vector<64x128xf32> to vector<8x128xf32>
    %194 = vector.extract_strided_slice %184 {offsets = [40, 0], sizes = [8, 128], strides = [1, 1]} : vector<64x128xf32> to vector<8x128xf32>
    %195 = arith.maximumf %193, %194 : vector<8x128xf32>
    %c216 = arith.constant 216 : index
    %c0_173 = arith.constant 0 : index
    %196 = vector.load %arg12[%c216, %c0_173] : memref<288x128xf32, #tpu.memory_space<vmem>>, vector<8x128xf32>
    tpu.vector_store %arg12[%c216, %c0_173], %195 {strides = array<i32>} : memref<288x128xf32, #tpu.memory_space<vmem>>, vector<8x128xf32>,
    %197 = vector.extract_strided_slice %184 {offsets = [48, 0], sizes = [8, 128], strides = [1, 1]} : vector<64x128xf32> to vector<8x128xf32>
    %198 = vector.extract_strided_slice %184 {offsets = [56, 0], sizes = [8, 128], strides = [1, 1]} : vector<64x128xf32> to vector<8x128xf32>
    %199 = arith.maximumf %197, %198 : vector<8x128xf32>
    %c224 = arith.constant 224 : index
    %c0_174 = arith.constant 0 : index
    %200 = vector.load %arg12[%c224, %c0_174] : memref<288x128xf32, #tpu.memory_space<vmem>>, vector<8x128xf32>
    tpu.vector_store %arg12[%c224, %c0_174], %199 {strides = array<i32>} : memref<288x128xf32, #tpu.memory_space<vmem>>, vector<8x128xf32>,
    %c1 = arith.constant 1 : index
    %c0_175 = arith.constant 0 : index
    %201 = vector.load %arg6[%c1, %c0_175] : memref<8x128xf32, #tpu.memory_space<vmem>>, vector<1x128xf32>
    %c0_176 = arith.constant 0 : index
    %c0_177 = arith.constant 0 : index
    %202 = vector.load %arg12[%c0_176, %c0_177] : memref<288x128xf32, #tpu.memory_space<vmem>>, vector<88x16xf32>
    %c0_178 = arith.constant 0 : index
    %c0_179 = arith.constant 0 : index
    %203 = vector.load %arg3[%c0_178, %c0_179] : memref<64x128xf32, #tpu.memory_space<vmem>>, vector<16x128xf32>
    %cst_180 = arith.constant dense<0.000000e+00> : vector<88x128xf32>
    %204 = tpu.matmul %202, %203, %cst_180 {dimension_numbers = #tpu.dot_dimension_numbers<[1], [0], [0], [1], [0, 0, 1, 1], [], []>} : vector<88x16xf32>, vector<16x128xf32>, vector<88x128xf32> -> vector<88x128xf32>
    %c8_181 = arith.constant 8 : index
    %c0_182 = arith.constant 0 : index
    %205 = vector.load %arg12[%c8_181, %c0_182] : memref<288x128xf32, #tpu.memory_space<vmem>>, vector<88x16xf32>
    %c16 = arith.constant 16 : index
    %c0_183 = arith.constant 0 : index
    %206 = vector.load %arg3[%c16, %c0_183] : memref<64x128xf32, #tpu.memory_space<vmem>>, vector<16x128xf32>
    %cst_184 = arith.constant dense<0.000000e+00> : vector<88x128xf32>
    %207 = tpu.matmul %205, %206, %cst_184 {dimension_numbers = #tpu.dot_dimension_numbers<[1], [0], [0], [1], [0, 0, 1, 1], [], []>} : vector<88x16xf32>, vector<16x128xf32>, vector<88x128xf32> -> vector<88x128xf32>
    %208 = arith.addf %204, %207 : vector<88x128xf32>
    %c48 = arith.constant 48 : index
    %c0_185 = arith.constant 0 : index
    %209 = vector.load %arg12[%c48, %c0_185] : memref<288x128xf32, #tpu.memory_space<vmem>>, vector<88x16xf32>
    %c32 = arith.constant 32 : index
    %c0_186 = arith.constant 0 : index
    %210 = vector.load %arg3[%c32, %c0_186] : memref<64x128xf32, #tpu.memory_space<vmem>>, vector<16x128xf32>
    %cst_187 = arith.constant dense<0.000000e+00> : vector<88x128xf32>
    %211 = tpu.matmul %209, %210, %cst_187 {dimension_numbers = #tpu.dot_dimension_numbers<[1], [0], [0], [1], [0, 0, 1, 1], [], []>} : vector<88x16xf32>, vector<16x128xf32>, vector<88x128xf32> -> vector<88x128xf32>
    %212 = arith.addf %208, %211 : vector<88x128xf32>
    %c56_188 = arith.constant 56 : index
    %c0_189 = arith.constant 0 : index
    %213 = vector.load %arg12[%c56_188, %c0_189] : memref<288x128xf32, #tpu.memory_space<vmem>>, vector<88x16xf32>
    %c48_190 = arith.constant 48 : index
    %c0_191 = arith.constant 0 : index
    %214 = vector.load %arg3[%c48_190, %c0_191] : memref<64x128xf32, #tpu.memory_space<vmem>>, vector<16x128xf32>
    %cst_192 = arith.constant dense<0.000000e+00> : vector<88x128xf32>
    %215 = tpu.matmul %213, %214, %cst_192 {dimension_numbers = #tpu.dot_dimension_numbers<[1], [0], [0], [1], [0, 0, 1, 1], [], []>} : vector<88x16xf32>, vector<16x128xf32>, vector<88x128xf32> -> vector<88x128xf32>
    %216 = arith.addf %212, %215 : vector<88x128xf32>
    %217 = vector.broadcast %201 : vector<1x128xf32> to vector<88x128xf32>
    %218 = arith.addf %216, %217 : vector<88x128xf32>
    %c0_193 = arith.constant 0 : index
    %c0_194 = arith.constant 0 : index
    %219 = vector.load %arg13[%c0_193, %c0_194] : memref<176x128xf32, #tpu.memory_space<vmem>>, vector<88x128xf32>
    tpu.vector_store %arg13[%c0_193, %c0_194], %218 {strides = array<i32>} : memref<176x128xf32, #tpu.memory_space<vmem>>, vector<88x128xf32>,
    %c88_195 = arith.constant 88 : index
    %c0_196 = arith.constant 0 : index
    %220 = vector.load %arg12[%c88_195, %c0_196] : memref<288x128xf32, #tpu.memory_space<vmem>>, vector<88x16xf32>
    %c0_197 = arith.constant 0 : index
    %c0_198 = arith.constant 0 : index
    %221 = vector.load %arg3[%c0_197, %c0_198] : memref<64x128xf32, #tpu.memory_space<vmem>>, vector<16x128xf32>
    %cst_199 = arith.constant dense<0.000000e+00> : vector<88x128xf32>
    %222 = tpu.matmul %220, %221, %cst_199 {dimension_numbers = #tpu.dot_dimension_numbers<[1], [0], [0], [1], [0, 0, 1, 1], [], []>} : vector<88x16xf32>, vector<16x128xf32>, vector<88x128xf32> -> vector<88x128xf32>
    %c96 = arith.constant 96 : index
    %c0_200 = arith.constant 0 : index
    %223 = vector.load %arg12[%c96, %c0_200] : memref<288x128xf32, #tpu.memory_space<vmem>>, vector<88x16xf32>
    %c16_201 = arith.constant 16 : index
    %c0_202 = arith.constant 0 : index
    %224 = vector.load %arg3[%c16_201, %c0_202] : memref<64x128xf32, #tpu.memory_space<vmem>>, vector<16x128xf32>
    %cst_203 = arith.constant dense<0.000000e+00> : vector<88x128xf32>
    %225 = tpu.matmul %223, %224, %cst_203 {dimension_numbers = #tpu.dot_dimension_numbers<[1], [0], [0], [1], [0, 0, 1, 1], [], []>} : vector<88x16xf32>, vector<16x128xf32>, vector<88x128xf32> -> vector<88x128xf32>
    %226 = arith.addf %222, %225 : vector<88x128xf32>
    %c136_204 = arith.constant 136 : index
    %c0_205 = arith.constant 0 : index
    %227 = vector.load %arg12[%c136_204, %c0_205] : memref<288x128xf32, #tpu.memory_space<vmem>>, vector<88x16xf32>
    %c32_206 = arith.constant 32 : index
    %c0_207 = arith.constant 0 : index
    %228 = vector.load %arg3[%c32_206, %c0_207] : memref<64x128xf32, #tpu.memory_space<vmem>>, vector<16x128xf32>
    %cst_208 = arith.constant dense<0.000000e+00> : vector<88x128xf32>
    %229 = tpu.matmul %227, %228, %cst_208 {dimension_numbers = #tpu.dot_dimension_numbers<[1], [0], [0], [1], [0, 0, 1, 1], [], []>} : vector<88x16xf32>, vector<16x128xf32>, vector<88x128xf32> -> vector<88x128xf32>
    %230 = arith.addf %226, %229 : vector<88x128xf32>
    %c144 = arith.constant 144 : index
    %c0_209 = arith.constant 0 : index
    %231 = vector.load %arg12[%c144, %c0_209] : memref<288x128xf32, #tpu.memory_space<vmem>>, vector<88x16xf32>
    %c48_210 = arith.constant 48 : index
    %c0_211 = arith.constant 0 : index
    %232 = vector.load %arg3[%c48_210, %c0_211] : memref<64x128xf32, #tpu.memory_space<vmem>>, vector<16x128xf32>
    %cst_212 = arith.constant dense<0.000000e+00> : vector<88x128xf32>
    %233 = tpu.matmul %231, %232, %cst_212 {dimension_numbers = #tpu.dot_dimension_numbers<[1], [0], [0], [1], [0, 0, 1, 1], [], []>} : vector<88x16xf32>, vector<16x128xf32>, vector<88x128xf32> -> vector<88x128xf32>
    %234 = arith.addf %230, %233 : vector<88x128xf32>
    %235 = vector.broadcast %201 : vector<1x128xf32> to vector<88x128xf32>
    %236 = arith.addf %234, %235 : vector<88x128xf32>
    %c88_213 = arith.constant 88 : index
    %c0_214 = arith.constant 0 : index
    %237 = vector.load %arg13[%c88_213, %c0_214] : memref<176x128xf32, #tpu.memory_space<vmem>>, vector<88x128xf32>
    tpu.vector_store %arg13[%c88_213, %c0_214], %236 {strides = array<i32>} : memref<176x128xf32, #tpu.memory_space<vmem>>, vector<88x128xf32>,
    %cst_215 = arith.constant 0.000000e+00 : f32
    %238 = vector.broadcast %cst_215 : f32 to vector<40x128xf32>
    %c0_216 = arith.constant 0 : index
    %c0_217 = arith.constant 0 : index
    %239 = vector.load %arg14[%c0_216, %c0_217] : memref<128x128xf32, #tpu.memory_space<vmem>>, vector<40x128xf32>
    tpu.vector_store %arg14[%c0_216, %c0_217], %238 {strides = array<i32>} : memref<128x128xf32, #tpu.memory_space<vmem>>, vector<40x128xf32>,
    %cst_218 = arith.constant 0.000000e+00 : f32
    %240 = vector.broadcast %cst_218 : f32 to vector<16x128xf32>
    %c56_219 = arith.constant 56 : index
    %c0_220 = arith.constant 0 : index
    %241 = vector.load %arg14[%c56_219, %c0_220] : memref<128x128xf32, #tpu.memory_space<vmem>>, vector<16x128xf32>
    tpu.vector_store %arg14[%c56_219, %c0_220], %240 {strides = array<i32>} : memref<128x128xf32, #tpu.memory_space<vmem>>, vector<16x128xf32>,
    %cst_221 = arith.constant 0.000000e+00 : f32
    %242 = vector.broadcast %cst_221 : f32 to vector<40x128xf32>
    %c88_222 = arith.constant 88 : index
    %c0_223 = arith.constant 0 : index
    %243 = vector.load %arg14[%c88_222, %c0_223] : memref<128x128xf32, #tpu.memory_space<vmem>>, vector<40x128xf32>
    tpu.vector_store %arg14[%c88_222, %c0_223], %242 {strides = array<i32>} : memref<128x128xf32, #tpu.memory_space<vmem>>, vector<40x128xf32>,
    %c0_224 = arith.constant 0 : index
    %c0_225 = arith.constant 0 : index
    %244 = vector.load %arg13[%c0_224, %c0_225] : memref<176x128xf32, #tpu.memory_space<vmem>>, vector<32x128xf32>
    %c48_226 = arith.constant 48 : index
    %c0_227 = arith.constant 0 : index
    %245 = vector.load %arg13[%c48_226, %c0_227] : memref<176x128xf32, #tpu.memory_space<vmem>>, vector<32x128xf32>
    %246 = arith.maximumf %244, %245 : vector<32x128xf32>
    %247 = vector.extract_strided_slice %246 {offsets = [0, 0], sizes = [8, 128], strides = [1, 1]} : vector<32x128xf32> to vector<8x128xf32>
    %248 = vector.extract_strided_slice %246 {offsets = [8, 0], sizes = [8, 128], strides = [1, 1]} : vector<32x128xf32> to vector<8x128xf32>
    %249 = arith.maximumf %247, %248 : vector<8x128xf32>
    %c40_228 = arith.constant 40 : index
    %c0_229 = arith.constant 0 : index
    %250 = vector.load %arg14[%c40_228, %c0_229] : memref<128x128xf32, #tpu.memory_space<vmem>>, vector<8x128xf32>
    tpu.vector_store %arg14[%c40_228, %c0_229], %249 {strides = array<i32>} : memref<128x128xf32, #tpu.memory_space<vmem>>, vector<8x128xf32>,
    %251 = vector.extract_strided_slice %246 {offsets = [16, 0], sizes = [8, 128], strides = [1, 1]} : vector<32x128xf32> to vector<8x128xf32>
    %252 = vector.extract_strided_slice %246 {offsets = [24, 0], sizes = [8, 128], strides = [1, 1]} : vector<32x128xf32> to vector<8x128xf32>
    %253 = arith.maximumf %251, %252 : vector<8x128xf32>
    %c48_230 = arith.constant 48 : index
    %c0_231 = arith.constant 0 : index
    %254 = vector.load %arg14[%c48_230, %c0_231] : memref<128x128xf32, #tpu.memory_space<vmem>>, vector<8x128xf32>
    tpu.vector_store %arg14[%c48_230, %c0_231], %253 {strides = array<i32>} : memref<128x128xf32, #tpu.memory_space<vmem>>, vector<8x128xf32>,
    %c96_232 = arith.constant 96 : index
    %c0_233 = arith.constant 0 : index
    %255 = vector.load %arg13[%c96_232, %c0_233] : memref<176x128xf32, #tpu.memory_space<vmem>>, vector<32x128xf32>
    %c144_234 = arith.constant 144 : index
    %c0_235 = arith.constant 0 : index
    %256 = vector.load %arg13[%c144_234, %c0_235] : memref<176x128xf32, #tpu.memory_space<vmem>>, vector<32x128xf32>
    %257 = arith.maximumf %255, %256 : vector<32x128xf32>
    %258 = vector.extract_strided_slice %257 {offsets = [0, 0], sizes = [8, 128], strides = [1, 1]} : vector<32x128xf32> to vector<8x128xf32>
    %259 = vector.extract_strided_slice %257 {offsets = [8, 0], sizes = [8, 128], strides = [1, 1]} : vector<32x128xf32> to vector<8x128xf32>
    %260 = arith.maximumf %258, %259 : vector<8x128xf32>
    %c72_236 = arith.constant 72 : index
    %c0_237 = arith.constant 0 : index
    %261 = vector.load %arg14[%c72_236, %c0_237] : memref<128x128xf32, #tpu.memory_space<vmem>>, vector<8x128xf32>
    tpu.vector_store %arg14[%c72_236, %c0_237], %260 {strides = array<i32>} : memref<128x128xf32, #tpu.memory_space<vmem>>, vector<8x128xf32>,
    %262 = vector.extract_strided_slice %257 {offsets = [16, 0], sizes = [8, 128], strides = [1, 1]} : vector<32x128xf32> to vector<8x128xf32>
    %263 = vector.extract_strided_slice %257 {offsets = [24, 0], sizes = [8, 128], strides = [1, 1]} : vector<32x128xf32> to vector<8x128xf32>
    %264 = arith.maximumf %262, %263 : vector<8x128xf32>
    %c80_238 = arith.constant 80 : index
    %c0_239 = arith.constant 0 : index
    %265 = vector.load %arg14[%c80_238, %c0_239] : memref<128x128xf32, #tpu.memory_space<vmem>>, vector<8x128xf32>
    tpu.vector_store %arg14[%c80_238, %c0_239], %264 {strides = array<i32>} : memref<128x128xf32, #tpu.memory_space<vmem>>, vector<8x128xf32>,
    %c2 = arith.constant 2 : index
    %c0_240 = arith.constant 0 : index
    %266 = vector.load %arg6[%c2, %c0_240] : memref<8x128xf32, #tpu.memory_space<vmem>>, vector<1x128xf32>
    %c0_241 = arith.constant 0 : index
    %c0_242 = arith.constant 0 : index
    %267 = vector.load %arg14[%c0_241, %c0_242] : memref<128x128xf32, #tpu.memory_space<vmem>>, vector<48x32xf32>
    %c0_243 = arith.constant 0 : index
    %c0_244 = arith.constant 0 : index
    %268 = vector.load %arg4[%c0_243, %c0_244] : memref<128x128xf32, #tpu.memory_space<vmem>>, vector<32x128xf32>
    %cst_245 = arith.constant dense<0.000000e+00> : vector<48x128xf32>
    %269 = tpu.matmul %267, %268, %cst_245 {dimension_numbers = #tpu.dot_dimension_numbers<[1], [0], [0], [1], [0, 0, 1, 1], [], []>} : vector<48x32xf32>, vector<32x128xf32>, vector<48x128xf32> -> vector<48x128xf32>
    %c8_246 = arith.constant 8 : index
    %c0_247 = arith.constant 0 : index
    %270 = vector.load %arg14[%c8_246, %c0_247] : memref<128x128xf32, #tpu.memory_space<vmem>>, vector<48x32xf32>
    %c32_248 = arith.constant 32 : index
    %c0_249 = arith.constant 0 : index
    %271 = vector.load %arg4[%c32_248, %c0_249] : memref<128x128xf32, #tpu.memory_space<vmem>>, vector<32x128xf32>
    %cst_250 = arith.constant dense<0.000000e+00> : vector<48x128xf32>
    %272 = tpu.matmul %270, %271, %cst_250 {dimension_numbers = #tpu.dot_dimension_numbers<[1], [0], [0], [1], [0, 0, 1, 1], [], []>} : vector<48x32xf32>, vector<32x128xf32>, vector<48x128xf32> -> vector<48x128xf32>
    %273 = arith.addf %269, %272 : vector<48x128xf32>
    %c32_251 = arith.constant 32 : index
    %c0_252 = arith.constant 0 : index
    %274 = vector.load %arg14[%c32_251, %c0_252] : memref<128x128xf32, #tpu.memory_space<vmem>>, vector<48x32xf32>
    %c64_253 = arith.constant 64 : index
    %c0_254 = arith.constant 0 : index
    %275 = vector.load %arg4[%c64_253, %c0_254] : memref<128x128xf32, #tpu.memory_space<vmem>>, vector<32x128xf32>
    %cst_255 = arith.constant dense<0.000000e+00> : vector<48x128xf32>
    %276 = tpu.matmul %274, %275, %cst_255 {dimension_numbers = #tpu.dot_dimension_numbers<[1], [0], [0], [1], [0, 0, 1, 1], [], []>} : vector<48x32xf32>, vector<32x128xf32>, vector<48x128xf32> -> vector<48x128xf32>
    %277 = arith.addf %273, %276 : vector<48x128xf32>
    %c40_256 = arith.constant 40 : index
    %c0_257 = arith.constant 0 : index
    %278 = vector.load %arg14[%c40_256, %c0_257] : memref<128x128xf32, #tpu.memory_space<vmem>>, vector<48x32xf32>
    %c96_258 = arith.constant 96 : index
    %c0_259 = arith.constant 0 : index
    %279 = vector.load %arg4[%c96_258, %c0_259] : memref<128x128xf32, #tpu.memory_space<vmem>>, vector<32x128xf32>
    %cst_260 = arith.constant dense<0.000000e+00> : vector<48x128xf32>
    %280 = tpu.matmul %278, %279, %cst_260 {dimension_numbers = #tpu.dot_dimension_numbers<[1], [0], [0], [1], [0, 0, 1, 1], [], []>} : vector<48x32xf32>, vector<32x128xf32>, vector<48x128xf32> -> vector<48x128xf32>
    %281 = arith.addf %277, %280 : vector<48x128xf32>
    %282 = vector.broadcast %266 : vector<1x128xf32> to vector<48x128xf32>
    %283 = arith.addf %281, %282 : vector<48x128xf32>
    %c0_261 = arith.constant 0 : index
    %c0_262 = arith.constant 0 : index
    %284 = vector.load %arg15[%c0_261, %c0_262] : memref<48x128xf32, #tpu.memory_space<vmem>>, vector<48x128xf32>
    tpu.vector_store %arg15[%c0_261, %c0_262], %283 {strides = array<i32>} : memref<48x128xf32, #tpu.memory_space<vmem>>, vector<48x128xf32>,
    %cst_263 = arith.constant 0.000000e+00 : f32
    %285 = vector.broadcast %cst_263 : f32 to vector<32x128xf32>
    %c0_264 = arith.constant 0 : index
    %c0_265 = arith.constant 0 : index
    %286 = vector.load %arg16[%c0_264, %c0_265] : memref<72x128xf32, #tpu.memory_space<vmem>>, vector<32x128xf32>
    tpu.vector_store %arg16[%c0_264, %c0_265], %285 {strides = array<i32>} : memref<72x128xf32, #tpu.memory_space<vmem>>, vector<32x128xf32>,
    %cst_266 = arith.constant 0.000000e+00 : f32
    %287 = vector.broadcast %cst_266 : f32 to vector<32x128xf32>
    %c40_267 = arith.constant 40 : index
    %c0_268 = arith.constant 0 : index
    %288 = vector.load %arg16[%c40_267, %c0_268] : memref<72x128xf32, #tpu.memory_space<vmem>>, vector<32x128xf32>
    tpu.vector_store %arg16[%c40_267, %c0_268], %287 {strides = array<i32>} : memref<72x128xf32, #tpu.memory_space<vmem>>, vector<32x128xf32>,
    %c0_269 = arith.constant 0 : index
    %c0_270 = arith.constant 0 : index
    %289 = vector.load %arg15[%c0_269, %c0_270] : memref<48x128xf32, #tpu.memory_space<vmem>>, vector<16x128xf32>
    %c32_271 = arith.constant 32 : index
    %c0_272 = arith.constant 0 : index
    %290 = vector.load %arg15[%c32_271, %c0_272] : memref<48x128xf32, #tpu.memory_space<vmem>>, vector<16x128xf32>
    %291 = arith.maximumf %289, %290 : vector<16x128xf32>
    %292 = vector.extract_strided_slice %291 {offsets = [0, 0], sizes = [8, 128], strides = [1, 1]} : vector<16x128xf32> to vector<8x128xf32>
    %293 = vector.extract_strided_slice %291 {offsets = [8, 0], sizes = [8, 128], strides = [1, 1]} : vector<16x128xf32> to vector<8x128xf32>
    %294 = arith.maximumf %292, %293 : vector<8x128xf32>
    %c32_273 = arith.constant 32 : index
    %c0_274 = arith.constant 0 : index
    %295 = vector.load %arg16[%c32_273, %c0_274] : memref<72x128xf32, #tpu.memory_space<vmem>>, vector<8x128xf32>
    tpu.vector_store %arg16[%c32_273, %c0_274], %294 {strides = array<i32>} : memref<72x128xf32, #tpu.memory_space<vmem>>, vector<8x128xf32>,
    %c3 = arith.constant 3 : index
    %c0_275 = arith.constant 0 : index
    %296 = vector.load %arg6[%c3, %c0_275] : memref<8x128xf32, #tpu.memory_space<vmem>>, vector<1x128xf32>
    %c0_276 = arith.constant 0 : index
    %c0_277 = arith.constant 0 : index
    %297 = vector.load %arg16[%c0_276, %c0_277] : memref<72x128xf32, #tpu.memory_space<vmem>>, vector<40x64xf32>
    %c0_278 = arith.constant 0 : index
    %c0_279 = arith.constant 0 : index
    %298 = vector.load %arg5[%c0_278, %c0_279] : memref<256x128xf32, #tpu.memory_space<vmem>>, vector<64x128xf32>
    %cst_280 = arith.constant dense<0.000000e+00> : vector<40x128xf32>
    %299 = tpu.matmul %297, %298, %cst_280 {dimension_numbers = #tpu.dot_dimension_numbers<[1], [0], [0], [1], [0, 0, 1, 1], [], []>} : vector<40x64xf32>, vector<64x128xf32>, vector<40x128xf32> -> vector<40x128xf32>
    %c8_281 = arith.constant 8 : index
    %c0_282 = arith.constant 0 : index
    %300 = vector.load %arg16[%c8_281, %c0_282] : memref<72x128xf32, #tpu.memory_space<vmem>>, vector<40x64xf32>
    %c64_283 = arith.constant 64 : index
    %c0_284 = arith.constant 0 : index
    %301 = vector.load %arg5[%c64_283, %c0_284] : memref<256x128xf32, #tpu.memory_space<vmem>>, vector<64x128xf32>
    %cst_285 = arith.constant dense<0.000000e+00> : vector<40x128xf32>
    %302 = tpu.matmul %300, %301, %cst_285 {dimension_numbers = #tpu.dot_dimension_numbers<[1], [0], [0], [1], [0, 0, 1, 1], [], []>} : vector<40x64xf32>, vector<64x128xf32>, vector<40x128xf32> -> vector<40x128xf32>
    %303 = arith.addf %299, %302 : vector<40x128xf32>
    %c24 = arith.constant 24 : index
    %c0_286 = arith.constant 0 : index
    %304 = vector.load %arg16[%c24, %c0_286] : memref<72x128xf32, #tpu.memory_space<vmem>>, vector<40x64xf32>
    %c128_287 = arith.constant 128 : index
    %c0_288 = arith.constant 0 : index
    %305 = vector.load %arg5[%c128_287, %c0_288] : memref<256x128xf32, #tpu.memory_space<vmem>>, vector<64x128xf32>
    %cst_289 = arith.constant dense<0.000000e+00> : vector<40x128xf32>
    %306 = tpu.matmul %304, %305, %cst_289 {dimension_numbers = #tpu.dot_dimension_numbers<[1], [0], [0], [1], [0, 0, 1, 1], [], []>} : vector<40x64xf32>, vector<64x128xf32>, vector<40x128xf32> -> vector<40x128xf32>
    %307 = arith.addf %303, %306 : vector<40x128xf32>
    %c32_290 = arith.constant 32 : index
    %c0_291 = arith.constant 0 : index
    %308 = vector.load %arg16[%c32_290, %c0_291] : memref<72x128xf32, #tpu.memory_space<vmem>>, vector<40x64xf32>
    %c192_292 = arith.constant 192 : index
    %c0_293 = arith.constant 0 : index
    %309 = vector.load %arg5[%c192_292, %c0_293] : memref<256x128xf32, #tpu.memory_space<vmem>>, vector<64x128xf32>
    %cst_294 = arith.constant dense<0.000000e+00> : vector<40x128xf32>
    %310 = tpu.matmul %308, %309, %cst_294 {dimension_numbers = #tpu.dot_dimension_numbers<[1], [0], [0], [1], [0, 0, 1, 1], [], []>} : vector<40x64xf32>, vector<64x128xf32>, vector<40x128xf32> -> vector<40x128xf32>
    %311 = arith.addf %307, %310 : vector<40x128xf32>
    %312 = vector.broadcast %296 : vector<1x128xf32> to vector<40x128xf32>
    %313 = arith.addf %311, %312 : vector<40x128xf32>
    %c0_295 = arith.constant 0 : index
    %c0_296 = arith.constant 0 : index
    %314 = vector.load %arg17[%c0_295, %c0_296] : memref<40x128xf32, #tpu.memory_space<vmem>>, vector<40x128xf32>
    tpu.vector_store %arg17[%c0_295, %c0_296], %313 {strides = array<i32>} : memref<40x128xf32, #tpu.memory_space<vmem>>, vector<40x128xf32>,
    %c0_297 = arith.constant 0 : index
    %c0_298 = arith.constant 0 : index
    %315 = vector.load %arg17[%c0_297, %c0_298] : memref<40x128xf32, #tpu.memory_space<vmem>>, vector<8x128xf32>
    %c8_299 = arith.constant 8 : index
    %c0_300 = arith.constant 0 : index
    %316 = vector.load %arg17[%c8_299, %c0_300] : memref<40x128xf32, #tpu.memory_space<vmem>>, vector<8x128xf32>
    %317 = arith.addf %315, %316 : vector<8x128xf32>
    %c24_301 = arith.constant 24 : index
    %c0_302 = arith.constant 0 : index
    %318 = vector.load %arg17[%c24_301, %c0_302] : memref<40x128xf32, #tpu.memory_space<vmem>>, vector<8x128xf32>
    %319 = arith.addf %317, %318 : vector<8x128xf32>
    %c32_303 = arith.constant 32 : index
    %c0_304 = arith.constant 0 : index
    %320 = vector.load %arg17[%c32_303, %c0_304] : memref<40x128xf32, #tpu.memory_space<vmem>>, vector<8x128xf32>
    %321 = arith.addf %319, %320 : vector<8x128xf32>
    %cst_305 = arith.constant 2.500000e-01 : f32
    %322 = vector.broadcast %cst_305 : f32 to vector<8x128xf32>
    %323 = arith.mulf %321, %322 : vector<8x128xf32>
    %c0_306 = arith.constant 0 : index
    %c0_307 = arith.constant 0 : index
    %324 = vector.load %arg7[%c0_306, %c0_307] : memref<128x128xf32, #tpu.memory_space<vmem>>, vector<128x128xf32>
    %cst_308 = arith.constant dense<0.000000e+00> : vector<8x128xf32>
    %325 = tpu.matmul %323, %324, %cst_308 {dimension_numbers = #tpu.dot_dimension_numbers<[1], [0], [0], [1], [0, 0, 1, 1], [], []>} : vector<8x128xf32>, vector<128x128xf32>, vector<8x128xf32> -> vector<8x128xf32>
    %c4 = arith.constant 4 : index
    %c0_309 = arith.constant 0 : index
    %326 = vector.load %arg6[%c4, %c0_309] : memref<8x128xf32, #tpu.memory_space<vmem>>, vector<1x128xf32>
    %327 = vector.broadcast %326 : vector<1x128xf32> to vector<8x128xf32>
    %328 = arith.addf %325, %327 : vector<8x128xf32>
    %cst_310 = arith.constant 0.000000e+00 : f32
    %329 = vector.broadcast %cst_310 : f32 to vector<8x128xf32>
    %330 = arith.cmpf ogt, %328, %329 : vector<8x128xf32>
    %cst_311 = arith.constant 0.000000e+00 : f32
    %331 = vector.broadcast %cst_311 : f32 to vector<8x128xf32>
    %332 = arith.minimumf %328, %331 : vector<8x128xf32>
    %333 = math.exp %332 : vector<8x128xf32>
    %cst_312 = arith.constant 1.000000e+00 : f32
    %334 = vector.broadcast %cst_312 : f32 to vector<8x128xf32>
    %335 = arith.subf %333, %334 : vector<8x128xf32>
    %336 = arith.select %330, %328, %335 : vector<8x128xi1>, vector<8x128xf32>
    %c0_313 = arith.constant 0 : index
    %c0_314 = arith.constant 0 : index
    %337 = vector.load %arg8[%c0_313, %c0_314] : memref<128x128xf32, #tpu.memory_space<vmem>>, vector<128x128xf32>
    %cst_315 = arith.constant dense<0.000000e+00> : vector<8x128xf32>
    %338 = tpu.matmul %336, %337, %cst_315 {dimension_numbers = #tpu.dot_dimension_numbers<[1], [0], [0], [1], [0, 0, 1, 1], [], []>} : vector<8x128xf32>, vector<128x128xf32>, vector<8x128xf32> -> vector<8x128xf32>
    %c5 = arith.constant 5 : index
    %c0_316 = arith.constant 0 : index
    %339 = vector.load %arg6[%c5, %c0_316] : memref<8x128xf32, #tpu.memory_space<vmem>>, vector<1x128xf32>
    %340 = vector.broadcast %339 : vector<1x128xf32> to vector<8x128xf32>
    %341 = arith.addf %338, %340 : vector<8x128xf32>
    %c0_317 = arith.constant 0 : index
    %c0_318 = arith.constant 0 : index
    %342 = vector.load %arg9[%c0_317, %c0_318] : memref<8x128xf32, #tpu.memory_space<vmem>>, vector<8x128xf32>
    tpu.vector_store %arg9[%c0_317, %c0_318], %341 {strides = array<i32>} : memref<8x128xf32, #tpu.memory_space<vmem>>, vector<8x128xf32>,
    return
  }
  func.func @transform_0(%arg0: i32) -> (i32, i32, i32) {
    %c0_i32 = arith.constant 0 : i32
    %c0_i32_0 = arith.constant 0 : i32
    %c0_i32_1 = arith.constant 0 : i32
    return %arg0, %c0_i32, %c0_i32_0 : i32, i32, i32
  }
  func.func @transform_1(%arg0: i32) -> (i32, i32) {
    %c0_i32 = arith.constant 0 : i32
    %c0_i32_0 = arith.constant 0 : i32
    %c0_i32_1 = arith.constant 0 : i32
    return %c0_i32, %c0_i32_0 : i32, i32
  }
  func.func @transform_2(%arg0: i32) -> (i32, i32) {
    %c0_i32 = arith.constant 0 : i32
    %c0_i32_0 = arith.constant 0 : i32
    %c0_i32_1 = arith.constant 0 : i32
    return %c0_i32, %c0_i32_0 : i32, i32
  }
  func.func @transform_3(%arg0: i32) -> (i32, i32) {
    %c0_i32 = arith.constant 0 : i32
    %c0_i32_0 = arith.constant 0 : i32
    %c0_i32_1 = arith.constant 0 : i32
    return %c0_i32, %c0_i32_0 : i32, i32
  }
  func.func @transform_4(%arg0: i32) -> (i32, i32) {
    %c0_i32 = arith.constant 0 : i32
    %c0_i32_0 = arith.constant 0 : i32
    %c0_i32_1 = arith.constant 0 : i32
    return %c0_i32, %c0_i32_0 : i32, i32
  }
  func.func @transform_5(%arg0: i32) -> (i32, i32) {
    %c0_i32 = arith.constant 0 : i32
    %c0_i32_0 = arith.constant 0 : i32
    %c0_i32_1 = arith.constant 0 : i32
    return %c0_i32, %c0_i32_0 : i32, i32
  }
  func.func @transform_6(%arg0: i32) -> (i32, i32) {
    %c0_i32 = arith.constant 0 : i32
    %c0_i32_0 = arith.constant 0 : i32
    %c0_i32_1 = arith.constant 0 : i32
    return %c0_i32, %c0_i32_0 : i32, i32
  }
  func.func @transform_7(%arg0: i32) -> (i32, i32) {
    %c0_i32 = arith.constant 0 : i32
    %c0_i32_0 = arith.constant 0 : i32
    %c0_i32_1 = arith.constant 0 : i32
    return %c0_i32, %c0_i32_0 : i32, i32
  }
  func.func @transform_8(%arg0: i32) -> (i32, i32) {
    %c0_i32 = arith.constant 0 : i32
    %c0_i32_0 = arith.constant 0 : i32
    return %arg0, %c0_i32 : i32, i32
  }
}

</mosaic_0001>

<bundles_post_ra>
// kernel: cnn_forward.1
= control target key start
LH: loop header
LB: loop body
LE: loop exit
PB: predicated region body
PF: predicated region fallthrough
CT: control target
= control target key end

     0   :  { %vm29_vm0 = vcmask 326656   ;;  %v9766_v3 = vmov 0.0   ;;  %vm9768_vm1 = vmmov 0   ;;  %vm4380_vm2 = vcmask 130048   ;;  %s12170_s1 = inlined_call_operand.vmem [shape: f32[160,128], index: 1, kind: input, shape index: {}]   ;;  %s12171_s0 = inlined_call_operand.vmem [shape: f32[1,512,40], index: 0, kind: input, shape index: {}]   ;;  %s12172_s2 = inlined_call_operand.vmem [shape: f32[64,128], index: 2, kind: input, shape index: {}]   ;;  %s12173_s5 = inlined_call_operand.vmem [shape: f32[8,128], index: 5, kind: input, shape index: {}]   ;;  %s12174_s3 = inlined_call_operand.vmem [shape: f32[128,128], index: 3, kind: input, shape index: {}]   ;;  %s12175_s4 = inlined_call_operand.vmem [shape: f32[256,128], index: 4, kind: input, shape index: {}]   ;;  %s12176_s6 = inlined_call_operand.vmem [shape: f32[128,128], index: 6, kind: input, shape index: {}]   ;;  %s12177_s7 = inlined_call_operand.vmem [shape: f32[128,128], index: 7, kind: input, shape index: {}]   ;;  %s12178_s8 = inlined_call_operand.vmem [shape: f32[8,128], index: 8, kind: output, shape index: {}]  }
   0x1   :  { %v221_v0 = vld [vmem:[%s12170_s1 + $0x28] sm:$0xff]  ;;  %v222_v1 = vld [vmem:[%s12170_s1 + $0x30] sm:$0xff]  ;;  %v223_v2 = vld [vmem:[%s12170_s1 + $0x38] sm:$0xff]  ;;  %31 = vst.msk [vmem:[#allocation2 + $0x8] sm:$0xff] %vm29_vm0, %v9766_v3  ;;  %vm5765_vm3 = vcmask 261120   ;;  %vm6290_vm4 = vcmask 523264  }
   0x2   :  { %30 = vst.msk [vmem:[#allocation2] sm:$0xff] %vm29_vm0, %v9766_v3  ;;  %32 = vst.msk [vmem:[#allocation2 + $0x10] sm:$0xff] %vm29_vm0, %v9766_v3  ;;  %v9877_v4 = vpack.c.bf16 %v222_v1, %v221_v0  ;;  %v224_v5 = vld [vmem:[%s12170_s1 + $0x40] sm:$0xff]  ;;  %v88_v6 = vld [vmem:[%s12171_s0 + $0x70] sm:$0xff] }
   0x3   :  { %33 = vst.msk [vmem:[#allocation2 + $0x18] sm:$0xff] %vm29_vm0, %v9766_v3  ;;  %34 = vst.msk [vmem:[#allocation2 + $0x20] sm:$0xff] %vm29_vm0, %v9766_v3  ;;  %v9885_v7 = vpack.c.bf16 %v224_v5, %v223_v2  ;;  %v89_v8 = vld [vmem:[%s12171_s0 + $0x78] sm:$0xff]  ;;  %v98_v9 = vld [vmem:[%s12171_s0 + $0x80] sm:$0xff] }
   0x4   :  { %35 = vst.msk [vmem:[#allocation2 + $0x28] sm:$0xff] %vm29_vm0, %v9766_v3  ;;  %36 = vst.msk [vmem:[#allocation2 + $0x30] sm:$0xff] %vm29_vm0, %v9766_v3  ;;  %9238 = vmatprep.subr.bf16.mxu0 %v9877_v4  ;;  %9517 = vmatprep.subr.bf16.mxu1 %v9877_v4  ;;  %v99_v10 = vld [vmem:[%s12171_s0 + $0x88] sm:$0xff]  ;;  %v100_v11 = vld [vmem:[%s12171_s0 + $0x90] sm:$0xff] }
   0x5   :  { %37 = vst.msk [vmem:[#allocation2 + $0x38] sm:$0xff] %vm29_vm0, %v9766_v3  ;;  %38 = vst.msk [vmem:[#allocation2 + $0x40] sm:$0xff] %vm29_vm0, %v9766_v3  ;;  %9240 = vmatpush3.bf16.msra.mxu0 %v9877_v4  ;;  %9520 = vmatpush3.bf16.msra.mxu1 %v9877_v4  ;;  %v9908_v12 = vld [vmem:[%s12170_s1 + $0x48] sm:$0xff]  ;;  %v101_v13 = vld [vmem:[%s12171_s0 + $0x98] sm:$0xff] }
   0x6   :  { %39 = vst.msk [vmem:[#allocation2 + $0x48] sm:$0xff] %vm29_vm0, %v9766_v3  ;;  %40 = vst.msk [vmem:[#allocation2 + $0x50] sm:$0xff] %vm29_vm0, %v9766_v3  ;;  %9242 = vmatprep.subr.bf16.mxu0 %v9885_v7  ;;  %9518 = vmatprep.subr.bf16.mxu1 %v9885_v7  ;;  %v102_v14 = vld [vmem:[%s12171_s0 + $0xa0] sm:$0xff]  ;;  %v103_v15 = vld [vmem:[%s12171_s0 + $0xa8] sm:$0xff] }
   0x7   :  { %41 = vst.msk [vmem:[#allocation2 + $0x98] sm:$0xff] %vm29_vm0, %v9766_v3  ;;  %42 = vst.msk [vmem:[#allocation2 + $0xa0] sm:$0xff] %vm29_vm0, %v9766_v3  ;;  %v66_v16 = vld [vmem:[%s12171_s0] sm:$0xff]  ;;  %v104_v17 = vld [vmem:[%s12171_s0 + $0xb0] sm:$0xff] }
   0x8   :  { %43 = vst.msk [vmem:[#allocation2 + $0xe8] sm:$0xff] %vm29_vm0, %v9766_v3  ;;  %44 = vst.msk [vmem:[#allocation2 + $0xf0] sm:$0xff] %vm29_vm0, %v9766_v3  ;;  %v67_v18 = vld [vmem:[%s12171_s0 + $0x8] sm:$0xff]  ;;  %v105_v19 = vld [vmem:[%s12171_s0 + $0xb8] sm:$0xff] }
   0x9   :  { %45 = vst.msk [vmem:[#allocation2 + $0x138] sm:$0xff] %vm29_vm0, %v9766_v3  ;;  %46 = vst.msk [vmem:[#allocation2 + $0x140] sm:$0xff] %vm29_vm0, %v9766_v3  ;;  %v9940_v20 = vld [vmem:[#allocation2 + $0x8] sm:$0xff]  ;;  %9244 = vmatpush3.bf16.msra.mxu0 %v9885_v7  ;;  %9521 = vmatpush3.bf16.msra.mxu1 %v9885_v7  ;;  %v215_v21 = vld [vmem:[%s12170_s1] sm:$0xff] }
   0xa   :  { %47 = vst.msk [vmem:[#allocation2 + $0x188] sm:$0xff] %vm29_vm0, %v9766_v3  ;;  %48 = vst.msk [vmem:[#allocation2 + $0x190] sm:$0xff] %vm29_vm0, %v9766_v3  ;;  %v216_v22 = vld [vmem:[%s12170_s1 + $0x8] sm:$0xff]  ;;  %8047 = vmatprep.subr.mxu0 %v9908_v12  ;;  %9519 = vmatprep.subr.mxu1 %v9908_v12  ;;  %v9961_v24 = vld [vmem:[#allocation2 + $0x10] sm:$0xff] }
   0xb   :  { %49 = vst.msk [vmem:[#allocation2 + $0x1d8] sm:$0xff] %vm29_vm0, %v9766_v3  ;;  %50 = vst.msk [vmem:[#allocation2 + $0x1e0] sm:$0xff] %vm29_vm0, %v9766_v3  ;;  %8049 = vmatprep.mubr.msk.f32.mxu0 %vm29_vm0, %v9940_v20  ;;  %v9963_v25 = vpack.c.bf16 %v216_v22, %v215_v21  ;;  %v217_v27 = vld [vmem:[%s12170_s1 + $0x10] sm:$0xff]  ;;  %v218_v28 = vld [vmem:[%s12170_s1 + $0x18] sm:$0xff] }
   0xc   :  { %51 = vst.msk [vmem:[#allocation2 + $0x228] sm:$0xff] %vm29_vm0, %v9766_v3  ;;  %52 = vst.msk [vmem:[#allocation2 + $0x230] sm:$0xff] %vm29_vm0, %v9766_v3  ;;  %v9975_v29 = vld [vmem:[#allocation2 + $0x18] sm:$0xff]  ;;  %v9985_v31 = vld [vmem:[#allocation2 + $0x20] sm:$0xff]  ;;  %v9989_v33 = vpack.c.bf16 %v218_v28, %v217_v27 }
   0xd   :  { %53 = vst.msk [vmem:[#allocation2 + $0x278] sm:$0xff] %vm29_vm0, %v9766_v3  ;;  %54 = vst.msk [vmem:[#allocation2 + $0x280] sm:$0xff] %vm29_vm0, %v9766_v3  ;;  %8048 = vmatpush3.msra.mxu0 %v9908_v12  ;;  %9522 = vmatpush3.msra.mxu1 %v9908_v12  ;;  %v9995_v34 = vld [vmem:[#allocation2 + $0x28] sm:$0xff]  ;;  %v68_v35 = vld [vmem:[%s12171_s0 + $0x10] sm:$0xff] }
   0xe   :  { %55 = vst.msk [vmem:[#allocation2 + $0x2c8] sm:$0xff] %vm29_vm0, %v9766_v3  ;;  %56 = vst.msk [vmem:[#allocation2 + $0x2d0] sm:$0xff] %vm29_vm0, %v9766_v3  ;;  %8050 = vmatmul.mubr.msk.f32.vlgmr.msra.gmra.mrb[0].mxu0 %vm29_vm0, %v9961_v24  ;;  %9246 = vmatprep.subr.bf16.mxu0 %v9963_v25  ;;  %v69_v36 = vld [vmem:[%s12171_s0 + $0x18] sm:$0xff]  ;;  %v10005_v38 = vld [vmem:[#allocation2 + $0x30] sm:$0xff] }
   0xf   :  { %96 = vst.msk [vmem:[#allocation2 + $0xd8] sm:$0xff] %vm29_vm0, %v88_v6  ;;  %97 = vst.msk [vmem:[#allocation2 + $0xe0] sm:$0xff] %vm29_vm0, %v89_v8  ;;  %v9977_v30 = vld [vmem:[#allocation2 + $0xe8] sm:$0xff]  ;;  %9248 = vmatpush3.bf16.msra.mxu0 %v9963_v25  ;;  %v9987_v32 = vld [vmem:[#allocation2 + $0xf0] sm:$0xff]  ;;  %8052 = vmatprep.mubr.msk.f32.mxu0 %vm29_vm0, %v9975_v29 }
  0x10   :  { %106 = vst.msk [vmem:[#allocation2 + $0xf8] sm:$0xff] %vm29_vm0, %v98_v9  ;;  %107 = vst.msk [vmem:[#allocation2 + $0x100] sm:$0xff] %vm29_vm0, %v99_v10  ;;  %9250 = vmatprep.subr.bf16.mxu0 %v9989_v33  ;;  %9278 = vmatprep.subr.bf16.mxu1 %v9963_v25  ;;  %v70_v39 = vld [vmem:[%s12171_s0 + $0x20] sm:$0xff]  ;;  %v10018_v41 = vld [vmem:[#allocation2 + $0x38] sm:$0xff] }
  0x11   :  { %108 = vst.msk [vmem:[#allocation2 + $0x108] sm:$0xff] %vm29_vm0, %v100_v11  ;;  %109 = vst.msk [vmem:[#allocation2 + $0x110] sm:$0xff] %vm29_vm0, %v101_v13  ;;  %v71_v42 = vld [vmem:[%s12171_s0 + $0x28] sm:$0xff]  ;;  %v82_v43 = vld [vmem:[%s12171_s0 + $0x40] sm:$0xff] }
  0x12   :  { %110 = vst.msk [vmem:[#allocation2 + $0x118] sm:$0xff] %vm29_vm0, %v102_v14  ;;  %111 = vst.msk [vmem:[#allocation2 + $0x120] sm:$0xff] %vm29_vm0, %v103_v15  ;;  %8053 = vmatmul.mubr.msk.f32.gmra.mrb[2].mxu0 %vm29_vm0, %v9985_v31  ;;  %v72_v44 = vld [vmem:[%s12171_s0 + $0x30] sm:$0xff]  ;;  %v83_v45 = vld [vmem:[%s12171_s0 + $0x48] sm:$0xff] }
  0x13   :  { %74 = vst.msk [vmem:[#allocation2 + $0x58] sm:$0xff] %vm29_vm0, %v66_v16  ;;  %112 = vst.msk [vmem:[#allocation2 + $0x128] sm:$0xff] %vm29_vm0, %v104_v17  ;;  %8055 = vmatprep.mubr.msk.f32.mxu0 %vm29_vm0, %v9995_v34  ;;  %v73_v46 = vld [vmem:[%s12171_s0 + $0x38] sm:$0xff]  ;;  %9252 = vmatpush3.bf16.msra.mxu0 %v9989_v33  ;;  %v10049_v47 = vld [vmem:[%s12170_s1 + $0x20] sm:$0xff] }
  0x14   :  { %75 = vst.msk [vmem:[#allocation2 + $0x60] sm:$0xff] %vm29_vm0, %v67_v18  ;;  %113 = vst.msk [vmem:[#allocation2 + $0x130] sm:$0xff] %vm29_vm0, %v105_v19  ;;  %v84_v48 = vld [vmem:[%s12171_s0 + $0x50] sm:$0xff]  ;;  %v85_v49 = vld [vmem:[%s12171_s0 + $0x58] sm:$0xff]  ;;  %8087 = vmatprep.subr.mxu0 %v10049_v47 }
  0x15   :  { %76 = vst.msk [vmem:[#allocation2 + $0x68] sm:$0xff] %vm29_vm0, %v68_v35  ;;  %77 = vst.msk [vmem:[#allocation2 + $0x70] sm:$0xff] %vm29_vm0, %v69_v36  ;;  %v86_v51 = vld [vmem:[%s12171_s0 + $0x60] sm:$0xff]  ;;  %v87_v52 = vld [vmem:[%s12171_s0 + $0x68] sm:$0xff] }
  0x16   :  { %v9955_v23 = vld [vmem:[#allocation2 + $0xd8] sm:$0xff]  ;;  %v9965_v26 = vld [vmem:[#allocation2 + $0xe0] sm:$0xff]  ;;  %78 = vst.msk [vmem:[#allocation2 + $0x78] sm:$0xff] %vm29_vm0, %v70_v39  ;;  %79 = vst.msk [vmem:[#allocation2 + $0x80] sm:$0xff] %vm29_vm0, %v71_v42  ;;  %8056 = vmatmul.mubr.msk.f32.gmra.mrb[4].mxu0 %vm29_vm0, %v10005_v38 }
  0x17   :  { %8218 = vmatprep.mubr.msk.f32.mxu1 %vm29_vm0, %v9955_v23  ;;  %v10003_v37 = vld [vmem:[#allocation2 + $0xf8] sm:$0xff]  ;;  %v10016_v40 = vld [vmem:[#allocation2 + $0x100] sm:$0xff]  ;;  %90 = vst.msk [vmem:[#allocation2 + $0xa8] sm:$0xff] %vm29_vm0, %v82_v43  ;;  %80 = vst.msk [vmem:[#allocation2 + $0x88] sm:$0xff] %vm29_vm0, %v72_v44  ;;  %8058 = vmatprep.mubr.msk.f32.mxu0 %vm29_vm0, %v10018_v41 }
  0x18   :  { %8219 = vmatmul.mubr.msk.f32.vlgmr.msra.gmra.mrb[0].mxu1 %vm29_vm0, %v9965_v26  ;;  %91 = vst.msk [vmem:[#allocation2 + $0xb0] sm:$0xff] %vm29_vm0, %v83_v45  ;;  %81 = vst.msk [vmem:[#allocation2 + $0x90] sm:$0xff] %vm29_vm0, %v73_v46  ;;  %v10060_v50 = vld [vmem:[#allocation2 + $0x108] sm:$0xff]  ;;  %v639_v53 = vld [vmem:[%s12170_s1 + $0x50] sm:$0xff]  ;;  %8088 = vmatpush3.msra.mxu0 %v10049_v47 }
  0x19   :  { %8221 = vmatprep.mubr.msk.f32.mxu1 %vm29_vm0, %v9977_v30  ;;  %9280 = vmatpush3.bf16.msra.mxu1 %v9963_v25  ;;  %92 = vst.msk [vmem:[#allocation2 + $0xb8] sm:$0xff] %vm29_vm0, %v84_v48  ;;  %93 = vst.msk [vmem:[#allocation2 + $0xc0] sm:$0xff] %vm29_vm0, %v85_v49  ;;  %v640_v54 = vld [vmem:[%s12170_s1 + $0x58] sm:$0xff]  ;;  %v10087_v55 = vld [vmem:[#allocation2 + $0x40] sm:$0xff] }
  0x1a   :  { %9282 = vmatprep.subr.bf16.mxu1 %v9989_v33  ;;  %94 = vst.msk [vmem:[#allocation2 + $0xc8] sm:$0xff] %vm29_vm0, %v86_v51  ;;  %95 = vst.msk [vmem:[#allocation2 + $0xd0] sm:$0xff] %vm29_vm0, %v87_v52  ;;  %v10091_v56 = vld [vmem:[#allocation2 + $0x110] sm:$0xff]  ;;  %v10093_v57 = vld [vmem:[#allocation2 + $0x48] sm:$0xff]  ;;  %v10099_v59 = vpack.c.bf16 %v640_v54, %v639_v53  ;;  %8059 = vmatmul.mubr.msk.f32.gmra.mrb[6].mxu0 %vm29_vm0, %v10087_v55 }
  0x1b   :  { %v10096_v58 = vld [vmem:[#allocation2 + $0x118] sm:$0xff]  ;;  %v114_v60 = vld [vmem:[%s12171_s0 + $0xc0] sm:$0xff]  ;;  %v115_v61 = vld [vmem:[%s12171_s0 + $0xc8] sm:$0xff]  ;;  %8061 = vmatprep.mubr.msk.f32.mxu0 %vm29_vm0, %v10093_v57 }
  0x1c   :  { %8222 = vmatmul.mubr.msk.f32.gmra.mrb[2].mxu1 %vm29_vm0, %v9987_v32  ;;  %122 = vst.msk [vmem:[#allocation2 + $0x148] sm:$0xff] %vm29_vm0, %v114_v60  ;;  %123 = vst.msk [vmem:[#allocation2 + $0x150] sm:$0xff] %vm29_vm0, %v115_v61  ;;  %v116_v62 = vld [vmem:[%s12171_s0 + $0xd0] sm:$0xff]  ;;  %v10124_v0 = vld [vmem:[#allocation2 + $0x120] sm:$0xff]  ;;  %9254 = vmatprep.subr.bf16.mxu0 %v10099_v59 }
  0x1d   :  { %8224 = vmatprep.mubr.msk.f32.mxu1 %vm29_vm0, %v10003_v37  ;;  %9284 = vmatpush3.bf16.msra.mxu1 %v9989_v33  ;;  %v10119_v63 = vld [vmem:[#allocation2 + $0x50] sm:$0xff]  ;;  %124 = vst.msk [vmem:[#allocation2 + $0x158] sm:$0xff] %vm29_vm0, %v116_v62  ;;  %v10126_v1 = vld [vmem:[#allocation2 + $0x58] sm:$0xff]  ;;  %v10129_v2 = vld [vmem:[#allocation2 + $0x128] sm:$0xff] }
  0x1e   :  { %8247 = vmatprep.subr.mxu1 %v10049_v47  ;;  %8062 = vmatmul.mubr.msk.f32.gmra.mrb[8].mxu0 %vm29_vm0, %v10119_v63  ;;  %v117_v5 = vld [vmem:[%s12171_s0 + $0xd8] sm:$0xff]  ;;  %v118_v6 = vld [vmem:[%s12171_s0 + $0xe0] sm:$0xff]  ;;  %v119_v8 = vld [vmem:[%s12171_s0 + $0xe8] sm:$0xff] }
  0x1f   :  { %8064 = vmatprep.mubr.msk.f32.mxu0 %vm29_vm0, %v10126_v1  ;;  %v10147_v9 = vld [vmem:[#allocation2 + $0x60] sm:$0xff]  ;;  %125 = vst.msk [vmem:[#allocation2 + $0x160] sm:$0xff] %vm29_vm0, %v117_v5  ;;  %126 = vst.msk [vmem:[#allocation2 + $0x168] sm:$0xff] %vm29_vm0, %v118_v6  ;;  %v120_v10 = vld [vmem:[%s12171_s0 + $0xf0] sm:$0xff] }
  0x20   :  { %8225 = vmatmul.mubr.msk.f32.gmra.mrb[4].mxu1 %vm29_vm0, %v10016_v40  ;;  %127 = vst.msk [vmem:[#allocation2 + $0x170] sm:$0xff] %vm29_vm0, %v119_v8  ;;  %v121_v11 = vld [vmem:[%s12171_s0 + $0xf8] sm:$0xff]  ;;  %v10160_v13 = vld [vmem:[#allocation2 + $0x130] sm:$0xff]  ;;  %v10162_v14 = vld [vmem:[#allocation2 + $0x68] sm:$0xff] }
  0x21   :  { %8227 = vmatprep.mubr.msk.f32.mxu1 %vm29_vm0, %v10060_v50  ;;  %8248 = vmatpush3.msra.mxu1 %v10049_v47  ;;  %128 = vst.msk [vmem:[#allocation2 + $0x178] sm:$0xff] %vm29_vm0, %v120_v10  ;;  %129 = vst.msk [vmem:[#allocation2 + $0x180] sm:$0xff] %vm29_vm0, %v121_v11  ;;  %v146_v15 = vld [vmem:[%s12171_s0 + $0x140] sm:$0xff]  ;;  %v10169_v16 = vld [vmem:[#allocation2 + $0x138] sm:$0xff] }
  0x22   :  { %9286 = vmatprep.subr.bf16.mxu1 %v10099_v59  ;;  %154 = vst.msk [vmem:[#allocation2 + $0x1e8] sm:$0xff] %vm29_vm0, %v146_v15  ;;  %v147_v17 = vld [vmem:[%s12171_s0 + $0x148] sm:$0xff]  ;;  %8065 = vmatmul.mubr.msk.f32.gmra.mrb[10].mxu0 %vm29_vm0, %v10147_v9  ;;  %v148_v18 = vld [vmem:[%s12171_s0 + $0x150] sm:$0xff]  ;;  %v149_v19 = vld [vmem:[%s12171_s0 + $0x158] sm:$0xff] }
  0x23   :  { %155 = vst.msk [vmem:[#allocation2 + $0x1f0] sm:$0xff] %vm29_vm0, %v147_v17  ;;  %8067 = vmatprep.mubr.msk.f32.mxu0 %vm29_vm0, %v10162_v14  ;;  %v10188_v21 = vld [vmem:[#allocation2 + $0x70] sm:$0xff]  ;;  %156 = vst.msk [vmem:[#allocation2 + $0x1f8] sm:$0xff] %vm29_vm0, %v148_v18  ;;  %v150_v22 = vld [vmem:[%s12171_s0 + $0x160] sm:$0xff] }
  0x24   :  { %8228 = vmatmul.mubr.msk.f32.gmra.mrb[6].mxu1 %vm29_vm0, %v10091_v56  ;;  %157 = vst.msk [vmem:[#allocation2 + $0x200] sm:$0xff] %vm29_vm0, %v149_v19  ;;  %v151_v27 = vld [vmem:[%s12171_s0 + $0x168] sm:$0xff]  ;;  %v10200_v28 = vld [vmem:[#allocation2 + $0x140] sm:$0xff]  ;;  %v10202_v35 = vld [vmem:[#allocation2 + $0x78] sm:$0xff] }
  0x25   :  { %8230 = vmatprep.mubr.msk.f32.mxu1 %vm29_vm0, %v10096_v58  ;;  %158 = vst.msk [vmem:[#allocation2 + $0x208] sm:$0xff] %vm29_vm0, %v150_v22  ;;  %159 = vst.msk [vmem:[#allocation2 + $0x210] sm:$0xff] %vm29_vm0, %v151_v27  ;;  %v10206_v36 = vld [vmem:[#allocation2 + $0xa0] sm:$0xff]  ;;  %v152_v39 = vld [vmem:[%s12171_s0 + $0x170] sm:$0xff] }
  0x26   :  { %8068 = vmatmul.mubr.msk.f32.gmra.mrb[12].mxu0 %vm29_vm0, %v10188_v21  ;;  %v641_v42 = vld [vmem:[%s12170_s1 + $0x60] sm:$0xff]  ;;  %v642_v43 = vld [vmem:[%s12170_s1 + $0x68] sm:$0xff]  ;;  %160 = vst.msk [vmem:[#allocation2 + $0x218] sm:$0xff] %vm29_vm0, %v152_v39  ;;  %v153_v45 = vld [vmem:[%s12171_s0 + $0x178] sm:$0xff] }
  0x27   :  { %8070 = vmatprep.mubr.msk.f32.mxu0 %vm29_vm0, %v10202_v35  ;;  %v10224_v44 = vld [vmem:[#allocation2 + $0x80] sm:$0xff]  ;;  %v10231_v46 = vld [vmem:[#allocation2 + $0xa8] sm:$0xff]  ;;  %161 = vst.msk [vmem:[#allocation2 + $0x220] sm:$0xff] %vm29_vm0, %v153_v45  ;;  %v10236_v49 = vld [vmem:[#allocation2 + $0xb0] sm:$0xff]  ;;  %v10238_v51 = vpack.c.bf16 %v642_v43, %v641_v42 }
  0x28   :  { %8231 = vmatmul.mubr.msk.f32.gmra.mrb[8].mxu1 %vm29_vm0, %v10124_v0  ;;  %v10233_v48 = vld [vmem:[#allocation2 + $0x88] sm:$0xff]  ;;  %v10246_v52 = vld [vmem:[#allocation2 + $0x90] sm:$0xff]  ;;  %v10250_v53 = vld [vmem:[#allocation2 + $0xb8] sm:$0xff] }
  0x29   :  { %8233 = vmatprep.mubr.msk.f32.mxu1 %vm29_vm0, %v10129_v2  ;;  %v10252_v54 = vld [vmem:[#allocation2 + $0x98] sm:$0xff]  ;;  %v10255_v60 = vld [vmem:[#allocation2 + $0xc0] sm:$0xff]  ;;  %v10261_v61 = vld [vmem:[%s12170_s1 + $0x70] sm:$0xff] }
  0x2a   :  { %8071 = vmatmul.mubr.msk.f32.gmra.mrb[14].mxu0 %vm29_vm0, %v10224_v44  ;;  %v162_v62 = vld [vmem:[%s12171_s0 + $0x180] sm:$0xff]  ;;  %v909_v5 = vld [vmem:[%s12170_s1 + $0x78] sm:$0xff]  ;;  %v163_v8 = vld [vmem:[%s12171_s0 + $0x188] sm:$0xff] }
  0x2b   :  { %8073 = vmatprep.mubr.msk.f32.mxu0 %vm29_vm0, %v10233_v48  ;;  %v910_v6 = vld [vmem:[%s12170_s1 + $0x80] sm:$0xff]  ;;  %170 = vst.msk [vmem:[#allocation2 + $0x238] sm:$0xff] %vm29_vm0, %v162_v62  ;;  %171 = vst.msk [vmem:[#allocation2 + $0x240] sm:$0xff] %vm29_vm0, %v163_v8  ;;  %v10285_v10 = vld [vmem:[#allocation2 + $0xc8] sm:$0xff] }
  0x2c   :  { %8234 = vmatmul.mubr.msk.f32.gmra.mrb[10].mxu1 %vm29_vm0, %v10160_v13  ;;  %v195_v11 = vld [vmem:[#allocation2] sm:$0xff]  ;;  %v10288_v15 = vld [vmem:[#allocation2 + $0xd0] sm:$0xff]  ;;  %v10291_v17 = vpack.c.bf16 %v910_v6, %v909_v5  ;;  %v165_v19 = vld [vmem:[%s12171_s0 + $0x198] sm:$0xff] }
  0x2d   :  { %8236 = vmatprep.mubr.msk.f32.mxu1 %vm29_vm0, %v10169_v16  ;;  %v164_v18 = vld [vmem:[%s12171_s0 + $0x190] sm:$0xff]  ;;  %173 = vst.msk [vmem:[#allocation2 + $0x250] sm:$0xff] %vm29_vm0, %v165_v19  ;;  %v166_v22 = vld [vmem:[%s12171_s0 + $0x1a0] sm:$0xff]  ;;  %v167_v27 = vld [vmem:[%s12171_s0 + $0x1a8] sm:$0xff] }
  0x2e   :  { %8074 = vmatmul.mubr.msk.f32.gmra.mrb[16].mxu0 %vm29_vm0, %v10246_v52  ;;  %172 = vst.msk [vmem:[#allocation2 + $0x248] sm:$0xff] %vm29_vm0, %v164_v18  ;;  %174 = vst.msk [vmem:[#allocation2 + $0x258] sm:$0xff] %vm29_vm0, %v166_v22  ;;  %v169_v39 = vld [vmem:[%s12171_s0 + $0x1b8] sm:$0xff]  ;;  %v136_v43 = vld [vmem:[%s12171_s0 + $0x130] sm:$0xff] }
  0x2f   :  { %8076 = vmatprep.mubr.msk.f32.mxu0 %vm29_vm0, %v10252_v54  ;;  %175 = vst.msk [vmem:[#allocation2 + $0x260] sm:$0xff] %vm29_vm0, %v167_v27  ;;  %177 = vst.msk [vmem:[#allocation2 + $0x270] sm:$0xff] %vm29_vm0, %v169_v39  ;;  %v137_v45 = vld [vmem:[%s12171_s0 + $0x138] sm:$0xff]  ;;  %v10484_v5 = vld [vmem:[#allocation2 + $0x150] sm:$0xff] }
  0x30   :  { %8237 = vmatmul.mubr.msk.f32.gmra.mrb[12].mxu1 %vm29_vm0, %v10200_v28  ;;  %144 = vst.msk [vmem:[#allocation2 + $0x1c8] sm:$0xff] %vm29_vm0, %v136_v43  ;;  %145 = vst.msk [vmem:[#allocation2 + $0x1d0] sm:$0xff] %vm29_vm0, %v137_v45  ;;  %v10443_v62 = vld [vmem:[%s12170_s1 + $0x98] sm:$0xff]  ;;  %v10498_v8 = vld [vmem:[#allocation2 + $0x160] sm:$0xff] }
  0x31   :  { %8249 = vmatprep.mubr.msk.f32.mxu1 %vm29_vm0, %v10206_v36  ;;  %v10495_v6 = vld [vmem:[#allocation2 + $0x158] sm:$0xff]  ;;  %v10511_v18 = vld [vmem:[#allocation2 + $0x170] sm:$0xff]  ;;  %v10523_v22 = vld [vmem:[#allocation2 + $0x180] sm:$0xff] }
  0x32   :  { %8077 = vmatmul.mubr.msk.f32.gmra.mrb[18].mxu0 %vm29_vm0, %v10206_v36  ;;  %v10521_v19 = vld [vmem:[#allocation2 + $0x178] sm:$0xff]  ;;  %v10533_v27 = vld [vmem:[#allocation2 + $0x188] sm:$0xff] }
  0x33   :  { %8089 = vmatprep.mubr.msk.f32.mxu0 %vm29_vm0, %v195_v11  ;;  %v10509_v11 = vld [vmem:[#allocation2 + $0x168] sm:$0xff] }
  0x34   :  { %8250 = vmatmul.mubr.msk.f32.vlgmr.msra.gmra.mrb[14].mxu1 %vm29_vm0, %v10231_v46  ;;  %v179_v39 = vld [vmem:[%s12171_s0 + $0x1c8] sm:$0xff] }
  0x35   :  { %8252 = vmatprep.mubr.msk.f32.mxu1 %vm29_vm0, %v10236_v49  ;;  %9288 = vmatpush3.bf16.msra.mxu1 %v10099_v59  ;;  %187 = vst.msk [vmem:[#allocation2 + $0x290] sm:$0xff] %vm29_vm0, %v179_v39 }
  0x36   :  { %9290 = vmatprep.subr.bf16.mxu1 %v10238_v51  ;;  %8090 = vmatmul.mubr.msk.f32.vlgmr.msra.gmra.mrb[0].mxu0 %vm29_vm0, %v9940_v20  ;;  %v168_v20 = vld [vmem:[%s12171_s0 + $0x1b0] sm:$0xff] }
  0x37   :  { %9256 = vmatpush3.bf16.msra.mxu0 %v10099_v59  ;;  %8092 = vmatprep.mubr.msk.f32.mxu0 %vm29_vm0, %v9961_v24  ;;  %176 = vst.msk [vmem:[#allocation2 + $0x268] sm:$0xff] %vm29_vm0, %v168_v20  ;;  %v130_v24 = vld [vmem:[%s12171_s0 + $0x100] sm:$0xff]  ;;  %v10866_v43 = vld [vmem:[#allocation2 + $0x1c8] sm:$0xff]  ;;  %v10876_v45 = vld [vmem:[#allocation2 + $0x1d0] sm:$0xff] }
  0x38   :  { %8253 = vmatmul.mubr.msk.f32.gmra.mrb[16].mxu1 %vm29_vm0, %v10250_v53  ;;  %9258 = vmatprep.subr.bf16.mxu0 %v10238_v51  ;;  %138 = vst.msk [vmem:[#allocation2 + $0x198] sm:$0xff] %vm29_vm0, %v130_v24  ;;  %v178_v20 = vld [vmem:[%s12171_s0 + $0x1c0] sm:$0xff] }
  0x39   :  { %8255 = vmatprep.mubr.msk.f32.mxu1 %vm29_vm0, %v10255_v60  ;;  %9292 = vmatpush3.bf16.msra.mxu1 %v10238_v51  ;;  %186 = vst.msk [vmem:[#allocation2 + $0x288] sm:$0xff] %vm29_vm0, %v178_v20 }
  0x3a   :  { %8287 = vmatprep.subr.mxu1 %v10261_v61  ;;  %8093 = vmatmul.mubr.msk.f32.gmra.mrb[2].mxu0 %vm29_vm0, %v9975_v29  ;;  %v131_v29 = vld [vmem:[%s12171_s0 + $0x108] sm:$0xff] }
  0x3b   :  { %8095 = vmatprep.mubr.msk.f32.mxu0 %vm29_vm0, %v9985_v31  ;;  %9260 = vmatpush3.bf16.msra.mxu0 %v10238_v51  ;;  %139 = vst.msk [vmem:[#allocation2 + $0x1a0] sm:$0xff] %vm29_vm0, %v131_v29  ;;  %v132_v31 = vld [vmem:[%s12171_s0 + $0x110] sm:$0xff]  ;;  %v10801_v29 = vld [vmem:[#allocation2 + $0x278] sm:$0xff] }
  0x3c   :  { %8256 = vmatmul.mubr.msk.f32.gmra.mrb[18].mxu1 %vm29_vm0, %v10285_v10  ;;  %8127 = vmatprep.subr.mxu0 %v10261_v61  ;;  %140 = vst.msk [vmem:[#allocation2 + $0x1a8] sm:$0xff] %vm29_vm0, %v132_v31  ;;  %v10812_v31 = vld [vmem:[#allocation2 + $0x280] sm:$0xff] }
  0x3d   :  { %8258 = vmatprep.mubr.msk.f32.mxu1 %vm29_vm0, %v10288_v15  ;;  %8288 = vmatpush3.msra.mxu1 %v10261_v61 }
  0x3e   :  { %9294 = vmatprep.subr.bf16.mxu1 %v10291_v17  ;;  %8096 = vmatmul.mubr.msk.f32.gmra.mrb[4].mxu0 %vm29_vm0, %v9995_v34  ;;  %v133_v34 = vld [vmem:[%s12171_s0 + $0x118] sm:$0xff]  ;;  %v10787_v24 = vld [vmem:[#allocation2 + $0x268] sm:$0xff] }
  0x3f   :  { %8098 = vmatprep.mubr.msk.f32.mxu0 %vm29_vm0, %v10005_v38  ;;  %8128 = vmatpush3.msra.mxu0 %v10261_v61  ;;  %141 = vst.msk [vmem:[#allocation2 + $0x1b0] sm:$0xff] %vm29_vm0, %v133_v34  ;;  %v134_v38 = vld [vmem:[%s12171_s0 + $0x120] sm:$0xff]  ;;  %v10826_v34 = vld [vmem:[#allocation2 + $0x198] sm:$0xff] }
  0x40   :  { %8259 = vmatmul.mubr.msk.f32.gmra.mrb[0].mxu1 %vm29_vm0, %v9955_v23  ;;  %9262 = vmatprep.subr.bf16.mxu0 %v10291_v17  ;;  %142 = vst.msk [vmem:[#allocation2 + $0x1b8] sm:$0xff] %vm29_vm0, %v134_v38 }
  0x41   :  { %8261 = vmatprep.mubr.msk.f32.mxu1 %vm29_vm0, %v9965_v26 }
  0x42   :  { %8099 = vmatmul.mubr.msk.f32.gmra.mrb[6].mxu0 %vm29_vm0, %v10018_v41  ;;  %v911_v41 = vld [vmem:[%s12170_s1 + $0x88] sm:$0xff] }
  0x43   :  { %8101 = vmatprep.mubr.msk.f32.mxu0 %vm29_vm0, %v10087_v55  ;;  %v912_v55 = vld [vmem:[%s12170_s1 + $0x90] sm:$0xff]  ;;  %v10838_v38 = vld [vmem:[#allocation2 + $0x1a8] sm:$0xff] }
  0x44   :  { %8262 = vmatmul.mubr.msk.f32.gmra.mrb[20].mxu1 %vm29_vm0, %v9977_v30  ;;  %v10418_v42 = vpack.c.bf16 %v912_v55, %v911_v41 }
  0x45   :  { %8264 = vmatprep.mubr.msk.f32.mxu1 %vm29_vm0, %v9987_v32 }
  0x46   :  { %8102 = vmatmul.mubr.msk.f32.gmra.mrb[20].mxu0 %vm29_vm0, %v10093_v57  ;;  %v135_v57 = vld [vmem:[%s12171_s0 + $0x128] sm:$0xff]  ;;  %v10848_v41 = vld [vmem:[#allocation2 + $0x1b0] sm:$0xff] }
  0x47   :  { %8104 = vmatprep.mubr.msk.f32.mxu0 %vm29_vm0, %v10119_v63  ;;  %143 = vst.msk [vmem:[#allocation2 + $0x1c0] sm:$0xff] %vm29_vm0, %v135_v57  ;;  %v10852_v55 = vld [vmem:[#allocation2 + $0x1b8] sm:$0xff] }
  0x48   :  { %8265 = vmatmul.mubr.msk.f32.gmra.mrb[4].mxu1 %vm29_vm0, %v10003_v37 }
  0x49   :  { %8267 = vmatprep.mubr.msk.f32.mxu1 %vm29_vm0, %v10016_v40 }
  0x4a   :  { %8105 = vmatmul.mubr.msk.f32.gmra.mrb[10].mxu0 %vm29_vm0, %v10126_v1 }
  0x4b   :  { %8107 = vmatprep.mubr.msk.f32.mxu0 %vm29_vm0, %v10147_v9 }
  0x4c   :  { %8268 = vmatmul.mubr.msk.f32.gmra.mrb[6].mxu1 %vm29_vm0, %v10060_v50 }
  0x4d   :  { %8270 = vmatprep.mubr.msk.f32.mxu1 %vm29_vm0, %v10091_v56 }
  0x4e   :  { %8108 = vmatmul.mubr.msk.f32.gmra.mrb[12].mxu0 %vm29_vm0, %v10162_v14  ;;  %v10862_v57 = vld [vmem:[#allocation2 + $0x1c0] sm:$0xff] }
  0x4f   :  { %8110 = vmatprep.mubr.msk.f32.mxu0 %vm29_vm0, %v10188_v21 }
  0x50   :  { %8271 = vmatmul.mubr.msk.f32.gmra.mrb[8].mxu1 %vm29_vm0, %v10096_v58 }
  0x51   :  { %8273 = vmatprep.mubr.msk.f32.mxu1 %vm29_vm0, %v10124_v0 }
  0x52   :  { %8111 = vmatmul.mubr.msk.f32.gmra.mrb[14].mxu0 %vm29_vm0, %v10202_v35 }
  0x53   :  { %8113 = vmatprep.mubr.msk.f32.mxu0 %vm29_vm0, %v10224_v44 }
  0x54   :  { %8274 = vmatmul.mubr.msk.f32.gmra.mrb[10].mxu1 %vm29_vm0, %v10129_v2 }
  0x55   :  { %8276 = vmatprep.mubr.msk.f32.mxu1 %vm29_vm0, %v10160_v13 }
  0x56   :  { %8114 = vmatmul.mubr.msk.f32.gmra.mrb[16].mxu0 %vm29_vm0, %v10233_v48 }
  0x57   :  { %8116 = vmatprep.mubr.msk.f32.mxu0 %vm29_vm0, %v10246_v52 }
  0x58   :  { %8277 = vmatmul.mubr.msk.f32.gmra.mrb[22].mxu1 %vm29_vm0, %v10169_v16 }
  0x59   :  { %8289 = vmatprep.mubr.msk.f32.mxu1 %vm29_vm0, %v9987_v32 }
  0x5a   :  { %8117 = vmatmul.mubr.msk.f32.gmra.mrb[22].mxu0 %vm29_vm0, %v10252_v54 }
  0x5b   :  { %8129 = vmatprep.mubr.msk.f32.mxu0 %vm29_vm0, %v10119_v63  ;;  %v10481_v63 = vld [vmem:[#allocation2 + $0x148] sm:$0xff] }
  0x5c   :  { %8290 = vmatmul.mubr.msk.f32.vlgmr.msra.gmra.mrb[14].mxu1 %vm29_vm0, %v10003_v37 }
  0x5d   :  { %8292 = vmatprep.mubr.msk.f32.mxu1 %vm29_vm0, %v10016_v40  ;;  %9296 = vmatpush3.bf16.msra.mxu1 %v10291_v17 }
  0x5e   :  { %9298 = vmatprep.subr.bf16.mxu1 %v10418_v42  ;;  %8130 = vmatmul.mubr.msk.f32.vlgmr.msra.gmra.mrb[0].mxu0 %vm29_vm0, %v10126_v1 }
  0x5f   :  { %9264 = vmatpush3.bf16.msra.mxu0 %v10291_v17  ;;  %8132 = vmatprep.mubr.msk.f32.mxu0 %vm29_vm0, %v10147_v9 }
  0x60   :  { %8293 = vmatmul.mubr.msk.f32.gmra.mrb[16].mxu1 %vm29_vm0, %v10060_v50  ;;  %9266 = vmatprep.subr.bf16.mxu0 %v10418_v42 }
  0x61   :  { %8295 = vmatprep.mubr.msk.f32.mxu1 %vm29_vm0, %v10091_v56  ;;  %9300 = vmatpush3.bf16.msra.mxu1 %v10418_v42 }
  0x62   :  { %8327 = vmatprep.subr.mxu1 %v10443_v62  ;;  %8133 = vmatmul.mubr.msk.f32.gmra.mrb[2].mxu0 %vm29_vm0, %v10162_v14 }
  0x63   :  { %8135 = vmatprep.mubr.msk.f32.mxu0 %vm29_vm0, %v10188_v21  ;;  %9268 = vmatpush3.bf16.msra.mxu0 %v10418_v42 }
  0x64   :  { %8296 = vmatmul.mubr.msk.f32.gmra.mrb[18].mxu1 %vm29_vm0, %v10096_v58  ;;  %8167 = vmatprep.subr.mxu0 %v10443_v62 }
  0x65   :  { %8298 = vmatprep.mubr.msk.f32.mxu1 %vm29_vm0, %v10124_v0  ;;  %8328 = vmatpush3.msra.mxu1 %v10443_v62 }
  0x66   :  { %9334 = vmatprep.subr.bf16.mxu1 %v9877_v4  ;;  %8136 = vmatmul.mubr.msk.f32.gmra.mrb[4].mxu0 %vm29_vm0, %v10202_v35 }
  0x67   :  { %8138 = vmatprep.mubr.msk.f32.mxu0 %vm29_vm0, %v10224_v44  ;;  %8168 = vmatpush3.msra.mxu0 %v10443_v62 }
  0x68   :  { %8299 = vmatmul.mubr.msk.f32.gmra.mrb[0].mxu1 %vm29_vm0, %v10129_v2  ;;  %9270 = vmatprep.subr.bf16.mxu0 %v9877_v4 }
  0x69   :  { %8301 = vmatprep.mubr.msk.f32.mxu1 %vm29_vm0, %v10160_v13 }
  0x6a   :  { %8139 = vmatmul.mubr.msk.f32.gmra.mrb[6].mxu0 %vm29_vm0, %v10233_v48 }
  0x6b   :  { %8141 = vmatprep.mubr.msk.f32.mxu0 %vm29_vm0, %v10246_v52 }
  0x6c   :  { %8302 = vmatmul.mubr.msk.f32.gmra.mrb[24].mxu1 %vm29_vm0, %v10169_v16 }
  0x6d   :  { %8304 = vmatprep.mubr.msk.f32.mxu1 %vm29_vm0, %v10200_v28 }
  0x6e   :  { %8142 = vmatmul.mubr.msk.f32.gmra.mrb[24].mxu0 %vm29_vm0, %v10252_v54 }
  0x6f   :  { %8144 = vmatprep.mubr.msk.f32.mxu0 %vm29_vm0, %v10206_v36 }
  0x70   :  { %8305 = vmatmul.mubr.msk.f32.gmra.mrb[4].mxu1 %vm29_vm0, %v10481_v63 }
  0x71   :  { %8307 = vmatprep.mubr.msk.f32.mxu1 %vm29_vm0, %v10484_v5 }
  0x72   :  { %8145 = vmatmul.mubr.msk.f32.gmra.mrb[10].mxu0 %vm29_vm0, %v10231_v46 }
  0x73   :  { %8147 = vmatprep.mubr.msk.f32.mxu0 %vm29_vm0, %v10236_v49 }
  0x74   :  { %8308 = vmatmul.mubr.msk.f32.gmra.mrb[6].mxu1 %vm29_vm0, %v10495_v6 }
  0x75   :  { %8310 = vmatprep.mubr.msk.f32.mxu1 %vm29_vm0, %v10498_v8 }
  0x76   :  { %8148 = vmatmul.mubr.msk.f32.gmra.mrb[12].mxu0 %vm29_vm0, %v10250_v53 }
  0x77   :  { %8150 = vmatprep.mubr.msk.f32.mxu0 %vm29_vm0, %v10255_v60 }
  0x78   :  { %8311 = vmatmul.mubr.msk.f32.gmra.mrb[8].mxu1 %vm29_vm0, %v10509_v11 }
  0x79   :  { %8313 = vmatprep.mubr.msk.f32.mxu1 %vm29_vm0, %v10511_v18 }
  0x7a   :  { %8151 = vmatmul.mubr.msk.f32.gmra.mrb[14].mxu0 %vm29_vm0, %v10285_v10 }
  0x7b   :  { %8153 = vmatprep.mubr.msk.f32.mxu0 %vm29_vm0, %v10288_v15 }
  0x7c   :  { %8314 = vmatmul.mubr.msk.f32.gmra.mrb[10].mxu1 %vm29_vm0, %v10521_v19 }
  0x7d   :  { %8316 = vmatprep.mubr.msk.f32.mxu1 %vm29_vm0, %v10523_v22 }
  0x7e   :  { %8154 = vmatmul.mubr.msk.f32.gmra.mrb[16].mxu0 %vm29_vm0, %v9955_v23 }
  0x7f   :  { %8156 = vmatprep.mubr.msk.f32.mxu0 %vm29_vm0, %v9965_v26 }
  0x80   :  { %8317 = vmatmul.mubr.msk.f32.gmra.mrb[26].mxu1 %vm29_vm0, %v10533_v27 }
  0x81   :  { %8329 = vmatprep.mubr.msk.f32.mxu1 %vm29_vm0, %v10003_v37  ;;  %v3231_v37 = vld [vmem:[%s12170_s1] sm:$0xff] }
  0x82   :  { %8157 = vmatmul.mubr.msk.f32.gmra.mrb[26].mxu0 %vm29_vm0, %v9977_v30 }
  0x83   :  { %8169 = vmatprep.mubr.msk.f32.mxu0 %vm29_vm0, %v10126_v1  ;;  %v183_v1 = vld [vmem:[%s12171_s0 + $0x1e8] sm:$0xff] }
  0x84   :  { %8330 = vmatmul.mubr.msk.f32.vlgmr.msra.gmra.mrb[14].mxu1 %vm29_vm0, %v10016_v40  ;;  %v3232_v40 = vld [vmem:[%s12170_s1 + $0x8] sm:$0xff]  ;;  %191 = vst.msk [vmem:[#allocation2 + $0x2b0] sm:$0xff] %vm29_vm0, %v183_v1 }
  0x85   :  { %8332 = vmatprep.mubr.msk.f32.mxu1 %vm29_vm0, %v10060_v50  ;;  %9336 = vmatpush3.bf16.msra.mxu1 %v9877_v4  ;;  %v10573_v50 = vpack.c.bf16 %v3232_v40, %v3231_v37  ;;  %v10880_v37 = vld [vmem:[#allocation2 + $0x1d8] sm:$0xff]  ;;  %v2207_v40 = vld [vmem:[#allocation2 + $0x140] sm:$0xff]  ;;  %v3654_v1 = vld [vmem:[#allocation2 + $0x2c8] sm:$0xff] }
  0x86   :  { %9338 = vmatprep.subr.bf16.mxu1 %v9885_v7  ;;  %8170 = vmatmul.mubr.msk.f32.vlgmr.msra.gmra.mrb[0].mxu0 %vm29_vm0, %v10147_v9  ;;  %v184_v9 = vld [vmem:[%s12171_s0 + $0x1f0] sm:$0xff] }
  0x87   :  { %9272 = vmatpush3.bf16.msra.mxu0 %v9877_v4  ;;  %8172 = vmatprep.mubr.msk.f32.mxu0 %vm29_vm0, %v10162_v14  ;;  %v2233_v4 = vld [vmem:[%s12170_s1 + $0x28] sm:$0xff]  ;;  %192 = vst.msk [vmem:[#allocation2 + $0x2b8] sm:$0xff] %vm29_vm0, %v184_v9  ;;  %v185_v14 = vld [vmem:[%s12171_s0 + $0x1f8] sm:$0xff] }
  0x88   :  { %8333 = vmatmul.mubr.msk.f32.gmra.mrb[16].mxu1 %vm29_vm0, %v10091_v56  ;;  %v180_v56 = vld [vmem:[%s12171_s0 + $0x1d0] sm:$0xff]  ;;  %9274 = vmatprep.subr.bf16.mxu0 %v9885_v7  ;;  %193 = vst.msk [vmem:[#allocation2 + $0x2c0] sm:$0xff] %vm29_vm0, %v185_v14 }
  0x89   :  { %8335 = vmatprep.mubr.msk.f32.mxu1 %vm29_vm0, %v10096_v58  ;;  %9340 = vmatpush3.bf16.msra.mxu1 %v9885_v7  ;;  %188 = vst.msk [vmem:[#allocation2 + $0x298] sm:$0xff] %vm29_vm0, %v180_v56  ;;  %v181_v58 = vld [vmem:[%s12171_s0 + $0x1d8] sm:$0xff] }
  0x8a   :  { %8527 = vmatprep.subr.mxu1 %v9908_v12  ;;  %189 = vst.msk [vmem:[#allocation2 + $0x2a0] sm:$0xff] %vm29_vm0, %v181_v58  ;;  %8173 = vmatmul.mubr.msk.f32.gmra.mrb[2].mxu0 %vm29_vm0, %v10188_v21  ;;  %v10686_v21 = vld [vmem:[#allocation2 + $0x1f8] sm:$0xff] }
  0x8b   :  { %8175 = vmatprep.mubr.msk.f32.mxu0 %vm29_vm0, %v10202_v35  ;;  %9276 = vmatpush3.bf16.msra.mxu0 %v9885_v7  ;;  %v10672_v7 = vld [vmem:[#allocation2 + $0x190] sm:$0xff]  ;;  %v10699_v35 = vld [vmem:[#allocation2 + $0x208] sm:$0xff] }
  0x8c   :  { %8336 = vmatmul.mubr.msk.f32.gmra.mrb[18].mxu1 %vm29_vm0, %v10124_v0  ;;  %v182_v0 = vld [vmem:[%s12171_s0 + $0x1e0] sm:$0xff]  ;;  %8207 = vmatprep.subr.mxu0 %v9908_v12  ;;  %v11008_v39 = vld [vmem:[#allocation2 + $0x2b0] sm:$0xff] }
  0x8d   :  { %8338 = vmatprep.mubr.msk.f32.mxu1 %vm29_vm0, %v10129_v2  ;;  %8528 = vmatpush3.msra.mxu1 %v9908_v12  ;;  %190 = vst.msk [vmem:[#allocation2 + $0x2a8] sm:$0xff] %vm29_vm0, %v182_v0  ;;  %v2234_v2 = vld [vmem:[%s12170_s1 + $0x30] sm:$0xff] }
  0x8e   :  { %9342 = vmatprep.subr.bf16.mxu1 %v10573_v50  ;;  %8176 = vmatmul.mubr.msk.f32.gmra.mrb[4].mxu0 %vm29_vm0, %v10224_v44  ;;  %v10730_v44 = vld [vmem:[#allocation2 + $0x220] sm:$0xff]  ;;  %v11019_v58 = vld [vmem:[#allocation2 + $0x2b8] sm:$0xff] }
  0x8f   :  { %8178 = vmatprep.mubr.msk.f32.mxu0 %vm29_vm0, %v10233_v48  ;;  %8208 = vmatpush3.msra.mxu0 %v9908_v12  ;;  %v10674_v12 = vld [vmem:[#allocation2 + $0x1e8] sm:$0xff]  ;;  %v11022_v0 = vld [vmem:[#allocation2 + $0x2c0] sm:$0xff] }
  0x90   :  { %8339 = vmatmul.mubr.msk.f32.gmra.mrb[0].mxu1 %vm29_vm0, %v10160_v13  ;;  %v9301_v13 = vpack.c.bf16 %v2234_v2, %v2233_v4  ;;  %v4376_v4 = vld [vmem:[%s12172_s2 + $0x8] sm:$0xff] }
  0x91   :  { %8341 = vmatprep.mubr.msk.f32.mxu1 %vm29_vm0, %v10169_v16  ;;  %v10684_v16 = vld [vmem:[#allocation2 + $0x1f0] sm:$0xff] }
  0x92   :  { %9302 = vmatprep.subr.bf16.mxu0 %v9301_v13  ;;  %8179 = vmatmul.mubr.msk.f32.gmra.mrb[6].mxu0 %vm29_vm0, %v10246_v52  ;;  %v10746_v52 = vld [vmem:[#allocation2 + $0x238] sm:$0xff] }
  0x93   :  { %8181 = vmatprep.mubr.msk.f32.mxu0 %vm29_vm0, %v10252_v54  ;;  %v10761_v54 = vld [vmem:[#allocation2 + $0x248] sm:$0xff] }
  0x94   :  { %8342 = vmatmul.mubr.msk.f32.gmra.mrb[28].mxu1 %vm29_vm0, %v10200_v28  ;;  %v10696_v28 = vld [vmem:[#allocation2 + $0x200] sm:$0xff] }
  0x95   :  { %8344 = vmatprep.mubr.msk.f32.mxu1 %vm29_vm0, %v10481_v63 }
  0x96   :  { %8182 = vmatmul.mubr.msk.f32.gmra.mrb[28].mxu0 %vm29_vm0, %v10206_v36  ;;  %v10713_v36 = vld [vmem:[#allocation2 + $0x218] sm:$0xff] }
  0x97   :  { %8184 = vmatprep.mubr.msk.f32.mxu0 %vm29_vm0, %v10231_v46 }
  0x98   :  { %8345 = vmatmul.mubr.msk.f32.gmra.mrb[4].mxu1 %vm29_vm0, %v10484_v5 }
  0x99   :  { %8347 = vmatprep.mubr.msk.f32.mxu1 %vm29_vm0, %v10495_v6 }
  0x9a   :  { %8185 = vmatmul.mubr.msk.f32.gmra.mrb[10].mxu0 %vm29_vm0, %v10236_v49 }
  0x9b   :  { %8187 = vmatprep.mubr.msk.f32.mxu0 %vm29_vm0, %v10250_v53 }
  0x9c   :  { %8348 = vmatmul.mubr.msk.f32.gmra.mrb[6].mxu1 %vm29_vm0, %v10498_v8 }
  0x9d   :  { %8350 = vmatprep.mubr.msk.f32.mxu1 %vm29_vm0, %v10509_v11 }
  0x9e   :  { %8188 = vmatmul.mubr.msk.f32.gmra.mrb[12].mxu0 %vm29_vm0, %v10255_v60 }
  0x9f   :  { %8190 = vmatprep.mubr.msk.f32.mxu0 %vm29_vm0, %v10285_v10 }
  0xa0   :  { %8351 = vmatmul.mubr.msk.f32.gmra.mrb[8].mxu1 %vm29_vm0, %v10511_v18 }
  0xa1   :  { %8353 = vmatprep.mubr.msk.f32.mxu1 %vm29_vm0, %v10521_v19 }
  0xa2   :  { %8191 = vmatmul.mubr.msk.f32.gmra.mrb[14].mxu0 %vm29_vm0, %v10288_v15 }
  0xa3   :  { %8193 = vmatprep.mubr.msk.f32.mxu0 %vm29_vm0, %v9955_v23  ;;  %v10710_v23 = vld [vmem:[#allocation2 + $0x210] sm:$0xff] }
  0xa4   :  { %8354 = vmatmul.mubr.msk.f32.gmra.mrb[10].mxu1 %vm29_vm0, %v10523_v22 }
  0xa5   :  { %8356 = vmatprep.mubr.msk.f32.mxu1 %vm29_vm0, %v10533_v27 }
  0xa6   :  { %8194 = vmatmul.mubr.msk.f32.gmra.mrb[16].mxu0 %vm29_vm0, %v9965_v26  ;;  %v2235_v26 = vld [vmem:[%s12170_s1 + $0x38] sm:$0xff] }
  0xa7   :  { %8196 = vmatprep.mubr.msk.f32.mxu0 %vm29_vm0, %v9977_v30  ;;  %v2236_v30 = vld [vmem:[%s12170_s1 + $0x40] sm:$0xff] }
  0xa8   :  { %8357 = vmatmul.mubr.msk.f32.gmra.mrb[30].mxu1 %vm29_vm0, %v10672_v7  ;;  %v9305_v48 = vpack.c.bf16 %v2236_v30, %v2235_v26  ;;  %v4378_v26 = vld [vmem:[%s12172_s2 + $0x10] sm:$0xff]  ;;  %v4379_v30 = vld [vmem:[%s12172_s2 + $0x18] sm:$0xff] }
  0xa9   :  { %8529 = vmatprep.mubr.msk.f32.mxu1 %vm29_vm0, %v10674_v12 }
  0xaa   :  { %8197 = vmatmul.mubr.msk.f32.gmra.mrb[30].mxu0 %vm29_vm0, %v9987_v32  ;;  %v10733_v32 = vld [vmem:[#allocation2 + $0x228] sm:$0xff] }
  0xab   :  { %8209 = vmatprep.mubr.msk.f32.mxu0 %vm29_vm0, %v10231_v46  ;;  %v10744_v46 = vld [vmem:[#allocation2 + $0x230] sm:$0xff] }
  0xac   :  { %8530 = vmatmul.mubr.msk.f32.vlgmr.msra.gmra.mrb[32].mxu1 %vm29_vm0, %v10684_v16 }
  0xad   :  { %8532 = vmatprep.mubr.msk.f32.mxu1 %vm29_vm0, %v10686_v21  ;;  %9344 = vmatpush3.bf16.msra.mxu1 %v10573_v50  ;;  %v11006_v50 = vld [vmem:[#allocation2 + $0x2a8] sm:$0xff] }
  0xae   :  { %9346 = vmatprep.subr.bf16.mxu1 %v9989_v33  ;;  %8210 = vmatmul.mubr.msk.f32.vlgmr.msra.gmra.mrb[32].mxu0 %vm29_vm0, %v10236_v49  ;;  %v2237_v49 = vld [vmem:[%s12170_s1 + $0x48] sm:$0xff] }
  0xaf   :  { %9304 = vmatpush3.bf16.msra.mxu0 %v9301_v13  ;;  %8212 = vmatprep.mubr.msk.f32.mxu0 %vm29_vm0, %v10250_v53  ;;  %v10759_v53 = vld [vmem:[#allocation2 + $0x240] sm:$0xff] }
  0xb0   :  { %8533 = vmatmul.mubr.msk.f32.gmra.mrb[34].mxu1 %vm29_vm0, %v10696_v28  ;;  %9306 = vmatprep.subr.bf16.mxu0 %v9305_v48 }
  0xb1   :  { %8535 = vmatprep.mubr.msk.f32.mxu1 %vm29_vm0, %v10699_v35  ;;  %9348 = vmatpush3.bf16.msra.mxu1 %v9989_v33 }
  0xb2   :  { %8567 = vmatprep.subr.mxu1 %v10049_v47  ;;  %8213 = vmatmul.mubr.msk.f32.gmra.mrb[34].mxu0 %vm29_vm0, %v10255_v60  ;;  %v10771_v60 = vld [vmem:[#allocation2 + $0x250] sm:$0xff] }
  0xb3   :  { %9308 = vmatpush3.bf16.msra.mxu0 %v9305_v48  ;;  %8215 = vmatprep.mubr.msk.f32.mxu0 %vm29_vm0, %v10285_v10  ;;  %v10774_v10 = vld [vmem:[#allocation2 + $0x258] sm:$0xff] }
  0xb4   :  { %8536 = vmatmul.mubr.msk.f32.gmra.mrb[36].mxu1 %vm29_vm0, %v10710_v23  ;;  %8367 = vmatprep.subr.mxu0 %v2237_v49 }
  0xb5   :  { %8538 = vmatprep.mubr.msk.f32.mxu1 %vm29_vm0, %v10713_v36  ;;  %8568 = vmatpush3.msra.mxu1 %v10049_v47 }
  0xb6   :  { %9350 = vmatprep.subr.bf16.mxu1 %v10099_v59  ;;  %8216 = vmatmul.mubr.msk.f32.gmra.mrb[36].mxu0 %vm29_vm0, %v10288_v15  ;;  %v10785_v15 = vld [vmem:[#allocation2 + $0x260] sm:$0xff] }
  0xb7   :  { %8368 = vmatpush3.msra.mxu0 %v2237_v49  ;;  %8369 = vmatprep.mubr.msk.f32.mxu0 %vm29_vm0, %v10481_v63 }
  0xb8   :  { %8539 = vmatmul.mubr.msk.f32.gmra.mrb[38].mxu1 %vm29_vm0, %v10730_v44  ;;  %9310 = vmatprep.subr.bf16.mxu0 %v9963_v25 }
  0xb9   :  { %8541 = vmatprep.mubr.msk.f32.mxu1 %vm29_vm0, %v10733_v32 }
  0xba   :  { %8370 = vmatmul.mubr.msk.f32.vlgmr.msra.gmra.mrb[38].mxu0 %vm29_vm0, %v10484_v5 }
  0xbb   :  { %9312 = vmatpush3.bf16.msra.mxu0 %v9963_v25  ;;  %8372 = vmatprep.mubr.msk.f32.mxu0 %vm29_vm0, %v10495_v6  ;;  %v10798_v25 = vld [vmem:[#allocation2 + $0x270] sm:$0xff] }
  0xbc   :  { %8542 = vmatmul.mubr.msk.f32.gmra.mrb[40].mxu1 %vm29_vm0, %v10744_v46  ;;  %9314 = vmatprep.subr.bf16.mxu0 %v9989_v33 }
  0xbd   :  { %8544 = vmatprep.mubr.msk.f32.mxu1 %vm29_vm0, %v10746_v52 }
  0xbe   :  { %8373 = vmatmul.mubr.msk.f32.gmra.mrb[40].mxu0 %vm29_vm0, %v10498_v8 }
  0xbf   :  { %8375 = vmatprep.mubr.msk.f32.mxu0 %vm29_vm0, %v10509_v11  ;;  %9316 = vmatpush3.bf16.msra.mxu0 %v9989_v33  ;;  %v10815_v33 = vld [vmem:[#allocation2 + $0x1e0] sm:$0xff] }
  0xc0   :  { %8545 = vmatmul.mubr.msk.f32.gmra.mrb[42].mxu1 %vm29_vm0, %v10759_v53  ;;  %8407 = vmatprep.subr.mxu0 %v10049_v47 }
  0xc1   :  { %8547 = vmatprep.mubr.msk.f32.mxu1 %vm29_vm0, %v10761_v54 }
  0xc2   :  { %8376 = vmatmul.mubr.msk.f32.gmra.mrb[42].mxu0 %vm29_vm0, %v10511_v18 }
  0xc3   :  { %8378 = vmatprep.mubr.msk.f32.mxu0 %vm29_vm0, %v10521_v19  ;;  %8408 = vmatpush3.msra.mxu0 %v10049_v47  ;;  %v10834_v47 = vld [vmem:[#allocation2 + $0x1a0] sm:$0xff] }
  0xc4   :  { %8548 = vmatmul.mubr.msk.f32.gmra.mrb[44].mxu1 %vm29_vm0, %v10771_v60  ;;  %9318 = vmatprep.subr.bf16.mxu0 %v10099_v59 }
  0xc5   :  { %8550 = vmatprep.mubr.msk.f32.mxu1 %vm29_vm0, %v10774_v10 }
  0xc6   :  { %8379 = vmatmul.mubr.msk.f32.gmra.mrb[44].mxu0 %vm29_vm0, %v10523_v22 }
  0xc7   :  { %8381 = vmatprep.mubr.msk.f32.mxu0 %vm29_vm0, %v10533_v27 }
  0xc8   :  { %8551 = vmatmul.mubr.msk.f32.gmra.mrb[46].mxu1 %vm29_vm0, %v10785_v15 }
  0xc9   :  { %8553 = vmatprep.mubr.msk.f32.mxu1 %vm29_vm0, %v10787_v24 }
  0xca   :  { %8382 = vmatmul.mubr.msk.f32.gmra.mrb[46].mxu0 %vm29_vm0, %v10672_v7 }
  0xcb   :  { %8384 = vmatprep.mubr.msk.f32.mxu0 %vm29_vm0, %v10826_v34 }
  0xcc   :  { %8554 = vmatmul.mubr.msk.f32.gmra.mrb[48].mxu1 %vm29_vm0, %v10798_v25 }
  0xcd   :  { %8556 = vmatprep.mubr.msk.f32.mxu1 %vm29_vm0, %v10801_v29 }
  0xce   :  { %8385 = vmatmul.mubr.msk.f32.gmra.mrb[48].mxu0 %vm29_vm0, %v10834_v47 }
  0xcf   :  { %8387 = vmatprep.mubr.msk.f32.mxu0 %vm29_vm0, %v10838_v38 }
  0xd0   :  { %8557 = vmatmul.mubr.msk.f32.gmra.mrb[50].mxu1 %vm29_vm0, %v10812_v31 }
  0xd1   :  { %8569 = vmatprep.mubr.msk.f32.mxu1 %vm29_vm0, %v10815_v33 }
  0xd2   :  { %8388 = vmatmul.mubr.msk.f32.gmra.mrb[50].mxu0 %vm29_vm0, %v10848_v41 }
  0xd3   :  { %8390 = vmatprep.mubr.msk.f32.mxu0 %vm29_vm0, %v10852_v55 }
  0xd4   :  { %8570 = vmatmul.mubr.msk.f32.vlgmr.msra.gmra.mrb[32].mxu1 %vm29_vm0, %v10674_v12 }
  0xd5   :  { %8572 = vmatprep.mubr.msk.f32.mxu1 %vm29_vm0, %v10684_v16  ;;  %9352 = vmatpush3.bf16.msra.mxu1 %v10099_v59 }
  0xd6   :  { %9354 = vmatprep.subr.bf16.mxu1 %v10238_v51  ;;  %8391 = vmatmul.mubr.msk.f32.gmra.mrb[52].mxu0 %vm29_vm0, %v10862_v57 }
  0xd7   :  { %8393 = vmatprep.mubr.msk.f32.mxu0 %vm29_vm0, %v10866_v43 }
  0xd8   :  { %8573 = vmatmul.mubr.msk.f32.gmra.mrb[34].mxu1 %vm29_vm0, %v10686_v21 }
  0xd9   :  { %8575 = vmatprep.mubr.msk.f32.mxu1 %vm29_vm0, %v10696_v28  ;;  %9356 = vmatpush3.bf16.msra.mxu1 %v10238_v51 }
  0xda   :  { %8607 = vmatprep.subr.mxu1 %v10261_v61  ;;  %8394 = vmatmul.mubr.msk.f32.gmra.mrb[54].mxu0 %vm29_vm0, %v10876_v45 }
  0xdb   :  { %8396 = vmatprep.mubr.msk.f32.mxu0 %vm29_vm0, %v10880_v37 }
  0xdc   :  { %8576 = vmatmul.mubr.msk.f32.gmra.mrb[36].mxu1 %vm29_vm0, %v10699_v35 }
  0xdd   :  { %8578 = vmatprep.mubr.msk.f32.mxu1 %vm29_vm0, %v10710_v23  ;;  %8608 = vmatpush3.msra.mxu1 %v10261_v61 }
  0xde   :  { %9358 = vmatprep.subr.bf16.mxu1 %v10291_v17  ;;  %8397 = vmatmul.mubr.msk.f32.gmra.mrb[56].mxu0 %vm29_vm0, %v10815_v33 }
  0xdf   :  { %8409 = vmatprep.mubr.msk.f32.mxu0 %vm29_vm0, %v2207_v40 }
  0xe0   :  { %8579 = vmatmul.mubr.msk.f32.gmra.mrb[38].mxu1 %vm29_vm0, %v10713_v36 }
  0xe1   :  { %8581 = vmatprep.mubr.msk.f32.mxu1 %vm29_vm0, %v10730_v44 }
  0xe2   :  { %8410 = vmatmul.mubr.msk.f32.vlgmr.msra.gmra.mrb[38].mxu0 %vm29_vm0, %v10481_v63 }
  0xe3   :  { %9320 = vmatpush3.bf16.msra.mxu0 %v10099_v59  ;;  %8412 = vmatprep.mubr.msk.f32.mxu0 %vm29_vm0, %v10484_v5 }
  0xe4   :  { %8582 = vmatmul.mubr.msk.f32.gmra.mrb[52].mxu1 %vm29_vm0, %v10733_v32  ;;  %9322 = vmatprep.subr.bf16.mxu0 %v10238_v51 }
  0xe5   :  { %8584 = vmatprep.mubr.msk.f32.mxu1 %vm29_vm0, %v10744_v46 }
  0xe6   :  { %8413 = vmatmul.mubr.msk.f32.gmra.mrb[40].mxu0 %vm29_vm0, %v10495_v6  ;;  %v9767_v6 = vmov 0.0|0.0  }
  0xe7   :  { %8415 = vmatprep.mubr.msk.f32.mxu0 %vm29_vm0, %v10498_v8  ;;  %9324 = vmatpush3.bf16.msra.mxu0 %v10238_v51  ;;  %v10981_v8 = vld [vmem:[#allocation2 + $0x288] sm:$0xff] }
  0xe8   :  { %8585 = vmatmul.mubr.msk.f32.gmra.mrb[42].mxu1 %vm29_vm0, %v10746_v52  ;;  %8447 = vmatprep.subr.mxu0 %v10261_v61 }
  0xe9   :  { %8587 = vmatprep.mubr.msk.f32.mxu1 %vm29_vm0, %v10759_v53 }
  0xea   :  { %8416 = vmatmul.mubr.msk.f32.gmra.mrb[42].mxu0 %vm29_vm0, %v10509_v11 }
  0xeb   :  { %8418 = vmatprep.mubr.msk.f32.mxu0 %vm29_vm0, %v10511_v18  ;;  %8448 = vmatpush3.msra.mxu0 %v10261_v61  ;;  %v10983_v18 = vld [vmem:[#allocation2 + $0x290] sm:$0xff] }
  0xec   :  { %8588 = vmatmul.mubr.msk.f32.gmra.mrb[44].mxu1 %vm29_vm0, %v10761_v54  ;;  %9326 = vmatprep.subr.bf16.mxu0 %v10291_v17 }
  0xed   :  { %8590 = vmatprep.mubr.msk.f32.mxu1 %vm29_vm0, %v10771_v60 }
  0xee   :  { %8419 = vmatmul.mubr.msk.f32.gmra.mrb[44].mxu0 %vm29_vm0, %v10521_v19 }
  0xef   :  { %v8223_v20 = vpop.f32.mrb[2].mxu1  ;;  %8421 = vmatprep.mubr.msk.f32.mxu0 %vm29_vm0, %v10523_v22  ;;  %v10993_v22 = vld [vmem:[#allocation2 + $0x298] sm:$0xff] }
  0xf0   :  { %8591 = vmatmul.mubr.msk.f32.gmra.mrb[46].mxu1 %vm29_vm0, %v10774_v10  ;;  %v1400_v63 = vpop.f32.mrb[3].mxu1 }
  0xf1   :  { %8593 = vmatprep.mubr.msk.f32.mxu1 %vm29_vm0, %v10785_v15  ;;  %v8063_v59 = vpop.f32.mrb[8].mxu0 }
  0xf2   :  { %v392_v51 = vpop.f32.mrb[9].mxu0  ;;  %8422 = vmatmul.mubr.msk.f32.gmra.mrb[58].mxu0 %vm29_vm0, %v10533_v27  ;;  %v10995_v27 = vld [vmem:[#allocation2 + $0x2a0] sm:$0xff] }
  0xf3   :  { %8424 = vmatprep.mubr.msk.f32.mxu0 %vm29_vm0, %v10672_v7 }
  0xf4   :  { %8594 = vmatmul.mubr.msk.f32.gmra.mrb[48].mxu1 %vm29_vm0, %v10787_v24 }
  0xf5   :  { %8596 = vmatprep.mubr.msk.f32.mxu1 %vm29_vm0, %v10798_v25 }
  0xf6   :  { %8425 = vmatmul.mubr.msk.f32.gmra.mrb[48].mxu0 %vm29_vm0, %v10826_v34 }
  0xf7   :  { %8427 = vmatprep.mubr.msk.f32.mxu0 %vm29_vm0, %v10834_v47 }
  0xf8   :  { %8597 = vmatmul.mubr.msk.f32.gmra.mrb[54].mxu1 %vm29_vm0, %v10801_v29 }
  0xf9   :  { %8609 = vmatprep.mubr.msk.f32.mxu1 %vm29_vm0, %v10744_v46 }
  0xfa   :  { %8428 = vmatmul.mubr.msk.f32.gmra.mrb[50].mxu0 %vm29_vm0, %v10838_v38 }
  0xfb   :  { %8430 = vmatprep.mubr.msk.f32.mxu0 %vm29_vm0, %v10848_v41 }
  0xfc   :  { %8610 = vmatmul.mubr.msk.f32.vlgmr.msra.gmra.mrb[32].mxu1 %vm29_vm0, %v10746_v52 }
  0xfd   :  { %8612 = vmatprep.mubr.msk.f32.mxu1 %vm29_vm0, %v10759_v53  ;;  %9360 = vmatpush3.bf16.msra.mxu1 %v10291_v17 }
  0xfe   :  { %9362 = vmatprep.subr.bf16.mxu1 %v10418_v42  ;;  %8431 = vmatmul.mubr.msk.f32.gmra.mrb[52].mxu0 %vm29_vm0, %v10852_v55 }
  0xff   :  { %8433 = vmatprep.mubr.msk.f32.mxu0 %vm29_vm0, %v10862_v57 }
 0x100   :  { %8613 = vmatmul.mubr.msk.f32.gmra.mrb[34].mxu1 %vm29_vm0, %v10761_v54 }
 0x101   :  { %8615 = vmatprep.mubr.msk.f32.mxu1 %vm29_vm0, %v10771_v60  ;;  %9364 = vmatpush3.bf16.msra.mxu1 %v10418_v42 }
 0x102   :  { %8647 = vmatprep.subr.mxu1 %v10443_v62  ;;  %8434 = vmatmul.mubr.msk.f32.gmra.mrb[54].mxu0 %vm29_vm0, %v10866_v43 }
 0x103   :  { %v8238_v61 = vpop.f32.mrb[12].mxu1  ;;  %8436 = vmatprep.mubr.msk.f32.mxu0 %vm29_vm0, %v10876_v45 }
 0x104   :  { %8616 = vmatmul.mubr.msk.f32.gmra.mrb[36].mxu1 %vm29_vm0, %v10774_v10  ;;  %v1450_v5 = vpop.f32.mrb[13].mxu1 }
 0x105   :  { %8618 = vmatprep.mubr.msk.f32.mxu1 %vm29_vm0, %v10785_v15  ;;  %8648 = vmatpush3.msra.mxu1 %v10443_v62  ;;  %v8078_v11 = vpop.f32.mrb[18].mxu0 }
 0x106   :  { %9368 = vmatprep.subr.bf16.mxu1 %v9767_v6  ;;  %v442_v19 = vpop.f32.mrb[19].mxu0  ;;  %8437 = vmatmul.mubr.msk.f32.gmra.mrb[60].mxu0 %vm29_vm0, %v10880_v37 }
 0x107   :  { %8449 = vmatprep.mubr.msk.f32.mxu0 %vm29_vm0, %v10672_v7  ;;  %v11257_v19 = vld [vmem:[%s12173_s5] ss:$0 sm:$0xff] }
 0x108   :  { %8619 = vmatmul.mubr.msk.f32.gmra.mrb[38].mxu1 %vm29_vm0, %v10787_v24 }
 0x109   :  { %8621 = vmatprep.mubr.msk.f32.mxu1 %vm29_vm0, %v10798_v25 }
 0x10a   :  { %8450 = vmatmul.mubr.msk.f32.vlgmr.msra.gmra.mrb[38].mxu0 %vm29_vm0, %v10826_v34 }
 0x10b   :  { %9328 = vmatpush3.bf16.msra.mxu0 %v10291_v17  ;;  %8452 = vmatprep.mubr.msk.f32.mxu0 %vm29_vm0, %v10834_v47 }
 0x10c   :  { %8622 = vmatmul.mubr.msk.f32.gmra.mrb[56].mxu1 %vm29_vm0, %v10801_v29  ;;  %9330 = vmatprep.subr.bf16.mxu0 %v10418_v42 }
 0x10d   :  { %8624 = vmatprep.mubr.msk.f32.mxu1 %vm29_vm0, %v10812_v31 }
 0x10e   :  { %8453 = vmatmul.mubr.msk.f32.gmra.mrb[40].mxu0 %vm29_vm0, %v10838_v38 }
 0x10f   :  { %8455 = vmatprep.mubr.msk.f32.mxu0 %vm29_vm0, %v10848_v41  ;;  %9332 = vmatpush3.bf16.msra.mxu0 %v10418_v42  ;;  %v4375_v42 = vld [vmem:[%s12172_s2] sm:$0xff] }
 0x110   :  { %8625 = vmatmul.mubr.msk.f32.gmra.mrb[42].mxu1 %vm29_vm0, %v10981_v8  ;;  %8487 = vmatprep.subr.mxu0 %v10443_v62 }
 0x111   :  { %8627 = vmatprep.mubr.msk.f32.mxu1 %vm29_vm0, %v10983_v18 }
 0x112   :  { %8456 = vmatmul.mubr.msk.f32.gmra.mrb[42].mxu0 %vm29_vm0, %v10852_v55 }
 0x113   :  { %8458 = vmatprep.mubr.msk.f32.mxu0 %vm29_vm0, %v10862_v57  ;;  %8488 = vmatpush3.msra.mxu0 %v10443_v62  ;;  %v11048_v62 = vpack.c.bf16 %v4376_v4, %v4375_v42 }
 0x114   :  { %8628 = vmatmul.mubr.msk.f32.gmra.mrb[44].mxu1 %vm29_vm0, %v10993_v22  ;;  %9365 = vmatprep.subr.bf16.mxu0 %v9767_v6 }
 0x115   :  { %8630 = vmatprep.mubr.msk.f32.mxu1 %vm29_vm0, %v10995_v27 }
 0x116   :  { %8459 = vmatmul.mubr.msk.f32.gmra.mrb[44].mxu0 %vm29_vm0, %v10866_v43 }
 0x117   :  { %v8263_v56 = vpop.f32.mrb[20].mxu1  ;;  %8461 = vmatprep.mubr.msk.f32.mxu0 %vm29_vm0, %v10876_v45 }
 0x118   :  { %8631 = vmatmul.mubr.msk.f32.gmra.mrb[46].mxu1 %vm29_vm0, %v11006_v50  ;;  %v1568_v17 = vpop.f32.mrb[21].mxu1 }
 0x119   :  { %8633 = vmatprep.mubr.msk.f32.mxu1 %vm29_vm0, %v11008_v39  ;;  %v8103_v2 = vpop.f32.mrb[20].mxu0 }
 0x11a   :  { %v560_v9 = vpop.f32.mrb[21].mxu0  ;;  %8462 = vmatmul.mubr.msk.f32.gmra.mrb[62].mxu0 %vm29_vm0, %v10880_v37 }
 0x11b   :  { %8464 = vmatprep.mubr.msk.f32.mxu0 %vm29_vm0, %v10815_v33 }
 0x11c   :  { %8634 = vmatmul.mubr.msk.f32.gmra.mrb[48].mxu1 %vm29_vm0, %v11019_v58 }
 0x11d   :  { %8636 = vmatprep.mubr.msk.f32.mxu1 %vm29_vm0, %v11022_v0 }
 0x11e   :  { %8465 = vmatmul.mubr.msk.f32.gmra.mrb[48].mxu0 %vm29_vm0, %v10674_v12 }
 0x11f   :  { %8467 = vmatprep.mubr.msk.f32.mxu0 %vm29_vm0, %v10684_v16 }
 0x120   :  { %8637 = vmatmul.mubr.msk.f32.gmra.mrb[58].mxu1 %vm29_vm0, %v3654_v1 }
 0x121   :  { %8649 = vmatprep.mubr.msk.f32.mxu1 %vm29_vm0, %v10746_v52  ;;  %v11106_v52 = vpack.c.bf16 %v4379_v30, %v4378_v26 }
 0x122   :  { %8468 = vmatmul.mubr.msk.f32.gmra.mrb[50].mxu0 %vm29_vm0, %v10686_v21 }
 0x123   :  { %8470 = vmatprep.mubr.msk.f32.mxu0 %vm29_vm0, %v10696_v28 }
 0x124   :  { %8650 = vmatmul.mubr.msk.f32.vlgmr.msra.gmra.mrb[32].mxu1 %vm29_vm0, %v10759_v53 }
 0x125   :  { %8652 = vmatprep.mubr.msk.f32.mxu1 %vm29_vm0, %v10761_v54  ;;  %9370 = vmatpush3.bf16.msra.mxu1 %v11048_v62  ;;  %v3924_v54 = vld [vmem:[#allocation2 + $0x2d0] sm:$0xff] }
 0x126   :  { %9374 = vmatprep.subr.bf16.mxu1 %v9767_v6  ;;  %8471 = vmatmul.mubr.msk.f32.gmra.mrb[52].mxu0 %vm29_vm0, %v10699_v35 }
 0x127   :  { %8473 = vmatprep.mubr.msk.f32.mxu0 %vm29_vm0, %v10710_v23 }
 0x128   :  { %8653 = vmatmul.mubr.msk.f32.gmra.mrb[34].mxu1 %vm29_vm0, %v10771_v60  ;;  %v4845_v60 = vld [vmem:[%s12172_s2 + $0x30] sm:$0xff] }
 0x129   :  { %8655 = vmatprep.mubr.msk.f32.mxu1 %vm29_vm0, %v10774_v10  ;;  %v4846_v10 = vld [vmem:[%s12172_s2 + $0x38] sm:$0xff] }
 0x12a   :  { %8474 = vmatmul.mubr.msk.f32.gmra.mrb[54].mxu0 %vm29_vm0, %v10713_v36 }
 0x12b   :  { %v8278_v13 = vpop.f32.mrb[22].mxu1  ;;  %8476 = vmatprep.mubr.msk.f32.mxu0 %vm29_vm0, %v10730_v44 }
 0x12c   :  { %8656 = vmatmul.mubr.msk.f32.gmra.mrb[36].mxu1 %vm29_vm0, %v10785_v15  ;;  %v1618_v14 = vpop.f32.mrb[23].mxu1  ;;  %v11146_v15 = vpack.c.bf16 %v4846_v10, %v4845_v60 }
 0x12d   :  { %8658 = vmatprep.mubr.msk.f32.mxu1 %vm29_vm0, %v10787_v24  ;;  %v8118_v7 = vpop.f32.mrb[22].mxu0 }
 0x12e   :  { %v610_v48 = vpop.f32.mrb[23].mxu0  ;;  %8477 = vmatmul.mubr.msk.f32.gmra.mrb[64].mxu0 %vm29_vm0, %v10733_v32 }
 0x12f   :  { %8489 = vmatprep.mubr.msk.f32.mxu0 %vm29_vm0, %v10826_v34 }
 0x130   :  { %8659 = vmatmul.mubr.msk.f32.gmra.mrb[38].mxu1 %vm29_vm0, %v10798_v25 }
 0x131   :  { %8661 = vmatprep.mubr.msk.f32.mxu1 %vm29_vm0, %v10801_v29 }
 0x132   :  { %8490 = vmatmul.mubr.msk.f32.vlgmr.msra.gmra.mrb[38].mxu0 %vm29_vm0, %v10834_v47 }
 0x133   :  { %8492 = vmatprep.mubr.msk.f32.mxu0 %vm29_vm0, %v10838_v38  ;;  %9367 = vmatpush3.bf16.msra.mxu0 %v11106_v52 }
 0x134   :  { %8662 = vmatmul.mubr.msk.f32.gmra.mrb[60].mxu1 %vm29_vm0, %v10812_v31  ;;  %9371 = vmatprep.subr.bf16.mxu0 %v9767_v6 }
 0x135   :  { %8664 = vmatprep.mubr.msk.f32.mxu1 %vm29_vm0, %v10981_v8 }
 0x136   :  { %8493 = vmatmul.mubr.msk.f32.gmra.mrb[40].mxu0 %vm29_vm0, %v10848_v41 }
 0x137   :  { %8495 = vmatprep.mubr.msk.f32.mxu0 %vm29_vm0, %v10852_v55 }
 0x138   :  { %8665 = vmatmul.mubr.msk.f32.gmra.mrb[42].mxu1 %vm29_vm0, %v10983_v18 }
 0x139   :  { %8667 = vmatprep.mubr.msk.f32.mxu1 %vm29_vm0, %v10993_v22 }
 0x13a   :  { %8496 = vmatmul.mubr.msk.f32.gmra.mrb[42].mxu0 %vm29_vm0, %v10862_v57 }
 0x13b   :  { %8498 = vmatprep.mubr.msk.f32.mxu0 %vm29_vm0, %v10866_v43 }
 0x13c   :  { %8668 = vmatmul.mubr.msk.f32.gmra.mrb[44].mxu1 %vm29_vm0, %v10995_v27 }
 0x13d   :  { %8670 = vmatprep.mubr.msk.f32.mxu1 %vm29_vm0, %v11006_v50 }
 0x13e   :  { %8499 = vmatmul.mubr.msk.f32.gmra.mrb[44].mxu0 %vm29_vm0, %v10876_v45 }
 0x13f   :  { %v8303_v49 = vpop.f32.mrb[24].mxu1  ;;  %8501 = vmatprep.mubr.msk.f32.mxu0 %vm29_vm0, %v10880_v37 }
 0x140   :  { %8671 = vmatmul.mubr.msk.f32.gmra.mrb[46].mxu1 %vm29_vm0, %v11008_v39  ;;  %v1818_v53 = vpop.f32.mrb[25].mxu1 }
 0x141   :  { %8673 = vmatprep.mubr.msk.f32.mxu1 %vm29_vm0, %v11019_v58  ;;  %v8143_v24 = vpop.f32.mrb[24].mxu0 }
 0x142   :  { %v810_v25 = vpop.f32.mrb[25].mxu0  ;;  %8502 = vmatmul.mubr.msk.f32.gmra.mrb[66].mxu0 %vm29_vm0, %v10815_v33 }
 0x143   :  { %8504 = vmatprep.mubr.msk.f32.mxu0 %vm29_vm0, %v10674_v12 }
 0x144   :  { %8674 = vmatmul.mubr.msk.f32.gmra.mrb[48].mxu1 %vm29_vm0, %v11022_v0 }
 0x145   :  { %8676 = vmatprep.mubr.msk.f32.mxu1 %vm29_vm0, %v3654_v1 }
 0x146   :  { %8505 = vmatmul.mubr.msk.f32.gmra.mrb[48].mxu0 %vm29_vm0, %v10684_v16 }
 0x147   :  { %8507 = vmatprep.mubr.msk.f32.mxu0 %vm29_vm0, %v10686_v21 }
 0x148   :  { %8677 = vmatmul.mubr.msk.f32.gmra.mrb[62].mxu1 %vm29_vm0, %v3924_v54 }
 0x149   :  { %8720 = vmatprep.mubr.msk.f32.mxu1 %vm9768_vm1, %v9766_v3 }
 0x14a   :  { %8508 = vmatmul.mubr.msk.f32.gmra.mrb[50].mxu0 %vm29_vm0, %v10696_v28 }
 0x14b   :  { %8510 = vmatprep.mubr.msk.f32.mxu0 %vm29_vm0, %v10699_v35 }
 0x14c   :  { %8721 = vmatmul.mubr.msk.f32.vlgmr.msra.gmra.mrb[64].mxu1 %vm4380_vm2, %v9766_v3 }
 0x14d   :  { %8723 = vmatprep.mubr.msk.f32.mxu1 %vm9768_vm1, %v9766_v3  ;;  %9376 = vmatpush3.bf16.msra.mxu1 %v11146_v15 }
 0x14e   :  { %9380 = vmatprep.subr.bf16.mxu1 %v9767_v6  ;;  %8511 = vmatmul.mubr.msk.f32.gmra.mrb[52].mxu0 %vm29_vm0, %v10710_v23 }
 0x14f   :  { %8513 = vmatprep.mubr.msk.f32.mxu0 %vm29_vm0, %v10713_v36  ;;  %v4668_v36 = vld [vmem:[%s12172_s2 + $0x20] sm:$0xff] }
 0x150   :  { %8724 = vmatmul.mubr.msk.f32.gmra.mrb[66].mxu1 %vm4380_vm2, %v9766_v3 }
 0x151   :  { %8726 = vmatprep.mubr.msk.f32.mxu1 %vm9768_vm1, %v9766_v3 }
 0x152   :  { %8514 = vmatmul.mubr.msk.f32.gmra.mrb[54].mxu0 %vm29_vm0, %v10730_v44  ;;  %v4669_v44 = vld [vmem:[%s12172_s2 + $0x28] sm:$0xff] }
 0x153   :  { %v8318_v12 = vpop.f32.mrb[26].mxu1  ;;  %8516 = vmatprep.mubr.msk.f32.mxu0 %vm29_vm0, %v10733_v32  ;;  %v11216_v34 = vpack.c.bf16 %v4669_v44, %v4668_v36 }
 0x154   :  { %v1868_v29 = vpop.f32.mrb[27].mxu1  ;;  %8727 = vmatmul.mubr.msk.f32.gmra.mrb[68].mxu1 %vm4380_vm2, %v9766_v3 }
 0x155   :  { %8729 = vmatprep.mubr.msk.f32.mxu1 %vm9768_vm1, %v9766_v3  ;;  %v8158_v23 = vpop.f32.mrb[26].mxu0 }
 0x156   :  { %v860_v33 = vpop.f32.mrb[27].mxu0  ;;  %8517 = vmatmul.mubr.msk.f32.gmra.mrb[68].mxu0 %vm29_vm0, %v10744_v46 }
 0x157   :  { %v11174_v16 = vpop.f32.mrb[14].mxu1  ;;  %8683 = vmatprep.mubr.msk.f32.mxu0 %vm9768_vm1, %v9766_v3 }
 0x158   :  { %v11178_v21 = vpop.f32.mrb[15].mxu1  ;;  %8730 = vmatmul.mubr.msk.f32.gmra.mrb[70].mxu1 %vm4380_vm2, %v9766_v3 }
 0x159   :  { %8732 = vmatprep.mubr.msk.f32.mxu1 %vm9768_vm1, %v9766_v3  ;;  %v8171_v47 = vpop.f32.mrb[0].mxu0 }
 0x15a   :  { %v1040_v41 = vpop.f32.mrb[1].mxu0  ;;  %8684 = vmatmul.mubr.msk.f32.vlgmr.msra.gmra.mrb[70].mxu0 %vm4380_vm2, %v9766_v3  ;;  %v1164_v50 = vadd.f32 %v8171_v47, %v11257_v19 }
 0x15b   :  { %v11186_v28 = vpop.f32.mrb[16].mxu1  ;;  %8686 = vmatprep.mubr.msk.f32.mxu0 %vm9768_vm1, %v9766_v3  ;;  %9373 = vmatpush3.bf16.msra.mxu0 %v11216_v34  ;;  %v1163_v0 = vadd.f32 %v11257_v19, %v1040_v41 }
 0x15c   :  { %v11190_v35 = vpop.f32.mrb[17].mxu1  ;;  %8733 = vmatmul.mubr.msk.f32.gmra.mrb[72].mxu1 %vm4380_vm2, %v9766_v3  ;;  %9377 = vmatprep.subr.bf16.mxu0 %v9767_v6 }
 0x15d   :  { %8735 = vmatprep.mubr.msk.f32.mxu1 %vm9768_vm1, %v9766_v3  ;;  %v8174_v55 = vpop.f32.mrb[2].mxu0 }
 0x15e   :  { %v1050_v57 = vpop.f32.mrb[3].mxu0  ;;  %8687 = vmatmul.mubr.msk.f32.gmra.mrb[72].mxu0 %vm4380_vm2, %v9766_v3  ;;  %v1166_v30 = vadd.f32 %v8174_v55, %v11257_v19 }
 0x15f   :  { %v11204_v31 = vpop.f32.mrb[18].mxu1  ;;  %8689 = vmatprep.mubr.msk.f32.mxu0 %vm9768_vm1, %v9766_v3  ;;  %v1165_v60 = vadd.f32 %v11257_v19, %v1050_v57 }
 0x160   :  { %v11208_v32 = vpop.f32.mrb[19].mxu1  ;;  %8736 = vmatmul.mubr.msk.f32.gmra.mrb[74].mxu1 %vm4380_vm2, %v9766_v3 }
 0x161   :  { %8738 = vmatprep.mubr.msk.f32.mxu1 %vm9768_vm1, %v9766_v3  ;;  %v8177_v37 = vpop.f32.mrb[4].mxu0 }
 0x162   :  { %v1060_v20 = vpop.f32.mrb[5].mxu0  ;;  %8690 = vmatmul.mubr.msk.f32.gmra.mrb[74].mxu0 %vm4380_vm2, %v9766_v3  ;;  %v1168_v44 = vadd.f32 %v8177_v37, %v11257_v19 }
 0x163   :  { %v8340_v38 = vpop.f32.mrb[0].mxu1  ;;  %8692 = vmatprep.mubr.msk.f32.mxu0 %vm9768_vm1, %v9766_v3 }
 0x164   :  { %v2078_v46 = vpop.f32.mrb[1].mxu1  ;;  %8739 = vmatmul.mubr.msk.f32.gmra.mrb[76].mxu1 %vm4380_vm2, %v9766_v3  ;;  %v2174_v58 = vadd.f32 %v8340_v38, %v11257_v19  ;;  %v1167_v38 = vadd.f32 %v11257_v19, %v1060_v20 }
 0x165   :  { %8741 = vmatprep.mubr.msk.f32.mxu1 %vm9768_vm1, %v9766_v3  ;;  %v8180_v59 = vpop.f32.mrb[6].mxu0  ;;  %v2173_v2 = vadd.f32 %v11257_v19, %v2078_v46 }
 0x166   :  { %v11242_v61 = vpop.f32.mrb[7].mxu0  ;;  %8693 = vmatmul.mubr.msk.f32.gmra.mrb[76].mxu0 %vm4380_vm2, %v9766_v3 }
 0x167   :  { %v8343_v43 = vpop.f32.mrb[28].mxu1  ;;  %8695 = vmatprep.mubr.msk.f32.mxu0 %vm9768_vm1, %v9766_v3  ;;  %v1169_v20 = vadd.f32 %v11257_v19, %v11242_v61 }
 0x168   :  { %v2088_v45 = vpop.f32.mrb[29].mxu1 }
 0x169   :  { %v8183_v8 = vpop.f32.mrb[28].mxu0  ;;  %v1170_v45 = vadd.f32 %v8180_v59, %v11257_v19 }
 0x16a   :  { %v1080_v18 = vpop.f32.mrb[29].mxu0  ;;  %8696 = vmatmul.mubr.msk.f32.gmra.mrb[78].mxu0 %vm4380_vm2, %v9766_v3 }
 0x16b   :  { %v11232_v40 = vpop.f32.mrb[4].mxu1  ;;  %8698 = vmatprep.mubr.msk.f32.mxu0 %vm9768_vm1, %v9766_v3 }
 0x16c   :  { %v11236_v63 = vpop.f32.mrb[5].mxu1 }
 0x16d   :  { %v8186_v27 = vpop.f32.mrb[10].mxu0 }
 0x16e   :  { %v1174_v39 = vadd.f32 %v8186_v27, %v11257_v19  ;;  %v1090_v17 = vpop.f32.mrb[11].mxu0  ;;  %8699 = vmatmul.mubr.msk.f32.gmra.mrb[80].mxu0 %vm4380_vm2, %v9766_v3 }
 0x16f   :  { %v11240_v51 = vpop.f32.mrb[6].mxu1  ;;  %v1173_v42 = vadd.f32 %v11257_v19, %v1090_v17  ;;  %8701 = vmatprep.mubr.msk.f32.mxu0 %vm9768_vm1, %v9766_v3 }
 0x170   :  { %v11246_v5 = vpop.f32.mrb[7].mxu1  ;;  %v4252_v9 = vmax.f32 %v1164_v50, %v1174_v39 }
 0x171   :  { %v4251_v7 = vmax.f32 %v1163_v0, %v1173_v42  ;;  %v8189_v26 = vpop.f32.mrb[12].mxu0  ;;  %v2178_v42 = vadd.f32 %v11232_v40, %v11257_v19 }
 0x172   :  { %v1176_v49 = vadd.f32 %v8189_v26, %v11257_v19  ;;  %v1100_v53 = vpop.f32.mrb[13].mxu0 }
 0x173   :  { %v11250_v11 = vpop.f32.mrb[8].mxu1  ;;  %v11278_v10 = vmax.f32 %v4251_v7, %v4252_v9  ;;  %v1175_v24 = vadd.f32 %v11257_v19, %v1100_v53 }
 0x174   :  { %v11259_v22 = vpop.f32.mrb[9].mxu1  ;;  %v4254_v29 = vmax.f32 %v1166_v30, %v1176_v49  ;;  %v2180_v30 = vadd.f32 %v11240_v51, %v11257_v19 }
 0x175   :  { %v4253_v23 = vmax.f32 %v1165_v60, %v1175_v24  ;;  %v8192_v36 = vpop.f32.mrb[14].mxu0  ;;  %8702 = vmatmul.mubr.msk.f32.gmra.mrb[82].mxu0 %vm4380_vm2, %v11278_v10  ;;  %8742 = vmatmul.mubr.msk.f32.gmra.mrb[78].mxu1 %vm4380_vm2, %v11278_v10  ;;  %v2182_v24 = vadd.f32 %v11250_v11, %v11257_v19 }
 0x176   :  { %v1178_v33 = vadd.f32 %v8192_v36, %v11257_v19  ;;  %v1110_v47 = vpop.f32.mrb[15].mxu0  ;;  %8704 = vmatprep.mubr.msk.f32.mxu0 %vm9768_vm1, %v9766_v3  ;;  %8744 = vmatprep.mubr.msk.f32.mxu1 %vm9768_vm1, %v9766_v3 }
 0x177   :  { %v8355_v56 = vpop.f32.mrb[10].mxu1  ;;  %v11294_v41 = vmax.f32 %v4253_v23, %v4254_v29  ;;  %v1177_v46 = vadd.f32 %v11257_v19, %v1110_v47 }
 0x178   :  { %v2184_v1 = vadd.f32 %v8355_v56, %v11257_v19  ;;  %v2128_v4 = vpop.f32.mrb[11].mxu1  ;;  %v4256_v55 = vmax.f32 %v1168_v44, %v1178_v33 }
 0x179   :  { %v2183_v13 = vadd.f32 %v11257_v19, %v2128_v4  ;;  %v4255_v57 = vmax.f32 %v1167_v38, %v1177_v46  ;;  %v8195_v43 = vpop.f32.mrb[16].mxu0  ;;  %8705 = vmatmul.mubr.msk.f32.gmra.mrb[84].mxu0 %vm4380_vm2, %v11294_v41  ;;  %8745 = vmatmul.mubr.msk.f32.gmra.mrb[80].mxu1 %vm4380_vm2, %v11294_v41 }
 0x17a   :  { %v4290_v14 = vmax.f32 %v2174_v58, %v2184_v1  ;;  %v1180_v37 = vadd.f32 %v8195_v43, %v11257_v19  ;;  %v1120_v8 = vpop.f32.mrb[17].mxu0  ;;  %8707 = vmatprep.mubr.msk.f32.mxu0 %vm9768_vm1, %v9766_v3  ;;  %8747 = vmatprep.mubr.msk.f32.mxu1 %vm9768_vm1, %v9766_v3 }
 0x17b   :  { %v4289_v48 = vmax.f32 %v2173_v2, %v2183_v13  ;;  %v8358_v54 = vpop.f32.mrb[30].mxu1  ;;  %v11309_v18 = vmax.f32 %v4255_v57, %v4256_v55  ;;  %v1179_v27 = vadd.f32 %v11257_v19, %v1120_v8  ;;  %v2177_v2 = vadd.f32 %v11257_v19, %v11236_v63 }
 0x17c   :  { %v2138_v25 = vpop.f32.mrb[31].mxu1  ;;  %v4258_v50 = vmax.f32 %v1170_v45, %v1180_v37 }
 0x17d   :  { %v11281_v12 = vmax.f32 %v4289_v48, %v4290_v14  ;;  %v4257_v39 = vmax.f32 %v1169_v20, %v1179_v27  ;;  %v8198_v56 = vpop.f32.mrb[30].mxu0  ;;  %8708 = vmatmul.mubr.msk.f32.gmra.mrb[86].mxu0 %vm4380_vm2, %v11309_v18  ;;  %8748 = vmatmul.mubr.msk.f32.gmra.mrb[82].mxu1 %vm4380_vm2, %v11309_v18 }
 0x17e   :  { %v1130_v59 = vpop.f32.mrb[31].mxu0  ;;  %8710 = vmatprep.mubr.msk.f32.mxu0 %vm9768_vm1, %v9766_v3  ;;  %8750 = vmatprep.mubr.msk.f32.mxu1 %vm9768_vm1, %v9766_v3 }
 0x17f   :  { %v11320_v61 = vmax.f32 %v4257_v39, %v4258_v50  ;;  %v5761_v59 = vld [vmem:[%s12174_s3 + $0x20] sm:$0xff] }
 0x181   :  { %v8211_v17 = vpop.f32.mrb[32].mxu0  ;;  %8711 = vmatmul.mubr.msk.f32.gmra.mrb[88].mxu0 %vm4380_vm2, %v11320_v61  ;;  %8751 = vmatmul.mubr.msk.f32.gmra.mrb[84].mxu1 %vm4380_vm2, %v11320_v61 }
 0x182   :  { %v9523_v58 = vadd.f32 %v11174_v16, %v8211_v17  ;;  %v1360_v0 = vpop.f32.mrb[33].mxu0  ;;  %8713 = vmatprep.mubr.msk.f32.mxu0 %vm9768_vm1, %v9766_v3  ;;  %8794 = vmatprep.mubr.msk.f32.mxu1 %vm9768_vm1, %v9766_v3 }
 0x183   :  { %v9524_v1 = vadd.f32 %v11178_v21, %v1360_v0 }
 0x184   :  { %v2168_v4 = vadd.f32 %v9523_v58, %v11257_v19 }
 0x185   :  { %v2167_v9 = vadd.f32 %v9524_v1, %v11257_v19  ;;  %v8214_v16 = vpop.f32.mrb[34].mxu0  ;;  %8714 = vmatmul.mubr.msk.f32.gmra.mrb[90].mxu0 %vm4380_vm2, %v9766_v3  ;;  %8795 = vmatmul.mubr.msk.f32.vlgmr.msra.gmra.mrb[86].mxu1 %vm4380_vm2, %v11278_v10 }
 0x186   :  { %v4284_v13 = vmax.f32 %v2168_v4, %v2178_v42  ;;  %v9525_v21 = vadd.f32 %v11186_v28, %v8214_v16  ;;  %v1370_v14 = vpop.f32.mrb[35].mxu0  ;;  %8757 = vmatprep.mubr.msk.f32.mxu0 %vm9768_vm1, %v9766_v3  ;;  %8797 = vmatprep.mubr.msk.f32.mxu1 %vm9768_vm1, %v9766_v3  ;;  %v2179_v28 = vadd.f32 %v11257_v19, %v11246_v5 }
 0x187   :  { %v4283_v63 = vmax.f32 %v2167_v9, %v2177_v2  ;;  %v9526_v7 = vadd.f32 %v11190_v35, %v1370_v14  ;;  %9382 = vmatpush3.bf16.msra.mxu1 %v11048_v62 }
 0x188   :  { %v2170_v48 = vadd.f32 %v9525_v21, %v11257_v19  ;;  %9386 = vmatprep.subr.bf16.mxu1 %v9767_v6 }
 0x189   :  { %v11355_v49 = vmax.f32 %v4283_v63, %v4284_v13  ;;  %v2169_v53 = vadd.f32 %v9526_v7, %v11257_v19  ;;  %v8217_v54 = vpop.f32.mrb[36].mxu0  ;;  %8758 = vmatmul.mubr.msk.f32.vlgmr.msra.gmra.mrb[92].mxu0 %vm4380_vm2, %v9766_v3  ;;  %8798 = vmatmul.mubr.msk.f32.gmra.mrb[88].mxu1 %vm4380_vm2, %v11294_v41 }
 0x18a   :  { %v4286_v62 = vmax.f32 %v2170_v48, %v2180_v30  ;;  %v9527_v35 = vadd.f32 %v11204_v31, %v8217_v54  ;;  %v1380_v51 = vpop.f32.mrb[37].mxu0  ;;  %8760 = vmatprep.mubr.msk.f32.mxu0 %vm9768_vm1, %v9766_v3  ;;  %8800 = vmatprep.mubr.msk.f32.mxu1 %vm9768_vm1, %v9766_v3  ;;  %v2181_v31 = vadd.f32 %v11257_v19, %v11259_v22 }
 0x18b   :  { %v4285_v5 = vmax.f32 %v2169_v53, %v2179_v28  ;;  %v9528_v60 = vadd.f32 %v11208_v32, %v1380_v51  ;;  %9379 = vmatpush3.bf16.msra.mxu0 %v11106_v52 }
 0x18c   :  { %v2172_v25 = vadd.f32 %v9527_v35, %v11257_v19  ;;  %9383 = vmatprep.subr.bf16.mxu0 %v9767_v6 }
 0x18d   :  { %v11375_v29 = vmax.f32 %v4285_v5, %v4286_v62  ;;  %v2171_v23 = vadd.f32 %v9528_v60, %v11257_v19  ;;  %8761 = vmatmul.mubr.msk.f32.gmra.mrb[94].mxu0 %vm4380_vm2, %v11278_v10  ;;  %8801 = vmatmul.mubr.msk.f32.gmra.mrb[90].mxu1 %vm4380_vm2, %v11309_v18 }
 0x18e   :  { %v4288_v52 = vmax.f32 %v2172_v25, %v2182_v24  ;;  %8763 = vmatprep.mubr.msk.f32.mxu0 %vm9768_vm1, %v9766_v3  ;;  %8803 = vmatprep.mubr.msk.f32.mxu1 %vm9768_vm1, %v9766_v3 }
 0x18f   :  { %v8543_v40 = vpop.f32.mrb[40].mxu1  ;;  %v4287_v32 = vmax.f32 %v2171_v23, %v2181_v31 }
 0x190   :  { %v3408_v26 = vpop.f32.mrb[41].mxu1 }
 0x191   :  { %v4295_v11 = vmax.f32 %v4287_v32, %v4288_v52  ;;  %8764 = vmatmul.mubr.msk.f32.gmra.mrb[96].mxu0 %vm4380_vm2, %v11294_v41  ;;  %8804 = vmatmul.mubr.msk.f32.gmra.mrb[92].mxu1 %vm4380_vm2, %v11320_v61 }
 0x192   :  { %8766 = vmatprep.mubr.msk.f32.mxu0 %vm9768_vm1, %v9766_v3  ;;  %8806 = vmatprep.mubr.msk.f32.mxu1 %vm9768_vm1, %v9766_v3 }
 0x195   :  { %8767 = vmatmul.mubr.msk.f32.gmra.mrb[98].mxu0 %vm4380_vm2, %v11309_v18  ;;  %8807 = vmatmul.mubr.msk.f32.gmra.mrb[94].mxu1 %vm4380_vm2, %v9766_v3 }
 0x196   :  { %8769 = vmatprep.mubr.msk.f32.mxu0 %vm9768_vm1, %v9766_v3  ;;  %8809 = vmatprep.mubr.msk.f32.mxu1 %vm9768_vm1, %v9766_v3 }
 0x199   :  { %8770 = vmatmul.mubr.msk.f32.gmra.mrb[100].mxu0 %vm4380_vm2, %v11320_v61  ;;  %8810 = vmatmul.mubr.msk.f32.gmra.mrb[96].mxu1 %vm4380_vm2, %v9766_v3  ;;  %v5762_v61 = vld [vmem:[%s12174_s3 + $0x28] sm:$0xff] }
 0x19a   :  { %8772 = vmatprep.mubr.msk.f32.mxu0 %vm9768_vm1, %v9766_v3  ;;  %8812 = vmatprep.mubr.msk.f32.mxu1 %vm9768_vm1, %v9766_v3  ;;  %v11519_v17 = vpack.c.bf16 %v5762_v61, %v5761_v59 }
 0x19d   :  { %v8383_v36 = vpop.f32.mrb[46].mxu0  ;;  %8773 = vmatmul.mubr.msk.f32.gmra.mrb[102].mxu0 %vm4380_vm2, %v9766_v3  ;;  %8813 = vmatmul.mubr.msk.f32.gmra.mrb[98].mxu1 %vm4380_vm2, %v11355_v49 }
 0x19e   :  { %v2404_v44 = vpop.f32.mrb[47].mxu0  ;;  %8775 = vmatprep.mubr.msk.f32.mxu0 %vm9768_vm1, %v9766_v3  ;;  %8815 = vmatprep.mubr.msk.f32.mxu1 %vm9768_vm1, %v9766_v3 }
 0x1a1   :  { %8776 = vmatmul.mubr.msk.f32.gmra.mrb[104].mxu0 %vm4380_vm2, %v9766_v3  ;;  %8816 = vmatmul.mubr.msk.f32.gmra.mrb[100].mxu1 %vm4380_vm2, %v11375_v29 }
 0x1a2   :  { %8778 = vmatprep.mubr.msk.f32.mxu0 %vm9768_vm1, %v9766_v3  ;;  %8818 = vmatprep.mubr.msk.f32.mxu1 %vm9768_vm1, %v9766_v3 }
 0x1a3   :  { %v8558_v22 = vpop.f32.mrb[50].mxu1 }
 0x1a4   :  { %v3458_v10 = vpop.f32.mrb[51].mxu1 }
 0x1a5   :  { %8779 = vmatmul.mubr.msk.f32.gmra.mrb[106].mxu0 %vm4380_vm2, %v11355_v49  ;;  %8819 = vmatmul.mubr.msk.f32.gmra.mrb[102].mxu1 %vm4380_vm2, %v4295_v11 }
 0x1a6   :  { %8781 = vmatprep.mubr.msk.f32.mxu0 %vm9768_vm1, %v9766_v3  ;;  %8821 = vmatprep.mubr.msk.f32.mxu1 %vm9768_vm1, %v9766_v3 }
 0x1a9   :  { %8782 = vmatmul.mubr.msk.f32.gmra.mrb[108].mxu0 %vm4380_vm2, %v11375_v29  ;;  %8822 = vmatmul.mubr.msk.f32.gmra.mrb[104].mxu1 %vm4380_vm2, %v11281_v12 }
 0x1aa   :  { %8784 = vmatprep.mubr.msk.f32.mxu0 %vm9768_vm1, %v9766_v3  ;;  %8824 = vmatprep.mubr.msk.f32.mxu1 %vm9768_vm1, %v9766_v3 }
 0x1ad   :  { %8785 = vmatmul.mubr.msk.f32.gmra.mrb[110].mxu0 %vm4380_vm2, %v4295_v11  ;;  %8825 = vmatmul.mubr.msk.f32.gmra.mrb[106].mxu1 %vm4380_vm2, %v9766_v3 }
 0x1ae   :  { %8787 = vmatprep.mubr.msk.f32.mxu0 %vm9768_vm1, %v9766_v3  ;;  %8868 = vmatprep.mubr.msk.f32.mxu1 %vm9768_vm1, %v9766_v3 }
 0x1b1   :  { %v8398_v38 = vpop.f32.mrb[56].mxu0  ;;  %8788 = vmatmul.mubr.msk.f32.gmra.mrb[112].mxu0 %vm4380_vm2, %v11281_v12  ;;  %8869 = vmatmul.mubr.msk.f32.vlgmr.msra.gmra.mrb[108].mxu1 %vm4380_vm2, %v9766_v3 }
 0x1b2   :  { %v2454_v41 = vpop.f32.mrb[57].mxu0  ;;  %8831 = vmatprep.mubr.msk.f32.mxu0 %vm9768_vm1, %v9766_v3  ;;  %8871 = vmatprep.mubr.msk.f32.mxu1 %vm9768_vm1, %v9766_v3 }
 0x1b3   :  { %9388 = vmatpush3.bf16.msra.mxu1 %v11146_v15 }
 0x1b4   :  { %9421 = vmatprep.subr.bf16.mxu1 %v9767_v6 }
 0x1b5   :  { %8832 = vmatmul.mubr.msk.f32.vlgmr.msra.gmra.mrb[114].mxu0 %vm4380_vm2, %v9766_v3  ;;  %8872 = vmatmul.mubr.msk.f32.gmra.mrb[110].mxu1 %vm4380_vm2, %v9766_v3 }
 0x1b6   :  { %8834 = vmatprep.mubr.msk.f32.mxu0 %vm9768_vm1, %v9766_v3  ;;  %8874 = vmatprep.mubr.msk.f32.mxu1 %vm9768_vm1, %v9766_v3 }
 0x1b7   :  { %v8583_v33 = vpop.f32.mrb[52].mxu1  ;;  %9385 = vmatpush3.bf16.msra.mxu0 %v11216_v34 }
 0x1b8   :  { %v3576_v47 = vpop.f32.mrb[53].mxu1  ;;  %9390 = vmatprep.subr.bf16.mxu0 %v11519_v17 }
 0x1b9   :  { %8835 = vmatmul.mubr.msk.f32.gmra.mrb[116].mxu0 %vm4380_vm2, %v11355_v49  ;;  %8875 = vmatmul.mubr.msk.f32.gmra.mrb[112].mxu1 %vm4380_vm2, %v11355_v49 }
 0x1ba   :  { %8837 = vmatprep.mubr.msk.f32.mxu0 %vm9768_vm1, %v9766_v3  ;;  %8877 = vmatprep.mubr.msk.f32.mxu1 %vm9768_vm1, %v9766_v3 }
 0x1bd   :  { %8838 = vmatmul.mubr.msk.f32.gmra.mrb[118].mxu0 %vm4380_vm2, %v11375_v29  ;;  %8878 = vmatmul.mubr.msk.f32.gmra.mrb[114].mxu1 %vm4380_vm2, %v11375_v29 }
 0x1be   :  { %8840 = vmatprep.mubr.msk.f32.mxu0 %vm9768_vm1, %v9766_v3  ;;  %8880 = vmatprep.mubr.msk.f32.mxu1 %vm9768_vm1, %v9766_v3 }
 0x1c1   :  { %8841 = vmatmul.mubr.msk.f32.gmra.mrb[120].mxu0 %vm4380_vm2, %v4295_v11  ;;  %8881 = vmatmul.mubr.msk.f32.gmra.mrb[116].mxu1 %vm4380_vm2, %v4295_v11 }
 0x1c2   :  { %8843 = vmatprep.mubr.msk.f32.mxu0 %vm9768_vm1, %v9766_v3  ;;  %8883 = vmatprep.mubr.msk.f32.mxu1 %vm9768_vm1, %v9766_v3 }
 0x1c5   :  { %v8423_v46 = vpop.f32.mrb[58].mxu0  ;;  %8844 = vmatmul.mubr.msk.f32.gmra.mrb[122].mxu0 %vm4380_vm2, %v11281_v12  ;;  %8884 = vmatmul.mubr.msk.f32.gmra.mrb[118].mxu1 %vm4380_vm2, %v11281_v12 }
 0x1c6   :  { %v2572_v55 = vpop.f32.mrb[59].mxu0  ;;  %8846 = vmatprep.mubr.msk.f32.mxu0 %vm9768_vm1, %v9766_v3  ;;  %8886 = vmatprep.mubr.msk.f32.mxu1 %vm9768_vm1, %v9766_v3 }
 0x1c9   :  { %8847 = vmatmul.mubr.msk.f32.gmra.mrb[124].mxu0 %vm4380_vm2, %v9766_v3  ;;  %8887 = vmatmul.mubr.msk.f32.gmra.mrb[120].mxu1 %vm4380_vm2, %v9766_v3 }
 0x1ca   :  { %8849 = vmatprep.mubr.msk.f32.mxu0 %vm9768_vm1, %v9766_v3  ;;  %8889 = vmatprep.mubr.msk.f32.mxu1 %vm9768_vm1, %v9766_v3 }
 0x1cb   :  { %v8598_v15 = vpop.f32.mrb[54].mxu1 }
 0x1cc   :  { %v3626_v34 = vpop.f32.mrb[55].mxu1 }
 0x1cd   :  { %8850 = vmatmul.mubr.msk.f32.gmra.mrb[126].mxu0 %vm4380_vm2, %v9766_v3  ;;  %8890 = vmatmul.mubr.msk.f32.gmra.mrb[122].mxu1 %vm4380_vm2, %v9766_v3 }
 0x1ce   :  { %8852 = vmatprep.mubr.msk.f32.mxu0 %vm9768_vm1, %v9766_v3  ;;  %8892 = vmatprep.mubr.msk.f32.mxu1 %vm9768_vm1, %v9766_v3 }
 0x1d9   :  { %v8438_v43 = vpop.f32.mrb[60].mxu0 }
 0x1da   :  { %v2622_v45 = vpop.f32.mrb[61].mxu0 }
 0x1df   :  { %v8623_v12 = vpop.f32.mrb[56].mxu1 }
 0x1e0   :  { %v3826_v57 = vpop.f32.mrb[57].mxu1 }
 0x1ed   :  { %v8463_v20 = vpop.f32.mrb[62].mxu0 }
 0x1ee   :  { %v2822_v27 = vpop.f32.mrb[63].mxu0 }
 0x1f3   :  { %v8638_v37 = vpop.f32.mrb[58].mxu1 }
 0x1f4   :  { %v3876_v8 = vpop.f32.mrb[59].mxu1 }
 0x1f7   :  { %v8651_v18 = vpop.f32.mrb[32].mxu1 }
 0x1f8   :  { %v4056_v50 = vpop.f32.mrb[33].mxu1  ;;  %v4176_v21 = vadd.f32 %v8651_v18, %v11257_v19 }
 0x1f9   :  { %v4175_v63 = vadd.f32 %v11257_v19, %v4056_v50 }
 0x1fb   :  { %v8654_v39 = vpop.f32.mrb[34].mxu1 }
 0x1fc   :  { %v4066_v56 = vpop.f32.mrb[35].mxu1  ;;  %v4178_v53 = vadd.f32 %v8654_v39, %v11257_v19 }
 0x1fd   :  { %v4177_v35 = vadd.f32 %v11257_v19, %v4066_v56 }
 0x1ff   :  { %v8657_v58 = vpop.f32.mrb[36].mxu1 }
 0x200   :  { %v4076_v0 = vpop.f32.mrb[37].mxu1  ;;  %v4180_v23 = vadd.f32 %v8657_v58, %v11257_v19 }
 0x201   :  { %v8478_v9 = vpop.f32.mrb[64].mxu0  ;;  %v4179_v11 = vadd.f32 %v11257_v19, %v4076_v0 }
 0x202   :  { %v2872_v13 = vpop.f32.mrb[65].mxu0 }
 0x203   :  { %v8660_v1 = vpop.f32.mrb[38].mxu1 }
 0x204   :  { %v4086_v42 = vpop.f32.mrb[39].mxu1  ;;  %v4182_v41 = vadd.f32 %v8660_v1, %v11257_v19 }
 0x205   :  { %v8491_v30 = vpop.f32.mrb[38].mxu0  ;;  %v4181_v46 = vadd.f32 %v11257_v19, %v4086_v42 }
 0x206   :  { %v3052_v49 = vpop.f32.mrb[39].mxu0  ;;  %v3172_v61 = vadd.f32 %v8491_v30, %v11257_v19 }
 0x207   :  { %v8663_v4 = vpop.f32.mrb[60].mxu1  ;;  %v3171_v42 = vadd.f32 %v11257_v19, %v3052_v49 }
 0x208   :  { %v4096_v2 = vpop.f32.mrb[61].mxu1 }
 0x209   :  { %v8494_v24 = vpop.f32.mrb[40].mxu0 }
 0x20a   :  { %v3062_v29 = vpop.f32.mrb[41].mxu0 }
 0x20b   :  { %v8666_v16 = vpop.f32.mrb[42].mxu1 }
 0x20c   :  { %v4186_v14 = vadd.f32 %v8666_v16, %v11257_v19  ;;  %v4106_v40 = vpop.f32.mrb[43].mxu1 }
 0x20d   :  { %v4185_v7 = vadd.f32 %v11257_v19, %v4106_v40  ;;  %v8497_v44 = vpop.f32.mrb[42].mxu0 }
 0x20e   :  { %v4348_v26 = vmax.f32 %v4176_v21, %v4186_v14  ;;  %v3072_v38 = vpop.f32.mrb[43].mxu0  ;;  %v3174_v21 = vadd.f32 %v8494_v24, %v11257_v19 }
 0x20f   :  { %v4347_v48 = vmax.f32 %v4175_v63, %v4185_v7  ;;  %v8669_v28 = vpop.f32.mrb[44].mxu1  ;;  %v3173_v7 = vadd.f32 %v11257_v19, %v3062_v29 }
 0x210   :  { %v4188_v54 = vadd.f32 %v8669_v28, %v11257_v19  ;;  %v4116_v62 = vpop.f32.mrb[45].mxu1 }
 0x211   :  { %v11529_v51 = vmax.f32 %v4347_v48, %v4348_v26  ;;  %v4187_v5 = vadd.f32 %v11257_v19, %v4116_v62  ;;  %v8500_v43 = vpop.f32.mrb[44].mxu0 }
 0x212   :  { %v4350_v60 = vmax.f32 %v4178_v53, %v4188_v54  ;;  %v3082_v37 = vpop.f32.mrb[45].mxu0  ;;  %v3176_v54 = vadd.f32 %v8497_v44, %v11257_v19 }
 0x213   :  { %v4349_v25 = vmax.f32 %v4177_v35, %v4187_v5  ;;  %v8672_v31 = vpop.f32.mrb[46].mxu1  ;;  %v3177_v44 = vadd.f32 %v11257_v19, %v3082_v37  ;;  %v5764_v37 = vld [vmem:[%s12174_s3 + $0x38] sm:$0xff] }
 0x214   :  { %v4190_v52 = vadd.f32 %v8672_v31, %v11257_v19  ;;  %v4126_v32 = vpop.f32.mrb[47].mxu1 }
 0x215   :  { %v11535_v22 = vmax.f32 %v4349_v25, %v4350_v60  ;;  %v4189_v10 = vadd.f32 %v11257_v19, %v4126_v32  ;;  %v8503_v27 = vpop.f32.mrb[66].mxu0  ;;  %v3175_v60 = vadd.f32 %v11257_v19, %v3072_v38  ;;  %v3178_v32 = vadd.f32 %v8500_v43, %v11257_v19 }
 0x216   :  { %v4352_v36 = vmax.f32 %v4180_v23, %v4190_v52  ;;  %v3092_v50 = vpop.f32.mrb[67].mxu0 }
 0x217   :  { %v4351_v33 = vmax.f32 %v4179_v11, %v4189_v10  ;;  %v8675_v47 = vpop.f32.mrb[48].mxu1 }
 0x218   :  { %v4192_v15 = vadd.f32 %v8675_v47, %v11257_v19  ;;  %v4136_v34 = vpop.f32.mrb[49].mxu1 }
 0x219   :  { %v11541_v55 = vmax.f32 %v4351_v33, %v4352_v36  ;;  %v4191_v12 = vadd.f32 %v11257_v19, %v4136_v34  ;;  %v8506_v59 = vpop.f32.mrb[48].mxu0 }
 0x21a   :  { %v4354_v57 = vmax.f32 %v4182_v41, %v4192_v15  ;;  %v3182_v58 = vadd.f32 %v8506_v59, %v11257_v19  ;;  %v3102_v0 = vpop.f32.mrb[49].mxu0 }
 0x21b   :  { %v4353_v45 = vmax.f32 %v4181_v46, %v4191_v12  ;;  %v8678_v8 = vpop.f32.mrb[62].mxu1  ;;  %v3181_v4 = vadd.f32 %v11257_v19, %v3102_v0 }
 0x21c   :  { %v4146_v20 = vpop.f32.mrb[63].mxu1  ;;  %v4316_v9 = vmax.f32 %v3172_v61, %v3182_v58  ;;  %v5756_v61 = vld [vmem:[%s12174_s3] sm:$0xff] }
 0x21d   :  { %v11544_v18 = vmax.f32 %v4353_v45, %v4354_v57  ;;  %v4315_v16 = vmax.f32 %v3171_v42, %v3181_v4  ;;  %v8509_v13 = vpop.f32.mrb[50].mxu0  ;;  %v5763_v45 = vld [vmem:[%s12174_s3 + $0x30] sm:$0xff] }
 0x21e   :  { %v3184_v14 = vadd.f32 %v8509_v13, %v11257_v19  ;;  %v3112_v40 = vpop.f32.mrb[51].mxu0 }
 0x21f   :  { %v11546_v39 = vpop.f32.mrb[64].mxu1  ;;  %v11559_v26 = vmax.f32 %v4315_v16, %v4316_v9  ;;  %v3183_v30 = vadd.f32 %v11257_v19, %v3112_v40 }
 0x220   :  { %v8722_v56 = vpop.f32.mrb[65].mxu1  ;;  %v4318_v28 = vmax.f32 %v3174_v21, %v3184_v14 }
 0x221   :  { %v4317_v49 = vmax.f32 %v3173_v7, %v3183_v30  ;;  %v8512_v53 = vpop.f32.mrb[52].mxu0  ;;  %8853 = vmatmul.mubr.msk.f32.gmra.mrb[128].mxu0 %vm4380_vm2, %v11559_v26  ;;  %8893 = vmatmul.mubr.msk.f32.gmra.mrb[124].mxu1 %vm4380_vm2, %v11559_v26  ;;  %v9393_v56 = vpack.c.bf16 %v5764_v37, %v5763_v45 }
 0x222   :  { %v3186_v62 = vadd.f32 %v8512_v53, %v11257_v19  ;;  %v3122_v35 = vpop.f32.mrb[53].mxu0  ;;  %8855 = vmatprep.mubr.msk.f32.mxu0 %vm9768_vm1, %v9766_v3  ;;  %8895 = vmatprep.mubr.msk.f32.mxu1 %vm9768_vm1, %v9766_v3 }
 0x223   :  { %v11550_v1 = vpop.f32.mrb[66].mxu1  ;;  %v11575_v24 = vmax.f32 %v4317_v49, %v4318_v28  ;;  %v3185_v25 = vadd.f32 %v11257_v19, %v3122_v35 }
 0x224   :  { %v8725_v2 = vpop.f32.mrb[67].mxu1  ;;  %v4320_v29 = vmax.f32 %v3176_v54, %v3186_v62 }
 0x225   :  { %v4319_v23 = vmax.f32 %v3175_v60, %v3185_v25  ;;  %v8515_v52 = vpop.f32.mrb[54].mxu0  ;;  %8856 = vmatmul.mubr.msk.f32.gmra.mrb[130].mxu0 %vm4380_vm2, %v11575_v24  ;;  %8896 = vmatmul.mubr.msk.f32.gmra.mrb[126].mxu1 %vm4380_vm2, %v11575_v24 }
 0x226   :  { %v3188_v11 = vadd.f32 %v8515_v52, %v11257_v19  ;;  %v3132_v10 = vpop.f32.mrb[55].mxu0  ;;  %8858 = vmatprep.mubr.msk.f32.mxu0 %vm9768_vm1, %v9766_v3  ;;  %8898 = vmatprep.mubr.msk.f32.mxu1 %vm9768_vm1, %v9766_v3 }
 0x227   :  { %v11556_v63 = vpop.f32.mrb[68].mxu1  ;;  %v4327_v33 = vmax.f32 %v4319_v23, %v4320_v29  ;;  %v3187_v47 = vadd.f32 %v11257_v19, %v3132_v10  ;;  %v5758_v10 = vld [vmem:[%s12174_s3 + $0x10] sm:$0xff] }
 0x228   :  { %v8728_v48 = vpop.f32.mrb[69].mxu1  ;;  %v4322_v41 = vmax.f32 %v3178_v32, %v3188_v11 }
 0x229   :  { %v4321_v15 = vmax.f32 %v3177_v44, %v3187_v47  ;;  %8859 = vmatmul.mubr.msk.f32.gmra.mrb[132].mxu0 %vm4380_vm2, %v4327_v33  ;;  %8899 = vmatmul.mubr.msk.f32.gmra.mrb[128].mxu1 %vm4380_vm2, %v4327_v33  ;;  %v8518_v34 = vpop.f32.mrb[68].mxu0 }
 0x22a   :  { %8861 = vmatprep.mubr.msk.f32.mxu0 %vm9768_vm1, %v9766_v3  ;;  %8942 = vmatprep.mubr.msk.f32.mxu1 %vm9768_vm1, %v9766_v3  ;;  %v3142_v46 = vpop.f32.mrb[69].mxu0 }
 0x22b   :  { %v11572_v5 = vpop.f32.mrb[70].mxu1  ;;  %v4329_v57 = vmax.f32 %v4321_v15, %v4322_v41  ;;  %v5984_v41 = vld [vmem:[%s12174_s3 + $0x48] sm:$0xff] }
 0x22c   :  { %v8731_v31 = vpop.f32.mrb[71].mxu1 }
 0x22d   :  { %8862 = vmatmul.mubr.msk.f32.gmra.mrb[134].mxu0 %vm4380_vm2, %v4329_v57  ;;  %8943 = vmatmul.mubr.msk.f32.vlgmr.msra.gmra.mrb[130].mxu1 %vm4380_vm2, %v9766_v3  ;;  %v4480_v19 = vpop.f32.mrb[70].mxu0 }
 0x22e   :  { %8905 = vmatprep.mubr.msk.f32.mxu0 %vm9768_vm1, %v9766_v3  ;;  %8945 = vmatprep.mubr.msk.f32.mxu1 %vm9768_vm1, %v9766_v3  ;;  %v11610_v8 = vadd.f32 %v11546_v39, %v4480_v19  ;;  %v8685_v20 = vpop.f32.mrb[71].mxu0  ;;  %v5757_v39 = vld [vmem:[%s12174_s3 + $0x8] sm:$0xff] }
 0x22f   :  { %v4623_v36 = vpop.f32.mrb[72].mxu1  ;;  %v11630_v42 = vpack.c.bf16 %v5757_v39, %v5756_v61 }
 0x230   :  { %v8734_v38 = vpop.f32.mrb[73].mxu1 }
 0x231   :  { %8906 = vmatmul.mubr.msk.f32.vlgmr.msra.gmra.mrb[136].mxu0 %vm4380_vm2, %v9766_v3  ;;  %8946 = vmatmul.mubr.msk.f32.gmra.mrb[132].mxu1 %vm4380_vm2, %v11559_v26  ;;  %v4485_v59 = vpop.f32.mrb[72].mxu0  ;;  %v5983_v38 = vld [vmem:[%s12174_s3 + $0x40] sm:$0xff] }
 0x232   :  { %8908 = vmatprep.mubr.msk.f32.mxu0 %vm9768_vm1, %v9766_v3  ;;  %8948 = vmatprep.mubr.msk.f32.mxu1 %vm9768_vm1, %v9766_v3  ;;  %v11627_v58 = vadd.f32 %v11550_v1, %v4485_v59  ;;  %v8688_v0 = vpop.f32.mrb[73].mxu0 }
 0x233   :  { %v4628_v12 = vpop.f32.mrb[74].mxu1  ;;  %9392 = vmatpush3.bf16.msra.mxu0 %v11519_v17 }
 0x234   :  { %v8737_v43 = vpop.f32.mrb[75].mxu1  ;;  %9394 = vmatprep.subr.bf16.mxu0 %v9393_v56  ;;  %v11737_v12 = vpack.c.bf16 %v5984_v41, %v5983_v38 }
 0x235   :  { %8909 = vmatmul.mubr.msk.f32.gmra.mrb[138].mxu0 %vm4380_vm2, %v9766_v3  ;;  %8949 = vmatmul.mubr.msk.f32.gmra.mrb[134].mxu1 %vm4380_vm2, %v11575_v24  ;;  %v4490_v4 = vpop.f32.mrb[74].mxu0 }
 0x236   :  { %8911 = vmatprep.mubr.msk.f32.mxu0 %vm9768_vm1, %v9766_v3  ;;  %8951 = vmatprep.mubr.msk.f32.mxu1 %vm9768_vm1, %v9766_v3  ;;  %v11641_v1 = vadd.f32 %v11556_v63, %v4490_v4  ;;  %v8691_v17 = vpop.f32.mrb[75].mxu0 }
 0x237   :  { %v4633_v27 = vpop.f32.mrb[76].mxu1  ;;  %9396 = vmatpush3.bf16.msra.mxu0 %v9393_v56 }
 0x238   :  { %v8740_v50 = vpop.f32.mrb[77].mxu1  ;;  %9398 = vmatprep.subr.bf16.mxu0 %v11630_v42 }
 0x239   :  { %8912 = vmatmul.mubr.msk.f32.gmra.mrb[140].mxu0 %vm4380_vm2, %v11559_v26  ;;  %8952 = vmatmul.mubr.msk.f32.gmra.mrb[136].mxu1 %vm4380_vm2, %v4327_v33  ;;  %v4495_v2 = vpop.f32.mrb[76].mxu0 }
 0x23a   :  { %8914 = vmatprep.mubr.msk.f32.mxu0 %vm9768_vm1, %v9766_v3  ;;  %8954 = vmatprep.mubr.msk.f32.mxu1 %vm9768_vm1, %v9766_v3  ;;  %v11652_v9 = vadd.f32 %v11572_v5, %v4495_v2  ;;  %v8694_v16 = vpop.f32.mrb[77].mxu0 }
 0x23d   :  { %8915 = vmatmul.mubr.msk.f32.gmra.mrb[142].mxu0 %vm4380_vm2, %v11575_v24  ;;  %8955 = vmatmul.mubr.msk.f32.gmra.mrb[138].mxu1 %vm4380_vm2, %v4329_v57  ;;  %v4500_v13 = vpop.f32.mrb[78].mxu0 }
 0x23e   :  { %8917 = vmatprep.mubr.msk.f32.mxu0 %vm9768_vm1, %v9766_v3  ;;  %8957 = vmatprep.mubr.msk.f32.mxu1 %vm9768_vm1, %v9766_v3  ;;  %v8697_v21 = vpop.f32.mrb[79].mxu0 }
 0x241   :  { %8918 = vmatmul.mubr.msk.f32.gmra.mrb[144].mxu0 %vm4380_vm2, %v4327_v33  ;;  %8958 = vmatmul.mubr.msk.f32.gmra.mrb[140].mxu1 %vm4380_vm2, %v9766_v3  ;;  %v4505_v14 = vpop.f32.mrb[80].mxu0 }
 0x242   :  { %8920 = vmatprep.mubr.msk.f32.mxu0 %vm9768_vm1, %v9766_v3  ;;  %8960 = vmatprep.mubr.msk.f32.mxu1 %vm9768_vm1, %v9766_v3  ;;  %v8700_v40 = vpop.f32.mrb[81].mxu0 }
 0x245   :  { %8921 = vmatmul.mubr.msk.f32.gmra.mrb[146].mxu0 %vm4380_vm2, %v4329_v57  ;;  %8961 = vmatmul.mubr.msk.f32.gmra.mrb[142].mxu1 %vm4380_vm2, %v9766_v3 }
 0x246   :  { %8923 = vmatprep.mubr.msk.f32.mxu0 %vm9768_vm1, %v9766_v3  ;;  %8963 = vmatprep.mubr.msk.f32.mxu1 %vm9768_vm1, %v9766_v3 }
 0x248   :  { %v4510_v63 = vpop.f32.mrb[82].mxu0  ;;  %v4638_v7 = vpop.f32.mrb[78].mxu1 }
 0x249   :  { %v11675_v26 = vadd.f32 %v4633_v27, %v4510_v63  ;;  %v8703_v30 = vpop.f32.mrb[83].mxu0  ;;  %v8743_v48 = vpop.f32.mrb[79].mxu1  ;;  %8924 = vmatmul.mubr.msk.f32.gmra.mrb[148].mxu0 %vm4380_vm2, %v9766_v3  ;;  %8964 = vmatmul.mubr.msk.f32.gmra.mrb[144].mxu1 %vm4380_vm2, %v11529_v51 }
 0x24a   :  { %8926 = vmatprep.mubr.msk.f32.mxu0 %vm9768_vm1, %v9766_v3  ;;  %8966 = vmatprep.mubr.msk.f32.mxu1 %vm9768_vm1, %v9766_v3 }
 0x24c   :  { %v4515_v28 = vpop.f32.mrb[84].mxu0  ;;  %v4643_v49 = vpop.f32.mrb[80].mxu1 }
 0x24d   :  { %v11685_v53 = vadd.f32 %v4638_v7, %v4515_v28  ;;  %v8706_v54 = vpop.f32.mrb[85].mxu0  ;;  %v8746_v62 = vpop.f32.mrb[81].mxu1  ;;  %8927 = vmatmul.mubr.msk.f32.gmra.mrb[150].mxu0 %vm4380_vm2, %v9766_v3  ;;  %8967 = vmatmul.mubr.msk.f32.gmra.mrb[146].mxu1 %vm4380_vm2, %v11535_v22 }
 0x24e   :  { %8929 = vmatprep.mubr.msk.f32.mxu0 %vm9768_vm1, %v9766_v3  ;;  %8969 = vmatprep.mubr.msk.f32.mxu1 %vm9768_vm1, %v9766_v3 }
 0x250   :  { %v4520_v35 = vpop.f32.mrb[86].mxu0  ;;  %v4648_v5 = vpop.f32.mrb[82].mxu1 }
 0x251   :  { %v11695_v60 = vadd.f32 %v4643_v49, %v4520_v35  ;;  %v8709_v24 = vpop.f32.mrb[87].mxu0  ;;  %v8749_v25 = vpop.f32.mrb[83].mxu1  ;;  %8930 = vmatmul.mubr.msk.f32.gmra.mrb[152].mxu0 %vm4380_vm2, %v11529_v51  ;;  %8970 = vmatmul.mubr.msk.f32.gmra.mrb[148].mxu1 %vm4380_vm2, %v11541_v55 }
 0x252   :  { %8932 = vmatprep.mubr.msk.f32.mxu0 %vm9768_vm1, %v9766_v3  ;;  %8972 = vmatprep.mubr.msk.f32.mxu1 %vm9768_vm1, %v9766_v3 }
 0x254   :  { %v4525_v31 = vpop.f32.mrb[88].mxu0  ;;  %v4653_v29 = vpop.f32.mrb[84].mxu1 }
 0x255   :  { %v11705_v23 = vadd.f32 %v4648_v5, %v4525_v31  ;;  %v8712_v52 = vpop.f32.mrb[89].mxu0  ;;  %v8752_v32 = vpop.f32.mrb[85].mxu1  ;;  %8933 = vmatmul.mubr.msk.f32.gmra.mrb[154].mxu0 %vm4380_vm2, %v11535_v22  ;;  %8973 = vmatmul.mubr.msk.f32.gmra.mrb[150].mxu1 %vm4380_vm2, %v11544_v18  ;;  %v5759_v22 = vld [vmem:[%s12174_s3 + $0x18] sm:$0xff] }
 0x256   :  { %8935 = vmatprep.mubr.msk.f32.mxu0 %vm9768_vm1, %v9766_v3  ;;  %9059 = vmatprep.mubr.msk.f32.mxu1 %vm9768_vm1, %v9766_v3  ;;  %v9401_v44 = vpack.c.bf16 %v5759_v22, %v5758_v10 }
 0x258   :  { %v4946_v51 = vpop.f32.mrb[86].mxu1  ;;  %v4530_v11 = vpop.f32.mrb[90].mxu0 }
 0x259   :  { %v8796_v36 = vpop.f32.mrb[87].mxu1  ;;  %8936 = vmatmul.mubr.msk.f32.gmra.mrb[156].mxu0 %vm4380_vm2, %v11541_v55  ;;  %v8715_v18 = vpop.f32.mrb[91].mxu0 }
 0x25a   :  { %8983 = vmatprep.mubr.msk.f32.mxu0 %vm5765_vm3, %v9766_v3 }
 0x25c   :  { %v4769_v33 = vpop.f32.mrb[92].mxu0  ;;  %v4951_v47 = vpop.f32.mrb[88].mxu1 }
 0x25d   :  { %v4823_v15 = vadd.f32 %v4769_v33, %v11610_v8  ;;  %v8799_v34 = vpop.f32.mrb[89].mxu1  ;;  %v8759_v46 = vpop.f32.mrb[93].mxu0  ;;  %8984 = vmatmul.mubr.msk.f32.vlgmr.msra.gmra.mrb[158].mxu0 %vm5765_vm3, %v9766_v3 }
 0x25e   :  { %8986 = vmatprep.mubr.msk.f32.mxu0 %vm5765_vm3, %v9766_v3  ;;  %9400 = vmatpush3.bf16.msra.mxu0 %v11630_v42 }
 0x25f   :  { %v5000_v55 = vadd.f32 %v4946_v51, %v4823_v15  ;;  %9402 = vmatprep.subr.bf16.mxu0 %v9401_v44 }
 0x260   :  { %v4774_v57 = vpop.f32.mrb[94].mxu0  ;;  %v4956_v43 = vpop.f32.mrb[90].mxu1 }
 0x261   :  { %v4824_v19 = vadd.f32 %v4774_v57, %v11627_v58  ;;  %v8762_v45 = vpop.f32.mrb[95].mxu0  ;;  %v8802_v37 = vpop.f32.mrb[91].mxu1  ;;  %8987 = vmatmul.mubr.msk.f32.gmra.mrb[160].mxu0 %vm5765_vm3, %v9766_v3 }
 0x262   :  { %9404 = vmatpush3.bf16.msra.mxu0 %v9401_v44 }
 0x263   :  { %v5001_v8 = vadd.f32 %v4951_v47, %v4824_v19  ;;  %9406 = vmatprep.subr.bf16.mxu0 %v11737_v12 }
 0x264   :  { %v4779_v20 = vpop.f32.mrb[96].mxu0  ;;  %v4961_v27 = vpop.f32.mrb[92].mxu1 }
 0x265   :  { %v4825_v50 = vadd.f32 %v4779_v20, %v11641_v1  ;;  %v8765_v56 = vpop.f32.mrb[97].mxu0  ;;  %v8805_v59 = vpop.f32.mrb[93].mxu1 }
 0x267   :  { %v5002_v61 = vadd.f32 %v4956_v43, %v4825_v50 }
 0x268   :  { %v4784_v39 = vpop.f32.mrb[98].mxu0  ;;  %v4966_v0 = vpop.f32.mrb[94].mxu1 }
 0x269   :  { %v4826_v58 = vadd.f32 %v4784_v39, %v11652_v9  ;;  %v8768_v42 = vpop.f32.mrb[99].mxu0  ;;  %v8808_v4 = vpop.f32.mrb[95].mxu1  ;;  %v11749_v9 = vld [vmem:[%s12173_s5 + $0x1] ss:$0 sm:$0xff]  ;;  %v5985_v39 = vld [vmem:[%s12174_s3 + $0x50] sm:$0xff]  ;;  %v5986_v0 = vld [vmem:[%s12174_s3 + $0x58] sm:$0xff] }
 0x26a   :  { %v5015_v5 = vadd.f32 %v11749_v9, %v5000_v55  ;;  %v5016_v11 = vadd.f32 %v11749_v9, %v5001_v8 }
 0x26b   :  { %v5003_v17 = vadd.f32 %v4961_v27, %v4826_v58 }
 0x26c   :  { %v4789_v2 = vpop.f32.mrb[100].mxu0  ;;  %v4971_v16 = vpop.f32.mrb[96].mxu1 }
 0x26d   :  { %v8771_v13 = vpop.f32.mrb[101].mxu0  ;;  %v8811_v21 = vpop.f32.mrb[97].mxu1  ;;  %v5018_v45 = vadd.f32 %v11749_v9, %v5003_v17  ;;  %v9409_v16 = vpack.c.bf16 %v5986_v0, %v5985_v39 }
 0x270   :  { %v4976_v14 = vpop.f32.mrb[98].mxu1  ;;  %v4794_v40 = vpop.f32.mrb[102].mxu0 }
 0x271   :  { %v8814_v63 = vpop.f32.mrb[99].mxu1  ;;  %v8774_v7 = vpop.f32.mrb[103].mxu0 }
 0x274   :  { %v4799_v30 = vpop.f32.mrb[104].mxu0  ;;  %v4981_v1 = vpop.f32.mrb[100].mxu1 }
 0x275   :  { %v4829_v48 = vadd.f32 %v4799_v30, %v11675_v26  ;;  %v8817_v28 = vpop.f32.mrb[101].mxu1  ;;  %v8777_v49 = vpop.f32.mrb[105].mxu0 }
 0x277   :  { %v5006_v54 = vadd.f32 %v4976_v14, %v4829_v48 }
 0x278   :  { %v4804_v62 = vpop.f32.mrb[106].mxu0  ;;  %v4986_v35 = vpop.f32.mrb[102].mxu1 }
 0x279   :  { %v5021_v24 = vadd.f32 %v11749_v9, %v5006_v54  ;;  %v4830_v25 = vadd.f32 %v4804_v62, %v11685_v53  ;;  %v8780_v31 = vpop.f32.mrb[107].mxu0  ;;  %v8820_v29 = vpop.f32.mrb[103].mxu1  ;;  %v5017_v53 = vadd.f32 %v11749_v9, %v5002_v61 }
 0x27b   :  { %v5725_v52 = vmax.f32 %v5015_v5, %v5021_v24  ;;  %v5007_v26 = vadd.f32 %v4981_v1, %v4830_v25 }
 0x27c   :  { %v4809_v32 = vpop.f32.mrb[108].mxu0  ;;  %v4991_v51 = vpop.f32.mrb[104].mxu1 }
 0x27d   :  { %v5022_v10 = vadd.f32 %v11749_v9, %v5007_v26  ;;  %v4831_v22 = vadd.f32 %v4809_v32, %v11695_v60  ;;  %v8783_v36 = vpop.f32.mrb[109].mxu0  ;;  %v8823_v18 = vpop.f32.mrb[105].mxu1 }
 0x27e   :  { %v6115_v36 = vld [vmem:[%s12174_s3 + $0x78] sm:$0xff] }
 0x27f   :  { %v5726_v44 = vmax.f32 %v5016_v11, %v5022_v10  ;;  %v5008_v33 = vadd.f32 %v4986_v35, %v4831_v22  ;;  %v6113_v11 = vld [vmem:[%s12174_s3 + $0x68] sm:$0xff]  ;;  %v6114_v22 = vld [vmem:[%s12174_s3 + $0x70] sm:$0xff] }
 0x280   :  { %v4814_v47 = vpop.f32.mrb[110].mxu0  ;;  %v4996_v38 = vpop.f32.mrb[106].mxu1  ;;  %v9417_v18 = vpack.c.bf16 %v6115_v36, %v6114_v22 }
 0x281   :  { %v5023_v41 = vadd.f32 %v11749_v9, %v5008_v33  ;;  %v4832_v15 = vadd.f32 %v4814_v47, %v11705_v23  ;;  %v8786_v34 = vpop.f32.mrb[111].mxu0  ;;  %v11760_v46 = vmax.f32 %v5725_v52, %v5726_v44  ;;  %v8826_v55 = vpop.f32.mrb[107].mxu1  ;;  %v6282_v44 = vld [vmem:[%s12175_s4 + $0x40] sm:$0xff]  ;;  %v6283_v33 = vld [vmem:[%s12175_s4 + $0x48] sm:$0xff]  ;;  %v6284_v47 = vld [vmem:[%s12175_s4 + $0x50] sm:$0xff] }
 0x282   :  { %v9422_v38 = vpack.c.bf16 %v6283_v33, %v6282_v44  ;;  %v6287_v34 = vld [vmem:[%s12175_s4 + $0x68] sm:$0xff] }
 0x283   :  { %v5727_v57 = vmax.f32 %v5017_v53, %v5023_v41  ;;  %v5009_v43 = vadd.f32 %v4991_v51, %v4832_v15  ;;  %8989 = vmatprep.mubr.msk.f32.mxu0 %vm5765_vm3, %v11760_v46  ;;  %v6112_v51 = vld [vmem:[%s12174_s3 + $0x60] sm:$0xff]  ;;  %v6285_v53 = vld [vmem:[%s12175_s4 + $0x58] sm:$0xff] }
 0x284   :  { %v4819_v60 = vpop.f32.mrb[112].mxu0  ;;  %v5275_v19 = vpop.f32.mrb[108].mxu1  ;;  %v9413_v10 = vpack.c.bf16 %v6113_v11, %v6112_v51  ;;  %9423 = vmatpush3.bf16.msra.mxu1 %v9422_v38  ;;  %v9425_v41 = vpack.c.bf16 %v6285_v53, %v6284_v47  ;;  %v6286_v15 = vld [vmem:[%s12175_s4 + $0x60] sm:$0xff] }
 0x285   :  { %v5024_v37 = vadd.f32 %v11749_v9, %v5009_v43  ;;  %v8789_v8 = vpop.f32.mrb[113].mxu0  ;;  %v8870_v20 = vpop.f32.mrb[109].mxu1  ;;  %9424 = vmatprep.subr.bf16.mxu1 %v9767_v6  ;;  %v9428_v55 = vpack.c.bf16 %v6287_v34, %v6286_v15  ;;  %v6289_v43 = vld [vmem:[%s12175_s4 + $0x78] sm:$0xff] }
 0x287   :  { %v5728_v27 = vmax.f32 %v5018_v45, %v5024_v37 }
 0x288   :  { %v5152_v50 = vpop.f32.mrb[114].mxu0  ;;  %v5280_v23 = vpop.f32.mrb[110].mxu1  ;;  %9426 = vmatpush3.bf16.msra.mxu1 %v9425_v41 }
 0x289   :  { %v8833_v56 = vpop.f32.mrb[115].mxu0  ;;  %v8873_v59 = vpop.f32.mrb[111].mxu1  ;;  %v11766_v61 = vmax.f32 %v5727_v57, %v5728_v27  ;;  %9427 = vmatprep.subr.bf16.mxu1 %v9767_v6  ;;  %v6288_v57 = vld [vmem:[%s12175_s4 + $0x70] sm:$0xff] }
 0x28a   :  { %v9431_v60 = vpack.c.bf16 %v6289_v43, %v6288_v57 }
 0x28b   :  { %8990 = vmatmul.mubr.msk.f32.gmra.mrb[162].mxu0 %vm5765_vm3, %v11766_v61 }
 0x28c   :  { %v5157_v58 = vpop.f32.mrb[116].mxu0  ;;  %v5285_v42 = vpop.f32.mrb[112].mxu1  ;;  %9000 = vmatprep.mubr.msk.f32.mxu0 %vm5765_vm3, %v9766_v3  ;;  %9429 = vmatpush3.bf16.msra.mxu1 %v9428_v55 }
 0x28d   :  { %v11778_v4 = vadd.f32 %v5280_v23, %v5157_v58  ;;  %v8836_v17 = vpop.f32.mrb[117].mxu0  ;;  %v8876_v2 = vpop.f32.mrb[113].mxu1  ;;  %9430 = vmatprep.subr.bf16.mxu1 %v9767_v6 }
 0x28f   :  { %9001 = vmatmul.mubr.msk.f32.vlgmr.msra.gmra.mrb[158].mxu0 %vm5765_vm3, %v9766_v3 }
 0x290   :  { %v5162_v13 = vpop.f32.mrb[118].mxu0  ;;  %v5290_v21 = vpop.f32.mrb[114].mxu1  ;;  %9003 = vmatprep.mubr.msk.f32.mxu0 %vm5765_vm3, %v9766_v3  ;;  %9408 = vmatpush3.bf16.msra.mxu0 %v11737_v12 }
 0x291   :  { %v11785_v14 = vadd.f32 %v5285_v42, %v5162_v13  ;;  %v8839_v40 = vpop.f32.mrb[119].mxu0  ;;  %v8879_v63 = vpop.f32.mrb[115].mxu1  ;;  %9410 = vmatprep.subr.bf16.mxu0 %v9409_v16  ;;  %9432 = vmatpush3.bf16.msra.mxu1 %v9431_v60 }
 0x292   :  { %9433 = vmatprep.subr.bf16.mxu1 %v9767_v6 }
 0x293   :  { %9004 = vmatmul.mubr.msk.f32.gmra.mrb[164].mxu0 %vm5765_vm3, %v9766_v3 }
 0x294   :  { %v5167_v7 = vpop.f32.mrb[120].mxu0  ;;  %v5295_v30 = vpop.f32.mrb[116].mxu1  ;;  %9006 = vmatprep.mubr.msk.f32.mxu0 %vm5765_vm3, %v9766_v3  ;;  %9412 = vmatpush3.bf16.msra.mxu0 %v9409_v16 }
 0x295   :  { %v11791_v1 = vadd.f32 %v5290_v21, %v5167_v7  ;;  %v8842_v48 = vpop.f32.mrb[121].mxu0  ;;  %v8882_v28 = vpop.f32.mrb[117].mxu1  ;;  %9414 = vmatprep.subr.bf16.mxu0 %v9413_v10  ;;  %9060 = vmatmul.mubr.msk.f32.vlgmr.msra.gmra.mrb[152].mxu1 %vm6290_vm4, %v9766_v3 }
 0x296   :  { %9062 = vmatprep.mubr.msk.f32.mxu1 %vm9768_vm1, %v9766_v3 }
 0x297   :  { %9007 = vmatmul.mubr.msk.f32.gmra.mrb[162].mxu0 %vm5765_vm3, %v11760_v46 }
 0x298   :  { %v5172_v12 = vpop.f32.mrb[122].mxu0  ;;  %v5300_v49 = vpop.f32.mrb[118].mxu1  ;;  %9017 = vmatprep.mubr.msk.f32.mxu0 %vm5765_vm3, %v9766_v3 }
 0x299   :  { %v11797_v54 = vadd.f32 %v5295_v30, %v5172_v12  ;;  %v8845_v62 = vpop.f32.mrb[123].mxu0  ;;  %v8885_v35 = vpop.f32.mrb[119].mxu1 }
 0x29b   :  { %9018 = vmatmul.mubr.msk.f32.vlgmr.msra.gmra.mrb[158].mxu0 %vm5765_vm3, %v11760_v46 }
 0x29c   :  { %9020 = vmatprep.mubr.msk.f32.mxu0 %vm5765_vm3, %v11766_v61  ;;  %v5177_v5 = vpop.f32.mrb[124].mxu0  ;;  %v5305_v24 = vpop.f32.mrb[120].mxu1  ;;  %9416 = vmatpush3.bf16.msra.mxu0 %v9413_v10 }
 0x29d   :  { %v8848_v25 = vpop.f32.mrb[125].mxu0  ;;  %v8888_v31 = vpop.f32.mrb[121].mxu1  ;;  %9418 = vmatprep.subr.bf16.mxu0 %v9417_v18  ;;  %9063 = vmatmul.mubr.msk.f32.gmra.mrb[152].mxu1 %vm6290_vm4, %v9766_v3 }
 0x29e   :  { %9065 = vmatprep.mubr.msk.f32.mxu1 %vm9768_vm1, %v9766_v3 }
 0x29f   :  { %9021 = vmatmul.mubr.msk.f32.gmra.mrb[166].mxu0 %vm5765_vm3, %v9766_v3 }
 0x2a0   :  { %v5182_v29 = vpop.f32.mrb[126].mxu0  ;;  %v5310_v52 = vpop.f32.mrb[122].mxu1  ;;  %9023 = vmatprep.mubr.msk.f32.mxu0 %vm5765_vm3, %v9766_v3  ;;  %9420 = vmatpush3.bf16.msra.mxu0 %v9417_v18 }
 0x2a1   :  { %v8851_v26 = vpop.f32.mrb[127].mxu0  ;;  %v8891_v32 = vpop.f32.mrb[123].mxu1  ;;  %9469 = vmatprep.subr.bf16.mxu0 %v9767_v6  ;;  %9066 = vmatmul.mubr.msk.f32.gmra.mrb[154].mxu1 %vm6290_vm4, %v9766_v3 }
 0x2a2   :  { %9068 = vmatprep.mubr.msk.f32.mxu1 %vm9768_vm1, %v9766_v3 }
 0x2f4   :  { %v5187_v19 = vpop.f32.mrb[128].mxu0  ;;  %v5315_v45 = vpop.f32.mrb[124].mxu1 }
 0x2f5   :  { %v5311_v37 = vadd.f32 %v5310_v52, %v5187_v19  ;;  %v8854_v8 = vpop.f32.mrb[129].mxu0  ;;  %v8894_v20 = vpop.f32.mrb[125].mxu1 }
 0x2f8   :  { %v5192_v27 = vpop.f32.mrb[130].mxu0  ;;  %v5320_v50 = vpop.f32.mrb[126].mxu1 }
 0x2f9   :  { %v5316_v23 = vadd.f32 %v5315_v45, %v5192_v27  ;;  %v8857_v56 = vpop.f32.mrb[131].mxu0  ;;  %v8897_v59 = vpop.f32.mrb[127].mxu1 }
 0x2fc   :  { %v5197_v39 = vpop.f32.mrb[132].mxu0  ;;  %v5325_v0 = vpop.f32.mrb[128].mxu1 }
 0x2fd   :  { %v11848_v58 = vadd.f32 %v5320_v50, %v5197_v39  ;;  %v8860_v42 = vpop.f32.mrb[133].mxu0  ;;  %v8900_v17 = vpop.f32.mrb[129].mxu1 }
 0x300   :  { %v5202_v2 = vpop.f32.mrb[134].mxu0  ;;  %v5618_v16 = vpop.f32.mrb[130].mxu1 }
 0x301   :  { %v11850_v13 = vadd.f32 %v5325_v0, %v5202_v2  ;;  %v8863_v21 = vpop.f32.mrb[135].mxu0  ;;  %v8944_v40 = vpop.f32.mrb[131].mxu1 }
 0x304   :  { %v5441_v63 = vpop.f32.mrb[136].mxu0  ;;  %v5623_v7 = vpop.f32.mrb[132].mxu1 }
 0x305   :  { %v8907_v30 = vpop.f32.mrb[137].mxu0  ;;  %v8947_v48 = vpop.f32.mrb[133].mxu1 }
 0x308   :  { %v5446_v28 = vpop.f32.mrb[138].mxu0  ;;  %v5628_v12 = vpop.f32.mrb[134].mxu1 }
 0x309   :  { %v5496_v49 = vadd.f32 %v5446_v28, %v11778_v4  ;;  %v8910_v62 = vpop.f32.mrb[139].mxu0  ;;  %v8950_v35 = vpop.f32.mrb[135].mxu1 }
 0x30b   :  { %v5673_v5 = vadd.f32 %v5623_v7, %v5496_v49 }
 0x30c   :  { %v5451_v24 = vpop.f32.mrb[140].mxu0  ;;  %v5633_v25 = vpop.f32.mrb[136].mxu1 }
 0x30d   :  { %v5497_v31 = vadd.f32 %v5451_v24, %v11785_v14  ;;  %v8913_v29 = vpop.f32.mrb[141].mxu0  ;;  %v8953_v52 = vpop.f32.mrb[137].mxu1 }
 0x30f   :  { %v5674_v26 = vadd.f32 %v5628_v12, %v5497_v31 }
 0x310   :  { %v5456_v32 = vpop.f32.mrb[142].mxu0  ;;  %v5638_v51 = vpop.f32.mrb[138].mxu1 }
 0x311   :  { %v5498_v11 = vadd.f32 %v5456_v32, %v11791_v1  ;;  %v8916_v10 = vpop.f32.mrb[143].mxu0  ;;  %v8956_v22 = vpop.f32.mrb[139].mxu1  ;;  %v5685_v21 = vadd.f32 %v11749_v9, %v5674_v26  ;;  %v6273_v32 = vld [vmem:[%s12175_s4] sm:$0xff] }
 0x312   :  { %v6275_v10 = vld [vmem:[%s12175_s4 + $0x10] sm:$0xff]  ;;  %v6276_v22 = vld [vmem:[%s12175_s4 + $0x18] sm:$0xff] }
 0x313   :  { %v5675_v36 = vadd.f32 %v5633_v25, %v5498_v11 }
 0x314   :  { %v5461_v18 = vpop.f32.mrb[144].mxu0  ;;  %v5643_v44 = vpop.f32.mrb[140].mxu1 }
 0x315   :  { %v5499_v4 = vadd.f32 %v5461_v18, %v11797_v54  ;;  %v8919_v33 = vpop.f32.mrb[145].mxu0  ;;  %v8959_v47 = vpop.f32.mrb[141].mxu1  ;;  %v5684_v54 = vadd.f32 %v11749_v9, %v5673_v5  ;;  %v5686_v12 = vadd.f32 %v11749_v9, %v5675_v36  ;;  %v9437_v36 = vpack.c.bf16 %v6276_v22, %v6275_v10  ;;  %v6277_v18 = vld [vmem:[%s12175_s4 + $0x20] sm:$0xff]  ;;  %v6278_v44 = vld [vmem:[%s12175_s4 + $0x28] sm:$0xff]  ;;  %v6767_v22 = vld [vmem:[%s12176_s6 + $0x50] sm:$0xff] }
 0x316   :  { %v6279_v33 = vld [vmem:[%s12175_s4 + $0x30] sm:$0xff]  ;;  %v6280_v47 = vld [vmem:[%s12175_s4 + $0x38] sm:$0xff] }
 0x317   :  { %v5676_v38 = vadd.f32 %v5638_v51, %v5499_v4  ;;  %v6274_v51 = vld [vmem:[%s12175_s4 + $0x8] sm:$0xff]  ;;  %v9440_v4 = vpack.c.bf16 %v6278_v44, %v6277_v18  ;;  %v6769_v44 = vld [vmem:[%s12176_s6 + $0x60] sm:$0xff] }
 0x318   :  { %v5466_v53 = vpop.f32.mrb[146].mxu0  ;;  %v5648_v41 = vpop.f32.mrb[142].mxu1  ;;  %v9434_v11 = vpack.c.bf16 %v6274_v51, %v6273_v32  ;;  %v6765_v51 = vld [vmem:[%s12176_s6 + $0x40] sm:$0xff] }
 0x319   :  { %v8922_v14 = vpop.f32.mrb[147].mxu0  ;;  %v8962_v15 = vpop.f32.mrb[143].mxu1 }
 0x31a   :  { %9435 = vmatpush3.bf16.msra.mxu1 %v9434_v11  ;;  %v6766_v11 = vld [vmem:[%s12176_s6 + $0x48] sm:$0xff] }
 0x31b   :  { %9436 = vmatprep.subr.bf16.mxu1 %v9767_v6  ;;  %v9482_v10 = vpack.c.bf16 %v6766_v11, %v6765_v51 }
 0x31c   :  { %v5471_v34 = vpop.f32.mrb[148].mxu0  ;;  %v5653_v55 = vpop.f32.mrb[144].mxu1 }
 0x31d   :  { %v8925_v57 = vpop.f32.mrb[149].mxu0  ;;  %v8965_v43 = vpop.f32.mrb[145].mxu1  ;;  %v7384_v34 = vld [vmem:[%s12173_s5 + $0x2] ss:$0 sm:$0xff] }
 0x31e   :  { %9438 = vmatpush3.bf16.msra.mxu1 %v9437_v36  ;;  %v6768_v36 = vld [vmem:[%s12176_s6 + $0x58] sm:$0xff] }
 0x31f   :  { %9439 = vmatprep.subr.bf16.mxu1 %v9767_v6  ;;  %v9485_v18 = vpack.c.bf16 %v6768_v36, %v6767_v22 }
 0x320   :  { %v5476_v60 = vpop.f32.mrb[150].mxu0  ;;  %v5658_v1 = vpop.f32.mrb[146].mxu1 }
 0x321   :  { %v5502_v19 = vadd.f32 %v5476_v60, %v5311_v37  ;;  %v8928_v45 = vpop.f32.mrb[151].mxu0  ;;  %v8968_v8 = vpop.f32.mrb[147].mxu1 }
 0x322   :  { %9441 = vmatpush3.bf16.msra.mxu1 %v9440_v4  ;;  %v6770_v4 = vld [vmem:[%s12176_s6 + $0x68] sm:$0xff] }
 0x323   :  { %v5679_v20 = vadd.f32 %v5653_v55, %v5502_v19  ;;  %9442 = vmatprep.subr.bf16.mxu1 %v9767_v6 }
 0x324   :  { %v5481_v27 = vpop.f32.mrb[152].mxu0  ;;  %v5663_v50 = vpop.f32.mrb[148].mxu1 }
 0x325   :  { %v5690_v56 = vadd.f32 %v11749_v9, %v5679_v20  ;;  %v5503_v59 = vadd.f32 %v5481_v27, %v5316_v23  ;;  %v8931_v39 = vpop.f32.mrb[153].mxu0  ;;  %v8971_v0 = vpop.f32.mrb[149].mxu1  ;;  %v6494_v27 = vld [vmem:[%s12175_s4 + $0x80] sm:$0xff] }
 0x326   :  { %v6498_v0 = vld [vmem:[%s12175_s4 + $0xa0] sm:$0xff] }
 0x327   :  { %v5741_v42 = vmax.f32 %v5684_v54, %v5690_v56  ;;  %v5680_v17 = vadd.f32 %v5658_v1, %v5503_v59  ;;  %v6496_v56 = vld [vmem:[%s12175_s4 + $0x90] sm:$0xff]  ;;  %v6497_v59 = vld [vmem:[%s12175_s4 + $0x98] sm:$0xff] }
 0x328   :  { %v5486_v2 = vpop.f32.mrb[154].mxu0  ;;  %v5668_v16 = vpop.f32.mrb[150].mxu1  ;;  %v9449_v39 = vpack.c.bf16 %v6497_v59, %v6496_v56 }
 0x329   :  { %v5691_v37 = vadd.f32 %v11749_v9, %v5680_v17  ;;  %v5504_v40 = vadd.f32 %v5486_v2, %v11848_v58  ;;  %v8934_v63 = vpop.f32.mrb[155].mxu0  ;;  %v8974_v7 = vpop.f32.mrb[151].mxu1  ;;  %v5687_v58 = vadd.f32 %v11749_v9, %v5676_v38  ;;  %v9443_v38 = vpack.c.bf16 %v6280_v47, %v6279_v33  ;;  %v6500_v2 = vld [vmem:[%s12175_s4 + $0xb0] sm:$0xff] }
 0x32a   :  { %v6619_v7 = vld [vmem:[%s12175_s4 + $0xd0] sm:$0xff]  ;;  %v9488_v33 = vpack.c.bf16 %v6770_v4, %v6769_v44 }
 0x32b   :  { %v5742_v30 = vmax.f32 %v5685_v21, %v5691_v37  ;;  %v5681_v48 = vadd.f32 %v5663_v50, %v5504_v40  ;;  %9444 = vmatpush3.bf16.msra.mxu1 %v9443_v38  ;;  %v6495_v50 = vld [vmem:[%s12175_s4 + $0x88] sm:$0xff]  ;;  %v6617_v37 = vld [vmem:[%s12175_s4 + $0xc0] sm:$0xff]  ;;  %v6771_v47 = vld [vmem:[%s12176_s6 + $0x70] sm:$0xff] }
 0x32c   :  { %v5491_v28 = vpop.f32.mrb[156].mxu0  ;;  %9445 = vmatprep.subr.bf16.mxu1 %v9767_v6  ;;  %v9446_v54 = vpack.c.bf16 %v6495_v50, %v6494_v27  ;;  %v6618_v40 = vld [vmem:[%s12175_s4 + $0xc8] sm:$0xff]  ;;  %v6772_v38 = vld [vmem:[%s12176_s6 + $0x78] sm:$0xff]  ;;  %v7405_v27 = vld [vmem:[%s12173_s5 + $0x3] ss:$0 sm:$0xff] }
 0x32d   :  { %v5692_v23 = vadd.f32 %v11749_v9, %v5681_v48  ;;  %v5505_v49 = vadd.f32 %v5491_v28, %v11850_v13  ;;  %v8937_v62 = vpop.f32.mrb[157].mxu0  ;;  %v5745_v35 = vmax.f32 %v5741_v42, %v5742_v30  ;;  %v6499_v42 = vld [vmem:[%s12175_s4 + $0xa8] sm:$0xff]  ;;  %v9458_v63 = vpack.c.bf16 %v6618_v40, %v6617_v37  ;;  %v6620_v30 = vld [vmem:[%s12175_s4 + $0xd8] sm:$0xff]  ;;  %v6621_v28 = vld [vmem:[%s12175_s4 + $0xe0] sm:$0xff] }
 0x32e   :  { %v9452_v17 = vpack.c.bf16 %v6499_v42, %v6498_v0  ;;  %v9461_v48 = vpack.c.bf16 %v6620_v30, %v6619_v7  ;;  %v6624_v62 = vld [vmem:[%s12175_s4 + $0xf8] sm:$0xff]  ;;  %v9529_v56 = vadd.f32 %v7405_v27, %v7405_v27  ;;  %v6862_v40 = vld [vmem:[%s12177_s7 + $0x40] sm:$0xff]  ;;  %v6864_v30 = vld [vmem:[%s12177_s7 + $0x50] sm:$0xff] }
 0x32f   :  { %v5743_v5 = vmax.f32 %v5686_v12, %v5692_v23  ;;  %v5682_v24 = vadd.f32 %v5668_v16, %v5505_v49  ;;  %9024 = vmatmul.mubr.msk.f32.gmra.mrb[162].mxu0 %vm5765_vm3, %v5745_v35  ;;  %v6501_v16 = vld [vmem:[%s12175_s4 + $0xb8] sm:$0xff]  ;;  %v6622_v12 = vld [vmem:[%s12175_s4 + $0xe8] sm:$0xff]  ;;  %v6623_v49 = vld [vmem:[%s12175_s4 + $0xf0] sm:$0xff] }
 0x330   :  { %9034 = vmatprep.mubr.msk.f32.mxu0 %vm5765_vm3, %v11760_v46  ;;  %v9455_v21 = vpack.c.bf16 %v6501_v16, %v6500_v2  ;;  %v9464_v23 = vpack.c.bf16 %v6622_v12, %v6621_v28  ;;  %v9530_v59 = vadd.f32 %v9529_v56, %v7405_v27  ;;  %v6860_v16 = vld [vmem:[%s12177_s7 + $0x30] sm:$0xff]  ;;  %v6866_v12 = vld [vmem:[%s12177_s7 + $0x60] sm:$0xff] }
 0x331   :  { %v5693_v25 = vadd.f32 %v11749_v9, %v5682_v24 }
 0x333   :  { %v5744_v31 = vmax.f32 %v5687_v58, %v5693_v25  ;;  %9035 = vmatmul.mubr.msk.f32.vlgmr.msra.gmra.mrb[158].mxu0 %vm5765_vm3, %v11766_v61  ;;  %v6757_v58 = vld [vmem:[%s12176_s6] sm:$0xff]  ;;  %v6758_v25 = vld [vmem:[%s12176_s6 + $0x8] sm:$0xff] }
 0x334   :  { %9037 = vmatprep.mubr.msk.f32.mxu0 %vm5765_vm3, %v9766_v3  ;;  %v8988_v13 = vpop.f32.mrb[160].mxu0 }
 0x335   :  { %v5747_v29 = vmax.f32 %v5743_v5, %v5744_v31  ;;  %v5860_v52 = vpop.f32.mrb[161].mxu0  ;;  %v6759_v31 = vld [vmem:[%s12176_s6 + $0x10] sm:$0xff]  ;;  %v9470_v13 = vpack.c.bf16 %v6758_v25, %v6757_v58 }
 0x337   :  { %9038 = vmatmul.mubr.msk.f32.gmra.mrb[168].mxu0 %vm5765_vm3, %v9766_v3 }
 0x338   :  { %9040 = vmatprep.mubr.msk.f32.mxu0 %vm5765_vm3, %v5745_v35  ;;  %v9467_v35 = vpack.c.bf16 %v6624_v62, %v6623_v49  ;;  %9471 = vmatpush3.bf16.msra.mxu0 %v9470_v13  ;;  %v6868_v62 = vld [vmem:[%s12177_s7 + $0x70] sm:$0xff] }
 0x339   :  { %9472 = vmatprep.subr.bf16.mxu0 %v9767_v6 }
 0x33b   :  { %9041 = vmatmul.mubr.msk.f32.gmra.mrb[162].mxu0 %vm5765_vm3, %v5747_v29  ;;  %v6760_v29 = vld [vmem:[%s12176_s6 + $0x18] sm:$0xff] }
 0x33c   :  { %9199 = vmatprep.mubr.msk.f32.mxu0 %vm9768_vm1, %v9766_v3  ;;  %v9473_v52 = vpack.c.bf16 %v6760_v29, %v6759_v31 }
 0x33e   :  { %9474 = vmatpush3.bf16.msra.mxu0 %v9473_v52 }
 0x33f   :  { %9475 = vmatprep.subr.bf16.mxu0 %v9767_v6 }
 0x366   :  { %v9005_v9 = vpop.f32.mrb[164].mxu0 }
 0x367   :  { %v5958_v46 = vpop.f32.mrb[165].mxu0  ;;  %v6762_v9 = vld [vmem:[%s12176_s6 + $0x28] sm:$0xff] }
 0x372   :  { %v9022_v26 = vpop.f32.mrb[166].mxu0 }
 0x373   :  { %v6081_v61 = vpop.f32.mrb[167].mxu0  ;;  %v6763_v26 = vld [vmem:[%s12176_s6 + $0x30] sm:$0xff] }
 0x374   :  { %v6382_v5 = vpop.f32.mrb[154].mxu1  ;;  %v6764_v61 = vld [vmem:[%s12176_s6 + $0x38] sm:$0xff] }
 0x375   :  { %v9067_v24 = vpop.f32.mrb[155].mxu1  ;;  %v9479_v32 = vpack.c.bf16 %v6764_v61, %v6763_v26 }
 0x376   :  { %v7406_v24 = vld [vmem:[%s12173_s5 + $0x4] ss:$0 sm:$0xff] }
 0x406   :  { %v9036_v53 = vpop.f32.mrb[158].mxu0 }
 0x407   :  { %v6200_v41 = vpop.f32.mrb[159].mxu0  ;;  %v6240_v57 = vadd.f32 %v9036_v53, %v7384_v34  ;;  %v9491_v53 = vpack.c.bf16 %v6772_v38, %v6771_v47 }
 0x408   :  { %v6239_v1 = vadd.f32 %v7384_v34, %v6200_v41  ;;  %v6854_v41 = vld [vmem:[%s12177_s7] sm:$0xff] }
 0x40a   :  { %v9039_v14 = vpop.f32.mrb[168].mxu0 }
 0x40b   :  { %v6210_v15 = vpop.f32.mrb[169].mxu0  ;;  %v6855_v14 = vld [vmem:[%s12177_s7 + $0x8] sm:$0xff] }
 0x40c   :  { %v6856_v15 = vld [vmem:[%s12177_s7 + $0x10] sm:$0xff] }
 0x40e   :  { %v9042_v55 = vpop.f32.mrb[162].mxu0 }
 0x40f   :  { %v6244_v43 = vadd.f32 %v9042_v55, %v7384_v34  ;;  %v6220_v60 = vpop.f32.mrb[163].mxu0  ;;  %v6857_v55 = vld [vmem:[%s12177_s7 + $0x18] sm:$0xff] }
 0x410   :  { %v6243_v19 = vadd.f32 %v7384_v34, %v6220_v60  ;;  %v9494_v34 = vpack.c.bf16 %v6855_v14, %v6854_v41  ;;  %v6859_v60 = vld [vmem:[%s12177_s7 + $0x28] sm:$0xff] }
 0x411   :  { %v6264_v45 = vmax.f32 %v6240_v57, %v6244_v43  ;;  %v9497_v57 = vpack.c.bf16 %v6857_v55, %v6856_v15  ;;  %v6858_v43 = vld [vmem:[%s12177_s7 + $0x20] sm:$0xff] }
 0x412   :  { %v6263_v8 = vmax.f32 %v6239_v1, %v6243_v19  ;;  %v9500_v1 = vpack.c.bf16 %v6859_v60, %v6858_v43 }
 0x414   :  { %v11922_v20 = vmax.f32 %v6263_v8, %v6264_v45 }
 0x416   :  { %9069 = vmatmul.mubr.msk.f32.gmra.mrb[152].mxu1 %vm6290_vm4, %v11922_v20 }
 0x417   :  { %9071 = vmatprep.mubr.msk.f32.mxu1 %vm9768_vm1, %v9766_v3 }
 0x41e   :  { %9072 = vmatmul.mubr.msk.f32.gmra.mrb[152].mxu1 %vm6290_vm4, %v9766_v3 }
 0x41f   :  { %9090 = vmatprep.mubr.msk.f32.mxu1 %vm9768_vm1, %v9766_v3 }
 0x426   :  { %9091 = vmatmul.mubr.msk.f32.vlgmr.msra.gmra.mrb[152].mxu1 %vm6290_vm4, %v9766_v3 }
 0x427   :  { %9447 = vmatpush3.bf16.msra.mxu1 %v9446_v54  ;;  %9093 = vmatprep.mubr.msk.f32.mxu1 %vm9768_vm1, %v9766_v3 }
 0x428   :  { %9448 = vmatprep.subr.bf16.mxu1 %v9767_v6 }
 0x42b   :  { %9450 = vmatpush3.bf16.msra.mxu1 %v9449_v39  ;;  %v9531_v39 = vadd.f32 %v9530_v59, %v7405_v27 }
 0x42c   :  { %9451 = vmatprep.subr.bf16.mxu1 %v9767_v6 }
 0x42e   :  { %9094 = vmatmul.mubr.msk.f32.gmra.mrb[152].mxu1 %vm6290_vm4, %v9766_v3 }
 0x42f   :  { %9096 = vmatprep.mubr.msk.f32.mxu1 %vm9768_vm1, %v9766_v3  ;;  %9453 = vmatpush3.bf16.msra.mxu1 %v9452_v17 }
 0x430   :  { %9454 = vmatprep.subr.bf16.mxu1 %v9767_v6 }
 0x432   :  { %9097 = vmatmul.mubr.msk.f32.gmra.mrb[156].mxu1 %vm6290_vm4, %v9766_v3 }
 0x433   :  { %9099 = vmatprep.mubr.msk.f32.mxu1 %vm9768_vm1, %v9766_v3  ;;  %9456 = vmatpush3.bf16.msra.mxu1 %v9455_v21  ;;  %v6861_v21 = vld [vmem:[%s12177_s7 + $0x38] sm:$0xff] }
 0x434   :  { %9457 = vmatprep.subr.bf16.mxu1 %v9767_v6  ;;  %v9503_v37 = vpack.c.bf16 %v6861_v21, %v6860_v16 }
 0x436   :  { %9100 = vmatmul.mubr.msk.f32.gmra.mrb[152].mxu1 %vm6290_vm4, %v9766_v3 }
 0x437   :  { %9102 = vmatprep.mubr.msk.f32.mxu1 %vm9768_vm1, %v9766_v3 }
 0x43e   :  { %9103 = vmatmul.mubr.msk.f32.gmra.mrb[152].mxu1 %vm6290_vm4, %v11922_v20 }
 0x43f   :  { %9121 = vmatprep.mubr.msk.f32.mxu1 %vm9768_vm1, %v9766_v3 }
 0x446   :  { %9122 = vmatmul.mubr.msk.f32.vlgmr.msra.gmra.mrb[152].mxu1 %vm6290_vm4, %v9766_v3 }
 0x447   :  { %9459 = vmatpush3.bf16.msra.mxu1 %v9458_v63  ;;  %9124 = vmatprep.mubr.msk.f32.mxu1 %vm9768_vm1, %v9766_v3  ;;  %v6863_v63 = vld [vmem:[%s12177_s7 + $0x48] sm:$0xff] }
 0x448   :  { %9460 = vmatprep.subr.bf16.mxu1 %v9767_v6  ;;  %v9506_v7 = vpack.c.bf16 %v6863_v63, %v6862_v40 }
 0x44b   :  { %9462 = vmatpush3.bf16.msra.mxu1 %v9461_v48  ;;  %v6865_v48 = vld [vmem:[%s12177_s7 + $0x58] sm:$0xff] }
 0x44c   :  { %9463 = vmatprep.subr.bf16.mxu1 %v9767_v6  ;;  %v9509_v28 = vpack.c.bf16 %v6865_v48, %v6864_v30 }
 0x44e   :  { %9125 = vmatmul.mubr.msk.f32.gmra.mrb[152].mxu1 %vm6290_vm4, %v11922_v20 }
 0x44f   :  { %9127 = vmatprep.mubr.msk.f32.mxu1 %vm9768_vm1, %v9766_v3  ;;  %9465 = vmatpush3.bf16.msra.mxu1 %v9464_v23  ;;  %v6867_v23 = vld [vmem:[%s12177_s7 + $0x68] sm:$0xff] }
 0x450   :  { %9466 = vmatprep.subr.bf16.mxu1 %v9767_v6  ;;  %v9512_v49 = vpack.c.bf16 %v6867_v23, %v6866_v12 }
 0x452   :  { %9128 = vmatmul.mubr.msk.f32.gmra.mrb[158].mxu1 %vm6290_vm4, %v9766_v3 }
 0x453   :  { %9130 = vmatprep.mubr.msk.f32.mxu1 %vm9768_vm1, %v9766_v3  ;;  %9468 = vmatpush3.bf16.msra.mxu1 %v9467_v35  ;;  %v6869_v35 = vld [vmem:[%s12177_s7 + $0x78] sm:$0xff] }
 0x454   :  { %9493 = vmatprep.subr.bf16.mxu1 %v9767_v6  ;;  %v9515_v5 = vpack.c.bf16 %v6869_v35, %v6868_v62 }
 0x456   :  { %9131 = vmatmul.mubr.msk.f32.gmra.mrb[152].mxu1 %vm6290_vm4, %v9766_v3 }
 0x457   :  { %9133 = vmatprep.mubr.msk.f32.mxu1 %vm9768_vm1, %v9766_v3 }
 0x45e   :  { %9134 = vmatmul.mubr.msk.f32.gmra.mrb[152].mxu1 %vm6290_vm4, %v9766_v3 }
 0x45f   :  { %9152 = vmatprep.mubr.msk.f32.mxu1 %vm9768_vm1, %v9766_v3 }
 0x466   :  { %9153 = vmatmul.mubr.msk.f32.vlgmr.msra.gmra.mrb[152].mxu1 %vm6290_vm4, %v11922_v20 }
 0x467   :  { %9155 = vmatprep.mubr.msk.f32.mxu1 %vm9768_vm1, %v9766_v3  ;;  %9495 = vmatpush3.bf16.msra.mxu1 %v9494_v34 }
 0x468   :  { %9496 = vmatprep.subr.bf16.mxu1 %v9767_v6 }
 0x46b   :  { %9498 = vmatpush3.bf16.msra.mxu1 %v9497_v57 }
 0x46c   :  { %9499 = vmatprep.subr.bf16.mxu1 %v9767_v6 }
 0x46e   :  { %9156 = vmatmul.mubr.msk.f32.gmra.mrb[152].mxu1 %vm6290_vm4, %v9766_v3 }
 0x46f   :  { %9158 = vmatprep.mubr.msk.f32.mxu1 %vm9768_vm1, %v9766_v3  ;;  %9501 = vmatpush3.bf16.msra.mxu1 %v9500_v1 }
 0x470   :  { %9502 = vmatprep.subr.bf16.mxu1 %v9767_v6 }
 0x472   :  { %9159 = vmatmul.mubr.msk.f32.gmra.mrb[160].mxu1 %vm6290_vm4, %v9766_v3 }
 0x473   :  { %9161 = vmatprep.mubr.msk.f32.mxu1 %vm9768_vm1, %v9766_v3  ;;  %9504 = vmatpush3.bf16.msra.mxu1 %v9503_v37 }
 0x474   :  { %9505 = vmatprep.subr.bf16.mxu1 %v9767_v6 }
 0x476   :  { %9162 = vmatmul.mubr.msk.f32.gmra.mrb[152].mxu1 %vm6290_vm4, %v9766_v3 }
 0x477   :  { %9164 = vmatprep.mubr.msk.f32.mxu1 %vm9768_vm1, %v9766_v3  ;;  %9507 = vmatpush3.bf16.msra.mxu1 %v9506_v7 }
 0x478   :  { %9508 = vmatprep.subr.bf16.mxu1 %v9767_v6 }
 0x47b   :  { %9510 = vmatpush3.bf16.msra.mxu1 %v9509_v28 }
 0x47c   :  { %9511 = vmatprep.subr.bf16.mxu1 %v9767_v6 }
 0x47e   :  { %9165 = vmatmul.mubr.msk.f32.gmra.mrb[152].mxu1 %vm6290_vm4, %v9766_v3 }
 0x47f   :  { %9234 = vmatprep.mubr.msk.f32.mxu1 %vm9768_vm1, %v9766_v3  ;;  %v6761_v3 = vld [vmem:[%s12176_s6 + $0x20] sm:$0xff]  ;;  %9513 = vmatpush3.bf16.msra.mxu1 %v9512_v49 }
 0x480   :  { %v9476_v46 = vpack.c.bf16 %v6762_v9, %v6761_v3  ;;  %9514 = vmatprep.subr.bf16.mxu1 %v9767_v6  ;;  %v7408_v9 = vld [vmem:[%s12173_s5 + $0x5] ss:$0 sm:$0xff] }
 0x482   :  { %9477 = vmatpush3.bf16.msra.mxu0 %v9476_v46 }
 0x483   :  { %9478 = vmatprep.subr.bf16.mxu0 %v9767_v6  ;;  %9516 = vmatpush3.bf16.msra.mxu1 %v9515_v5 }
 0x486   :  { %9480 = vmatpush3.bf16.msra.mxu0 %v9479_v32 }
 0x487   :  { %9481 = vmatprep.subr.bf16.mxu0 %v9767_v6 }
 0x48a   :  { %9483 = vmatpush3.bf16.msra.mxu0 %v9482_v10 }
 0x48b   :  { %9484 = vmatprep.subr.bf16.mxu0 %v9767_v6 }
 0x48e   :  { %9486 = vmatpush3.bf16.msra.mxu0 %v9485_v18 }
 0x48f   :  { %9487 = vmatprep.subr.bf16.mxu0 %v9767_v6 }
 0x492   :  { %9489 = vmatpush3.bf16.msra.mxu0 %v9488_v33 }
 0x493   :  { %9490 = vmatprep.subr.bf16.mxu0 %v9767_v6 }
 0x496   :  { %9492 = vmatpush3.bf16.msra.mxu0 %v9491_v53 }
 0x505   :  { %v6475_v19 = vpop.f32.mrb[156].mxu1 }
 0x506   :  { %v9098_v45 = vpop.f32.mrb[157].mxu1 }
 0x525   :  { %v6593_v8 = vpop.f32.mrb[158].mxu1 }
 0x526   :  { %v9129_v20 = vpop.f32.mrb[159].mxu1 }
 0x545   :  { %v6716_v50 = vpop.f32.mrb[160].mxu1 }
 0x546   :  { %v9160_v54 = vpop.f32.mrb[161].mxu1 }
 0x551   :  { %v6726_v0 = vpop.f32.mrb[152].mxu1 }
 0x552   :  { %v9532_v42 = vadd.f32 %v9531_v39, %v6726_v0  ;;  %v9166_v17 = vpop.f32.mrb[153].mxu1 }
 0x554   :  { %v6756_v2 = vmul.f32 0.25, %v9532_v42 }
 0x556   :  { %9200 = vmatmul.mubr.f32.vlgmr.msra.gmra.mrb[170].mxu0 %v6756_v2 }
 0x629   :  { %v6844_v58 = vpop.f32.mrb[170].mxu0 }
 0x62a   :  { %v6845_v25 = vadd.f32 %v7406_v24, %v6844_v58  ;;  %v9201_v31 = vpop.f32.mrb[171].mxu0 }
 0x62c   :  { %v6849_v13 = vmin.f32 %v6845_v25, 0.0  ;;  %vm6848_vm5 = vcmp.gt.f32.partialorder %v6845_v25, 0.0 }
 0x62e   :  { %v6850_v29 = vmul.f32 1.442695, %v6849_v13 }
 0x630   :  { %9764 = vpow2.f32 %v6850_v29 }
 0x63a   :  { %v9765_v6 = vpop.eup %9764 }
 0x63b   :  { %v7407_v52 = vadd.f32 -1.0, %v9765_v6 }
 0x63d   :  { %v6853_v3 = vsel %vm6848_vm5, %v6845_v25, %v7407_v52 }
 0x63e   :  { %9235 = vmatmul.mubr.f32.vlgmr.msra.gmra.mrb[162].mxu1 %v6853_v3 }
 0x711   :  { %v6941_v46 = vpop.f32.mrb[162].mxu1 }
 0x712   :  { %v6942_v26 = vadd.f32 %v7408_v9, %v6941_v46  ;;  %v9236_v61 = vpop.f32.mrb[163].mxu1 }
 0x714   :  { %6945 = vst [vmem:[%s12178_s8] sm:$0xff] %v6942_v26 }

</bundles_post_ra>
